<compile_context>
chip_gen: v5e
topology: v5e:2x2
jax: 0.10.0
libtpu: 0.0.40
codegen_flags: <defaults>
</compile_context>

<pallas_src>
import functools

import jax
import jax.numpy as jnp
from jax.experimental import pallas as pl
from jax.experimental.pallas import tpu as pltpu


def _gate_math(gates, c, D):
    """PyTorch LSTM gate nonlinearity. gates:(B,4D) in [i,f,g,o] order, c:(B,D). f32."""
    i_g = jax.nn.sigmoid(gates[:, 0 * D:1 * D])
    f_g = jax.nn.sigmoid(gates[:, 1 * D:2 * D])
    g_g = jnp.tanh(gates[:, 2 * D:3 * D])
    o_g = jax.nn.sigmoid(gates[:, 3 * D:4 * D])
    c_new = f_g * c + i_g * g_g
    h_new = o_g * jnp.tanh(c_new)
    return h_new, c_new


def _matchingnet_kernel(support_ref, query_ref,
                        wih_enc_ref, b_enc_ref, whh_enc_ref,
                        wih_cf_ref, w_rh_ref, b_c_ref,
                        g_ref, f_out_ref,
                        *, K, N, D):
    f32 = jnp.float32
    bf16 = jnp.bfloat16

    support = support_ref[...]                         # (K, D) f32
    fq = query_ref[...]                                # (N, D) f32
    support_b = support.astype(bf16)
    fq_b = fq.astype(bf16)

    # ---- hoisted, loop-invariant input projection: ONE fused matmul for both
    # encoder directions (bf16 operands, f32 accumulation, f32 bias add). ----
    xproj = jnp.dot(support_b, wih_enc_ref[...],
                    preferred_element_type=f32) + b_enc_ref[...]    # (K, 8D)
    xf = xproj[:, :4 * D]                                            # (K, 4D) fwd gates
    xb = xproj[:, 4 * D:]                                            # (K, 4D) bwd gates

    whh_enc = whh_enc_ref[...]                         # (2D, 8D) block-diag, bf16

    hf = jnp.zeros((1, D), f32); cf = jnp.zeros((1, D), f32)
    hb = jnp.zeros((1, D), f32); cb = jnp.zeros((1, D), f32)
    hf_rows = []
    hb_rows = [None] * K

    # ---- fused fwd+bwd encoder: K serial steps, ONE recurrent MXU dot each ----
    # K is small and static, so this Python loop fully unrolls at trace time.
    for k in range(K):
        kb = K - 1 - k
        h_cat = jnp.concatenate([hf, hb], axis=1).astype(bf16)       # (1, 2D)
        rec = jnp.dot(h_cat, whh_enc, preferred_element_type=f32)    # (1, 8D)
        hf, cf = _gate_math(xf[k:k + 1, :] + rec[:, :4 * D], cf, D)
        hb, cb = _gate_math(xb[kb:kb + 1, :] + rec[:, 4 * D:], cb, D)
        hf_rows.append(hf)
        hb_rows[kb] = hb

    # Hidden states live in vregs; single dense write of G (no VMEM scratch).
    G = support + jnp.concatenate(hf_rows, axis=0) + jnp.concatenate(hb_rows, axis=0)
    g_ref[...] = G

    # ---- FullyContextualEmbedding: K steps of attention + LSTMCell ----
    G_b = G.astype(bf16)
    Gt_b = jnp.transpose(G).astype(bf16)               # (D, K), hoisted out of the loop
    w_rh = w_rh_ref[...]                               # (2D, 4D) bf16: [wih_c r-rows ; whh_c]
    # Loop-invariant query projection (f-rows of wih_c) + bias, hoisted.
    fq_gates = jnp.dot(fq_b, wih_cf_ref[...],
                       preferred_element_type=f32) + b_c_ref[...]    # (N, 4D)

    h = fq
    c = jnp.zeros((N, D), f32)
    for _ in range(K):
        logits = jnp.dot(h.astype(bf16), Gt_b, preferred_element_type=f32)   # (N, K)
        m = jnp.max(logits, axis=1, keepdims=True)
        e = jnp.exp(logits - m)
        # softmax over K (dim=1); divide via EUP approximate reciprocal (free slot)
        a = e * pl.reciprocal(jnp.sum(e, axis=1, keepdims=True), approx=True)
        r = jnp.dot(a.astype(bf16), G_b, preferred_element_type=f32)         # (N, D)
        # ONE fused gate matmul: [r | h] @ [wih_c(r-rows) ; whh_c]
        x_cat = jnp.concatenate([r, h], axis=1).astype(bf16)                 # (N, 2D)
        gates = fq_gates + jnp.dot(x_cat, w_rh, preferred_element_type=f32)  # (N, 4D)
        h_new, c = _gate_math(gates, c, D)
        h = h_new + fq                                                       # residual

    f_out_ref[...] = h


def matchingnet_forward(support, query, params):
    """Single-episode MatchingNet forward. Returns (G, F)."""
    K, D = support.shape
    N = query.shape[0]
    f32, bf16 = jnp.float32, jnp.bfloat16

    # ---- host-side weight prep: fused layouts + bf16 MXU operands ----
    # Encoder input projection: [wih_f | wih_b] -> (D, 8D); bias [b_f | b_b].
    wih_enc = jnp.concatenate([params["wih_f"], params["wih_b"]], axis=1).astype(bf16)
    b_enc = jnp.concatenate([params["b_f"], params["b_b"]], axis=1).astype(f32)
    # Encoder recurrence: block-diag(whh_f, whh_b) -> (2D, 8D): fwd+bwd share one dot/step.
    z = jnp.zeros((D, 4 * D), f32)
    whh_enc = jnp.concatenate(
        [jnp.concatenate([params["whh_f"], z], axis=1),
         jnp.concatenate([z, params["whh_b"]], axis=1)], axis=0).astype(bf16)
    # FCE LSTMCell: rows of wih_c that multiply f (hoisted projection) vs the rows
    # that multiply r; the latter fused with whh_c so the loop has one gate dot.
    wih_cf = params["wih_c"][:D, :].astype(bf16)                                      # (D, 4D)
    w_rh = jnp.concatenate([params["wih_c"][D:, :], params["whh_c"]], axis=0).astype(bf16)  # (2D, 4D)
    b_c = params["b_c"].astype(f32)

    kernel = functools.partial(_matchingnet_kernel, K=K, N=N, D=D)
    vmem = pl.BlockSpec(memory_space=pltpu.MemorySpace.VMEM)
    ins = (support, query, wih_enc, b_enc, whh_enc, wih_cf, w_rh, b_c)
    # TODO(synk): batched-episode version: grid over episodes with
    # dimension_semantics=("parallel",), resident weights (index_map -> 0),
    # lane-dense (>=128) output blocks, and vmem_limit_bytes sized for v7x.
    return pl.pallas_call(
        kernel,
        out_shape=(jax.ShapeDtypeStruct((K, D), f32),
                   jax.ShapeDtypeStruct((N, D), f32)),
        in_specs=[vmem] * len(ins),
        out_specs=(vmem, vmem),
    )(*ins)


def init_params(key, D):
    """Deterministic synthetic init matching the PyTorch parameter shapes."""
    std = 1.0 / float(jnp.sqrt(jnp.float32(D)))
    ks = jax.random.split(key, 12)
    u = lambda k, shape: jax.random.uniform(k, shape, jnp.float32, -std, std)
    # Bidirectional encoder LSTM (PyTorch layout (4D, in)) -> pre-transposed.
    wih_f = u(ks[0], (4 * D, D)).T
    whh_f = u(ks[1], (4 * D, D)).T
    b_f = (u(ks[2], (4 * D,)) + u(ks[3], (4 * D,))).reshape(1, 4 * D)
    wih_b = u(ks[4], (4 * D, D)).T
    whh_b = u(ks[5], (4 * D, D)).T
    b_b = (u(ks[6], (4 * D,)) + u(ks[7], (4 * D,))).reshape(1, 4 * D)
    # FCE LSTMCell: input dim is 2*D.
    wih_c = u(ks[8], (4 * D, 2 * D)).T
    whh_c = u(ks[9], (4 * D, D)).T
    b_c = (u(ks[10], (4 * D,)) + u(ks[11], (4 * D,))).reshape(1, 4 * D)
    return dict(wih_f=wih_f, whh_f=whh_f, b_f=b_f,
                wih_b=wih_b, whh_b=whh_b, b_b=b_b,
                wih_c=wih_c, whh_c=whh_c, b_c=b_c)


def reference_forward(support, query, p, matmul_dtype=jnp.float32):
    """Pure-JAX reference reproducing the PyTorch forward semantics.

    matmul_dtype=jnp.bfloat16 mirrors the kernel's MXU operand precision
    (f32 accumulation) so the comparison isolates kernel-implementation
    correctness from the intended bf16 quantization.
    """
    K, D = support.shape
    f32 = jnp.float32

    def mm(a, b):
        return jnp.dot(a.astype(matmul_dtype), b.astype(matmul_dtype),
                       preferred_element_type=f32)

    def lstm_step(x, h, c, wih, whh, b):
        gates = mm(x, wih) + mm(h, whh) + b
        i = jax.nn.sigmoid(gates[:, :D])
        f = jax.nn.sigmoid(gates[:, D:2 * D])
        g = jnp.tanh(gates[:, 2 * D:3 * D])
        o = jax.nn.sigmoid(gates[:, 3 * D:])
        c = f * c + i * g
        h = o * jnp.tanh(c)
        return h, c

    h = jnp.zeros((1, D)); c = jnp.zeros((1, D))
    outs_f = []
    for k in range(K):
        h, c = lstm_step(support[k:k + 1], h, c, p["wih_f"], p["whh_f"], p["b_f"])
        outs_f.append(h)
    h = jnp.zeros((1, D)); c = jnp.zeros((1, D))
    outs_b = [None] * K
    for k in range(K - 1, -1, -1):
        h, c = lstm_step(support[k:k + 1], h, c, p["wih_b"], p["whh_b"], p["b_b"])
        outs_b[k] = h
    G = support + jnp.concatenate(outs_f, 0) + jnp.concatenate(outs_b, 0)

    f = query
    h = f
    c = jnp.zeros_like(f)
    for _ in range(K):
        logits = mm(h, G.T)
        a = jax.nn.softmax(logits, axis=1)   # nn.Softmax() -> dim=1 for 2D input
        r = mm(a, G)
        x = jnp.concatenate([f, r], 1)
        h2, c = lstm_step(x, h, c, p["wih_c"], p["whh_c"], p["b_c"])
        h = h2 + f
    return G, h


if __name__ == "__main__":
    D, K, N = 32, 8, 4   # feat_dim, support size, query size
    key = jax.random.PRNGKey(0)
    k1, k2, k3 = jax.random.split(key, 3)
    support = jax.random.normal(k1, (K, D), jnp.float32)
    query = jax.random.normal(k2, (N, D), jnp.float32)
    params = init_params(k3, D)

    G, F = matchingnet_forward(support, query, params)
    jax.block_until_ready((G, F))

    # Reference with bf16 matmul operands (mirrors the kernel's MXU precision);
    # remaining difference is the EUP exp / approx-reciprocal softmax over K steps.
    G_ref_b, F_ref_b = reference_forward(support, query, params,
                                         matmul_dtype=jnp.bfloat16)
    assert jnp.allclose(G, G_ref_b, atol=1e-2, rtol=1e-2), "G mismatch vs bf16 reference"
    assert jnp.allclose(F, F_ref_b, atol=3e-2, rtol=3e-2), "F mismatch vs bf16 reference"

    # G only passes through the contractive encoder, so it also stays close to the
    # exact f32 reference; F accumulates the intended bf16 quantization drift
    # through the attention recurrence and is checked against the bf16 reference.
    G_ref, _ = reference_forward(support, query, params)
    assert jnp.allclose(G, G_ref, atol=5e-2, rtol=5e-2), "G mismatch vs f32 reference"

    print("KERNEL_OK")
</pallas_src>

<mosaic_0001>
module attributes {stable_mosaic.version = 11 : i64} {
  func.func @_matchingnet_kernel(%arg0: memref<8x32xf32, #tpu.memory_space<vmem>>, %arg1: memref<4x32xf32, #tpu.memory_space<vmem>>, %arg2: memref<32x256xbf16, #tpu.memory_space<vmem>>, %arg3: memref<1x256xf32, #tpu.memory_space<vmem>>, %arg4: memref<64x256xbf16, #tpu.memory_space<vmem>>, %arg5: memref<32x128xbf16, #tpu.memory_space<vmem>>, %arg6: memref<64x128xbf16, #tpu.memory_space<vmem>>, %arg7: memref<1x128xf32, #tpu.memory_space<vmem>>, %arg8: memref<8x32xf32, #tpu.memory_space<vmem>>, %arg9: memref<4x32xf32, #tpu.memory_space<vmem>>) attributes {dimension_semantics = [], scalar_prefetch = 0 : i64, scratch_operands = 0 : i64, tpu.core_type = #tpu.core_type<tc>} {
    %c0 = arith.constant 0 : index
    %c0_0 = arith.constant 0 : index
    %0 = vector.load %arg0[%c0, %c0_0] : memref<8x32xf32, #tpu.memory_space<vmem>>, vector<8x32xf32>
    %c0_1 = arith.constant 0 : index
    %c0_2 = arith.constant 0 : index
    %1 = vector.load %arg1[%c0_1, %c0_2] : memref<4x32xf32, #tpu.memory_space<vmem>>, vector<4x32xf32>
    %2 = arith.truncf %0 : vector<8x32xf32> to vector<8x32xbf16>
    %3 = arith.truncf %1 : vector<4x32xf32> to vector<4x32xbf16>
    %c0_3 = arith.constant 0 : index
    %c0_4 = arith.constant 0 : index
    %4 = vector.load %arg2[%c0_3, %c0_4] : memref<32x256xbf16, #tpu.memory_space<vmem>>, vector<32x256xbf16>
    %cst = arith.constant dense<0.000000e+00> : vector<8x256xf32>
    %5 = tpu.matmul %2, %4, %cst {dimension_numbers = #tpu.dot_dimension_numbers<[1], [0], [0], [1], [0, 0, 1, 1], [], []>} : vector<8x32xbf16>, vector<32x256xbf16>, vector<8x256xf32> -> vector<8x256xf32>
    %c0_5 = arith.constant 0 : index
    %c0_6 = arith.constant 0 : index
    %6 = vector.load %arg3[%c0_5, %c0_6] : memref<1x256xf32, #tpu.memory_space<vmem>>, vector<1x256xf32>
    %7 = vector.broadcast %6 : vector<1x256xf32> to vector<8x256xf32>
    %8 = arith.addf %5, %7 : vector<8x256xf32>
    %9 = vector.extract_strided_slice %8 {offsets = [0, 0], sizes = [8, 128], strides = [1, 1]} : vector<8x256xf32> to vector<8x128xf32>
    %10 = vector.extract_strided_slice %8 {offsets = [0, 128], sizes = [8, 128], strides = [1, 1]} : vector<8x256xf32> to vector<8x128xf32>
    %c0_7 = arith.constant 0 : index
    %c0_8 = arith.constant 0 : index
    %11 = vector.load %arg4[%c0_7, %c0_8] : memref<64x256xbf16, #tpu.memory_space<vmem>>, vector<64x256xbf16>
    %cst_9 = arith.constant 0.000000e+00 : f32
    %12 = vector.broadcast %cst_9 : f32 to vector<1x32xf32>
    %cst_10 = arith.constant 0.000000e+00 : f32
    %13 = vector.broadcast %cst_10 : f32 to vector<1x32xf32>
    %cst_11 = arith.constant 0.000000e+00 : f32
    %14 = vector.broadcast %cst_11 : f32 to vector<1x32xf32>
    %cst_12 = arith.constant 0.000000e+00 : f32
    %15 = vector.broadcast %cst_12 : f32 to vector<1x32xf32>
    %16 = tpu.concatenate %12, %14 in 1 : vector<1x32xf32>, vector<1x32xf32> -> vector<1x64xf32>
    %17 = arith.truncf %16 : vector<1x64xf32> to vector<1x64xbf16>
    %cst_13 = arith.constant dense<0.000000e+00> : vector<1x256xf32>
    %18 = tpu.matmul %17, %11, %cst_13 {dimension_numbers = #tpu.dot_dimension_numbers<[1], [0], [0], [1], [0, 0, 1, 1], [], []>} : vector<1x64xbf16>, vector<64x256xbf16>, vector<1x256xf32> -> vector<1x256xf32>
    %19 = vector.extract_strided_slice %9 {offsets = [0, 0], sizes = [1, 128], strides = [1, 1]} : vector<8x128xf32> to vector<1x128xf32>
    %20 = vector.extract_strided_slice %18 {offsets = [0, 0], sizes = [1, 128], strides = [1, 1]} : vector<1x256xf32> to vector<1x128xf32>
    %21 = arith.addf %19, %20 : vector<1x128xf32>
    %22 = vector.extract_strided_slice %21 {offsets = [0, 0], sizes = [1, 32], strides = [1, 1]} : vector<1x128xf32> to vector<1x32xf32>
    %23 = arith.negf %22 : vector<1x32xf32>
    %24 = math.exp %23 : vector<1x32xf32>
    %cst_14 = arith.constant 1.000000e+00 : f32
    %25 = vector.broadcast %cst_14 : f32 to vector<1x32xf32>
    %26 = arith.addf %25, %24 : vector<1x32xf32>
    %27 = arith.divf %25, %26 : vector<1x32xf32>
    %28 = vector.extract_strided_slice %21 {offsets = [0, 32], sizes = [1, 32], strides = [1, 1]} : vector<1x128xf32> to vector<1x32xf32>
    %29 = arith.negf %28 : vector<1x32xf32>
    %30 = math.exp %29 : vector<1x32xf32>
    %cst_15 = arith.constant 1.000000e+00 : f32
    %31 = vector.broadcast %cst_15 : f32 to vector<1x32xf32>
    %32 = arith.addf %31, %30 : vector<1x32xf32>
    %33 = arith.divf %31, %32 : vector<1x32xf32>
    %34 = vector.extract_strided_slice %21 {offsets = [0, 64], sizes = [1, 32], strides = [1, 1]} : vector<1x128xf32> to vector<1x32xf32>
    %35 = math.tanh %34 : vector<1x32xf32>
    %36 = vector.extract_strided_slice %21 {offsets = [0, 96], sizes = [1, 32], strides = [1, 1]} : vector<1x128xf32> to vector<1x32xf32>
    %37 = arith.negf %36 : vector<1x32xf32>
    %38 = math.exp %37 : vector<1x32xf32>
    %cst_16 = arith.constant 1.000000e+00 : f32
    %39 = vector.broadcast %cst_16 : f32 to vector<1x32xf32>
    %40 = arith.addf %39, %38 : vector<1x32xf32>
    %41 = arith.divf %39, %40 : vector<1x32xf32>
    %42 = arith.mulf %33, %13 : vector<1x32xf32>
    %43 = arith.mulf %27, %35 : vector<1x32xf32>
    %44 = arith.addf %42, %43 : vector<1x32xf32>
    %45 = math.tanh %44 : vector<1x32xf32>
    %46 = arith.mulf %41, %45 : vector<1x32xf32>
    %47 = vector.extract_strided_slice %10 {offsets = [7, 0], sizes = [1, 128], strides = [1, 1]} : vector<8x128xf32> to vector<1x128xf32>
    %48 = vector.extract_strided_slice %18 {offsets = [0, 128], sizes = [1, 128], strides = [1, 1]} : vector<1x256xf32> to vector<1x128xf32>
    %49 = arith.addf %47, %48 : vector<1x128xf32>
    %50 = vector.extract_strided_slice %49 {offsets = [0, 0], sizes = [1, 32], strides = [1, 1]} : vector<1x128xf32> to vector<1x32xf32>
    %51 = arith.negf %50 : vector<1x32xf32>
    %52 = math.exp %51 : vector<1x32xf32>
    %cst_17 = arith.constant 1.000000e+00 : f32
    %53 = vector.broadcast %cst_17 : f32 to vector<1x32xf32>
    %54 = arith.addf %53, %52 : vector<1x32xf32>
    %55 = arith.divf %53, %54 : vector<1x32xf32>
    %56 = vector.extract_strided_slice %49 {offsets = [0, 32], sizes = [1, 32], strides = [1, 1]} : vector<1x128xf32> to vector<1x32xf32>
    %57 = arith.negf %56 : vector<1x32xf32>
    %58 = math.exp %57 : vector<1x32xf32>
    %cst_18 = arith.constant 1.000000e+00 : f32
    %59 = vector.broadcast %cst_18 : f32 to vector<1x32xf32>
    %60 = arith.addf %59, %58 : vector<1x32xf32>
    %61 = arith.divf %59, %60 : vector<1x32xf32>
    %62 = vector.extract_strided_slice %49 {offsets = [0, 64], sizes = [1, 32], strides = [1, 1]} : vector<1x128xf32> to vector<1x32xf32>
    %63 = math.tanh %62 : vector<1x32xf32>
    %64 = vector.extract_strided_slice %49 {offsets = [0, 96], sizes = [1, 32], strides = [1, 1]} : vector<1x128xf32> to vector<1x32xf32>
    %65 = arith.negf %64 : vector<1x32xf32>
    %66 = math.exp %65 : vector<1x32xf32>
    %cst_19 = arith.constant 1.000000e+00 : f32
    %67 = vector.broadcast %cst_19 : f32 to vector<1x32xf32>
    %68 = arith.addf %67, %66 : vector<1x32xf32>
    %69 = arith.divf %67, %68 : vector<1x32xf32>
    %70 = arith.mulf %61, %15 : vector<1x32xf32>
    %71 = arith.mulf %55, %63 : vector<1x32xf32>
    %72 = arith.addf %70, %71 : vector<1x32xf32>
    %73 = math.tanh %72 : vector<1x32xf32>
    %74 = arith.mulf %69, %73 : vector<1x32xf32>
    %75 = tpu.concatenate %46, %74 in 1 : vector<1x32xf32>, vector<1x32xf32> -> vector<1x64xf32>
    %76 = arith.truncf %75 : vector<1x64xf32> to vector<1x64xbf16>
    %cst_20 = arith.constant dense<0.000000e+00> : vector<1x256xf32>
    %77 = tpu.matmul %76, %11, %cst_20 {dimension_numbers = #tpu.dot_dimension_numbers<[1], [0], [0], [1], [0, 0, 1, 1], [], []>} : vector<1x64xbf16>, vector<64x256xbf16>, vector<1x256xf32> -> vector<1x256xf32>
    %78 = vector.extract_strided_slice %9 {offsets = [1, 0], sizes = [1, 128], strides = [1, 1]} : vector<8x128xf32> to vector<1x128xf32>
    %79 = vector.extract_strided_slice %77 {offsets = [0, 0], sizes = [1, 128], strides = [1, 1]} : vector<1x256xf32> to vector<1x128xf32>
    %80 = arith.addf %78, %79 : vector<1x128xf32>
    %81 = vector.extract_strided_slice %80 {offsets = [0, 0], sizes = [1, 32], strides = [1, 1]} : vector<1x128xf32> to vector<1x32xf32>
    %82 = arith.negf %81 : vector<1x32xf32>
    %83 = math.exp %82 : vector<1x32xf32>
    %cst_21 = arith.constant 1.000000e+00 : f32
    %84 = vector.broadcast %cst_21 : f32 to vector<1x32xf32>
    %85 = arith.addf %84, %83 : vector<1x32xf32>
    %86 = arith.divf %84, %85 : vector<1x32xf32>
    %87 = vector.extract_strided_slice %80 {offsets = [0, 32], sizes = [1, 32], strides = [1, 1]} : vector<1x128xf32> to vector<1x32xf32>
    %88 = arith.negf %87 : vector<1x32xf32>
    %89 = math.exp %88 : vector<1x32xf32>
    %cst_22 = arith.constant 1.000000e+00 : f32
    %90 = vector.broadcast %cst_22 : f32 to vector<1x32xf32>
    %91 = arith.addf %90, %89 : vector<1x32xf32>
    %92 = arith.divf %90, %91 : vector<1x32xf32>
    %93 = vector.extract_strided_slice %80 {offsets = [0, 64], sizes = [1, 32], strides = [1, 1]} : vector<1x128xf32> to vector<1x32xf32>
    %94 = math.tanh %93 : vector<1x32xf32>
    %95 = vector.extract_strided_slice %80 {offsets = [0, 96], sizes = [1, 32], strides = [1, 1]} : vector<1x128xf32> to vector<1x32xf32>
    %96 = arith.negf %95 : vector<1x32xf32>
    %97 = math.exp %96 : vector<1x32xf32>
    %cst_23 = arith.constant 1.000000e+00 : f32
    %98 = vector.broadcast %cst_23 : f32 to vector<1x32xf32>
    %99 = arith.addf %98, %97 : vector<1x32xf32>
    %100 = arith.divf %98, %99 : vector<1x32xf32>
    %101 = arith.mulf %92, %44 : vector<1x32xf32>
    %102 = arith.mulf %86, %94 : vector<1x32xf32>
    %103 = arith.addf %101, %102 : vector<1x32xf32>
    %104 = math.tanh %103 : vector<1x32xf32>
    %105 = arith.mulf %100, %104 : vector<1x32xf32>
    %106 = vector.extract_strided_slice %10 {offsets = [6, 0], sizes = [1, 128], strides = [1, 1]} : vector<8x128xf32> to vector<1x128xf32>
    %107 = vector.extract_strided_slice %77 {offsets = [0, 128], sizes = [1, 128], strides = [1, 1]} : vector<1x256xf32> to vector<1x128xf32>
    %108 = arith.addf %106, %107 : vector<1x128xf32>
    %109 = vector.extract_strided_slice %108 {offsets = [0, 0], sizes = [1, 32], strides = [1, 1]} : vector<1x128xf32> to vector<1x32xf32>
    %110 = arith.negf %109 : vector<1x32xf32>
    %111 = math.exp %110 : vector<1x32xf32>
    %cst_24 = arith.constant 1.000000e+00 : f32
    %112 = vector.broadcast %cst_24 : f32 to vector<1x32xf32>
    %113 = arith.addf %112, %111 : vector<1x32xf32>
    %114 = arith.divf %112, %113 : vector<1x32xf32>
    %115 = vector.extract_strided_slice %108 {offsets = [0, 32], sizes = [1, 32], strides = [1, 1]} : vector<1x128xf32> to vector<1x32xf32>
    %116 = arith.negf %115 : vector<1x32xf32>
    %117 = math.exp %116 : vector<1x32xf32>
    %cst_25 = arith.constant 1.000000e+00 : f32
    %118 = vector.broadcast %cst_25 : f32 to vector<1x32xf32>
    %119 = arith.addf %118, %117 : vector<1x32xf32>
    %120 = arith.divf %118, %119 : vector<1x32xf32>
    %121 = vector.extract_strided_slice %108 {offsets = [0, 64], sizes = [1, 32], strides = [1, 1]} : vector<1x128xf32> to vector<1x32xf32>
    %122 = math.tanh %121 : vector<1x32xf32>
    %123 = vector.extract_strided_slice %108 {offsets = [0, 96], sizes = [1, 32], strides = [1, 1]} : vector<1x128xf32> to vector<1x32xf32>
    %124 = arith.negf %123 : vector<1x32xf32>
    %125 = math.exp %124 : vector<1x32xf32>
    %cst_26 = arith.constant 1.000000e+00 : f32
    %126 = vector.broadcast %cst_26 : f32 to vector<1x32xf32>
    %127 = arith.addf %126, %125 : vector<1x32xf32>
    %128 = arith.divf %126, %127 : vector<1x32xf32>
    %129 = arith.mulf %120, %72 : vector<1x32xf32>
    %130 = arith.mulf %114, %122 : vector<1x32xf32>
    %131 = arith.addf %129, %130 : vector<1x32xf32>
    %132 = math.tanh %131 : vector<1x32xf32>
    %133 = arith.mulf %128, %132 : vector<1x32xf32>
    %134 = tpu.concatenate %105, %133 in 1 : vector<1x32xf32>, vector<1x32xf32> -> vector<1x64xf32>
    %135 = arith.truncf %134 : vector<1x64xf32> to vector<1x64xbf16>
    %cst_27 = arith.constant dense<0.000000e+00> : vector<1x256xf32>
    %136 = tpu.matmul %135, %11, %cst_27 {dimension_numbers = #tpu.dot_dimension_numbers<[1], [0], [0], [1], [0, 0, 1, 1], [], []>} : vector<1x64xbf16>, vector<64x256xbf16>, vector<1x256xf32> -> vector<1x256xf32>
    %137 = vector.extract_strided_slice %9 {offsets = [2, 0], sizes = [1, 128], strides = [1, 1]} : vector<8x128xf32> to vector<1x128xf32>
    %138 = vector.extract_strided_slice %136 {offsets = [0, 0], sizes = [1, 128], strides = [1, 1]} : vector<1x256xf32> to vector<1x128xf32>
    %139 = arith.addf %137, %138 : vector<1x128xf32>
    %140 = vector.extract_strided_slice %139 {offsets = [0, 0], sizes = [1, 32], strides = [1, 1]} : vector<1x128xf32> to vector<1x32xf32>
    %141 = arith.negf %140 : vector<1x32xf32>
    %142 = math.exp %141 : vector<1x32xf32>
    %cst_28 = arith.constant 1.000000e+00 : f32
    %143 = vector.broadcast %cst_28 : f32 to vector<1x32xf32>
    %144 = arith.addf %143, %142 : vector<1x32xf32>
    %145 = arith.divf %143, %144 : vector<1x32xf32>
    %146 = vector.extract_strided_slice %139 {offsets = [0, 32], sizes = [1, 32], strides = [1, 1]} : vector<1x128xf32> to vector<1x32xf32>
    %147 = arith.negf %146 : vector<1x32xf32>
    %148 = math.exp %147 : vector<1x32xf32>
    %cst_29 = arith.constant 1.000000e+00 : f32
    %149 = vector.broadcast %cst_29 : f32 to vector<1x32xf32>
    %150 = arith.addf %149, %148 : vector<1x32xf32>
    %151 = arith.divf %149, %150 : vector<1x32xf32>
    %152 = vector.extract_strided_slice %139 {offsets = [0, 64], sizes = [1, 32], strides = [1, 1]} : vector<1x128xf32> to vector<1x32xf32>
    %153 = math.tanh %152 : vector<1x32xf32>
    %154 = vector.extract_strided_slice %139 {offsets = [0, 96], sizes = [1, 32], strides = [1, 1]} : vector<1x128xf32> to vector<1x32xf32>
    %155 = arith.negf %154 : vector<1x32xf32>
    %156 = math.exp %155 : vector<1x32xf32>
    %cst_30 = arith.constant 1.000000e+00 : f32
    %157 = vector.broadcast %cst_30 : f32 to vector<1x32xf32>
    %158 = arith.addf %157, %156 : vector<1x32xf32>
    %159 = arith.divf %157, %158 : vector<1x32xf32>
    %160 = arith.mulf %151, %103 : vector<1x32xf32>
    %161 = arith.mulf %145, %153 : vector<1x32xf32>
    %162 = arith.addf %160, %161 : vector<1x32xf32>
    %163 = math.tanh %162 : vector<1x32xf32>
    %164 = arith.mulf %159, %163 : vector<1x32xf32>
    %165 = vector.extract_strided_slice %10 {offsets = [5, 0], sizes = [1, 128], strides = [1, 1]} : vector<8x128xf32> to vector<1x128xf32>
    %166 = vector.extract_strided_slice %136 {offsets = [0, 128], sizes = [1, 128], strides = [1, 1]} : vector<1x256xf32> to vector<1x128xf32>
    %167 = arith.addf %165, %166 : vector<1x128xf32>
    %168 = vector.extract_strided_slice %167 {offsets = [0, 0], sizes = [1, 32], strides = [1, 1]} : vector<1x128xf32> to vector<1x32xf32>
    %169 = arith.negf %168 : vector<1x32xf32>
    %170 = math.exp %169 : vector<1x32xf32>
    %cst_31 = arith.constant 1.000000e+00 : f32
    %171 = vector.broadcast %cst_31 : f32 to vector<1x32xf32>
    %172 = arith.addf %171, %170 : vector<1x32xf32>
    %173 = arith.divf %171, %172 : vector<1x32xf32>
    %174 = vector.extract_strided_slice %167 {offsets = [0, 32], sizes = [1, 32], strides = [1, 1]} : vector<1x128xf32> to vector<1x32xf32>
    %175 = arith.negf %174 : vector<1x32xf32>
    %176 = math.exp %175 : vector<1x32xf32>
    %cst_32 = arith.constant 1.000000e+00 : f32
    %177 = vector.broadcast %cst_32 : f32 to vector<1x32xf32>
    %178 = arith.addf %177, %176 : vector<1x32xf32>
    %179 = arith.divf %177, %178 : vector<1x32xf32>
    %180 = vector.extract_strided_slice %167 {offsets = [0, 64], sizes = [1, 32], strides = [1, 1]} : vector<1x128xf32> to vector<1x32xf32>
    %181 = math.tanh %180 : vector<1x32xf32>
    %182 = vector.extract_strided_slice %167 {offsets = [0, 96], sizes = [1, 32], strides = [1, 1]} : vector<1x128xf32> to vector<1x32xf32>
    %183 = arith.negf %182 : vector<1x32xf32>
    %184 = math.exp %183 : vector<1x32xf32>
    %cst_33 = arith.constant 1.000000e+00 : f32
    %185 = vector.broadcast %cst_33 : f32 to vector<1x32xf32>
    %186 = arith.addf %185, %184 : vector<1x32xf32>
    %187 = arith.divf %185, %186 : vector<1x32xf32>
    %188 = arith.mulf %179, %131 : vector<1x32xf32>
    %189 = arith.mulf %173, %181 : vector<1x32xf32>
    %190 = arith.addf %188, %189 : vector<1x32xf32>
    %191 = math.tanh %190 : vector<1x32xf32>
    %192 = arith.mulf %187, %191 : vector<1x32xf32>
    %193 = tpu.concatenate %164, %192 in 1 : vector<1x32xf32>, vector<1x32xf32> -> vector<1x64xf32>
    %194 = arith.truncf %193 : vector<1x64xf32> to vector<1x64xbf16>
    %cst_34 = arith.constant dense<0.000000e+00> : vector<1x256xf32>
    %195 = tpu.matmul %194, %11, %cst_34 {dimension_numbers = #tpu.dot_dimension_numbers<[1], [0], [0], [1], [0, 0, 1, 1], [], []>} : vector<1x64xbf16>, vector<64x256xbf16>, vector<1x256xf32> -> vector<1x256xf32>
    %196 = vector.extract_strided_slice %9 {offsets = [3, 0], sizes = [1, 128], strides = [1, 1]} : vector<8x128xf32> to vector<1x128xf32>
    %197 = vector.extract_strided_slice %195 {offsets = [0, 0], sizes = [1, 128], strides = [1, 1]} : vector<1x256xf32> to vector<1x128xf32>
    %198 = arith.addf %196, %197 : vector<1x128xf32>
    %199 = vector.extract_strided_slice %198 {offsets = [0, 0], sizes = [1, 32], strides = [1, 1]} : vector<1x128xf32> to vector<1x32xf32>
    %200 = arith.negf %199 : vector<1x32xf32>
    %201 = math.exp %200 : vector<1x32xf32>
    %cst_35 = arith.constant 1.000000e+00 : f32
    %202 = vector.broadcast %cst_35 : f32 to vector<1x32xf32>
    %203 = arith.addf %202, %201 : vector<1x32xf32>
    %204 = arith.divf %202, %203 : vector<1x32xf32>
    %205 = vector.extract_strided_slice %198 {offsets = [0, 32], sizes = [1, 32], strides = [1, 1]} : vector<1x128xf32> to vector<1x32xf32>
    %206 = arith.negf %205 : vector<1x32xf32>
    %207 = math.exp %206 : vector<1x32xf32>
    %cst_36 = arith.constant 1.000000e+00 : f32
    %208 = vector.broadcast %cst_36 : f32 to vector<1x32xf32>
    %209 = arith.addf %208, %207 : vector<1x32xf32>
    %210 = arith.divf %208, %209 : vector<1x32xf32>
    %211 = vector.extract_strided_slice %198 {offsets = [0, 64], sizes = [1, 32], strides = [1, 1]} : vector<1x128xf32> to vector<1x32xf32>
    %212 = math.tanh %211 : vector<1x32xf32>
    %213 = vector.extract_strided_slice %198 {offsets = [0, 96], sizes = [1, 32], strides = [1, 1]} : vector<1x128xf32> to vector<1x32xf32>
    %214 = arith.negf %213 : vector<1x32xf32>
    %215 = math.exp %214 : vector<1x32xf32>
    %cst_37 = arith.constant 1.000000e+00 : f32
    %216 = vector.broadcast %cst_37 : f32 to vector<1x32xf32>
    %217 = arith.addf %216, %215 : vector<1x32xf32>
    %218 = arith.divf %216, %217 : vector<1x32xf32>
    %219 = arith.mulf %210, %162 : vector<1x32xf32>
    %220 = arith.mulf %204, %212 : vector<1x32xf32>
    %221 = arith.addf %219, %220 : vector<1x32xf32>
    %222 = math.tanh %221 : vector<1x32xf32>
    %223 = arith.mulf %218, %222 : vector<1x32xf32>
    %224 = vector.extract_strided_slice %10 {offsets = [4, 0], sizes = [1, 128], strides = [1, 1]} : vector<8x128xf32> to vector<1x128xf32>
    %225 = vector.extract_strided_slice %195 {offsets = [0, 128], sizes = [1, 128], strides = [1, 1]} : vector<1x256xf32> to vector<1x128xf32>
    %226 = arith.addf %224, %225 : vector<1x128xf32>
    %227 = vector.extract_strided_slice %226 {offsets = [0, 0], sizes = [1, 32], strides = [1, 1]} : vector<1x128xf32> to vector<1x32xf32>
    %228 = arith.negf %227 : vector<1x32xf32>
    %229 = math.exp %228 : vector<1x32xf32>
    %cst_38 = arith.constant 1.000000e+00 : f32
    %230 = vector.broadcast %cst_38 : f32 to vector<1x32xf32>
    %231 = arith.addf %230, %229 : vector<1x32xf32>
    %232 = arith.divf %230, %231 : vector<1x32xf32>
    %233 = vector.extract_strided_slice %226 {offsets = [0, 32], sizes = [1, 32], strides = [1, 1]} : vector<1x128xf32> to vector<1x32xf32>
    %234 = arith.negf %233 : vector<1x32xf32>
    %235 = math.exp %234 : vector<1x32xf32>
    %cst_39 = arith.constant 1.000000e+00 : f32
    %236 = vector.broadcast %cst_39 : f32 to vector<1x32xf32>
    %237 = arith.addf %236, %235 : vector<1x32xf32>
    %238 = arith.divf %236, %237 : vector<1x32xf32>
    %239 = vector.extract_strided_slice %226 {offsets = [0, 64], sizes = [1, 32], strides = [1, 1]} : vector<1x128xf32> to vector<1x32xf32>
    %240 = math.tanh %239 : vector<1x32xf32>
    %241 = vector.extract_strided_slice %226 {offsets = [0, 96], sizes = [1, 32], strides = [1, 1]} : vector<1x128xf32> to vector<1x32xf32>
    %242 = arith.negf %241 : vector<1x32xf32>
    %243 = math.exp %242 : vector<1x32xf32>
    %cst_40 = arith.constant 1.000000e+00 : f32
    %244 = vector.broadcast %cst_40 : f32 to vector<1x32xf32>
    %245 = arith.addf %244, %243 : vector<1x32xf32>
    %246 = arith.divf %244, %245 : vector<1x32xf32>
    %247 = arith.mulf %238, %190 : vector<1x32xf32>
    %248 = arith.mulf %232, %240 : vector<1x32xf32>
    %249 = arith.addf %247, %248 : vector<1x32xf32>
    %250 = math.tanh %249 : vector<1x32xf32>
    %251 = arith.mulf %246, %250 : vector<1x32xf32>
    %252 = tpu.concatenate %223, %251 in 1 : vector<1x32xf32>, vector<1x32xf32> -> vector<1x64xf32>
    %253 = arith.truncf %252 : vector<1x64xf32> to vector<1x64xbf16>
    %cst_41 = arith.constant dense<0.000000e+00> : vector<1x256xf32>
    %254 = tpu.matmul %253, %11, %cst_41 {dimension_numbers = #tpu.dot_dimension_numbers<[1], [0], [0], [1], [0, 0, 1, 1], [], []>} : vector<1x64xbf16>, vector<64x256xbf16>, vector<1x256xf32> -> vector<1x256xf32>
    %255 = vector.extract_strided_slice %9 {offsets = [4, 0], sizes = [1, 128], strides = [1, 1]} : vector<8x128xf32> to vector<1x128xf32>
    %256 = vector.extract_strided_slice %254 {offsets = [0, 0], sizes = [1, 128], strides = [1, 1]} : vector<1x256xf32> to vector<1x128xf32>
    %257 = arith.addf %255, %256 : vector<1x128xf32>
    %258 = vector.extract_strided_slice %257 {offsets = [0, 0], sizes = [1, 32], strides = [1, 1]} : vector<1x128xf32> to vector<1x32xf32>
    %259 = arith.negf %258 : vector<1x32xf32>
    %260 = math.exp %259 : vector<1x32xf32>
    %cst_42 = arith.constant 1.000000e+00 : f32
    %261 = vector.broadcast %cst_42 : f32 to vector<1x32xf32>
    %262 = arith.addf %261, %260 : vector<1x32xf32>
    %263 = arith.divf %261, %262 : vector<1x32xf32>
    %264 = vector.extract_strided_slice %257 {offsets = [0, 32], sizes = [1, 32], strides = [1, 1]} : vector<1x128xf32> to vector<1x32xf32>
    %265 = arith.negf %264 : vector<1x32xf32>
    %266 = math.exp %265 : vector<1x32xf32>
    %cst_43 = arith.constant 1.000000e+00 : f32
    %267 = vector.broadcast %cst_43 : f32 to vector<1x32xf32>
    %268 = arith.addf %267, %266 : vector<1x32xf32>
    %269 = arith.divf %267, %268 : vector<1x32xf32>
    %270 = vector.extract_strided_slice %257 {offsets = [0, 64], sizes = [1, 32], strides = [1, 1]} : vector<1x128xf32> to vector<1x32xf32>
    %271 = math.tanh %270 : vector<1x32xf32>
    %272 = vector.extract_strided_slice %257 {offsets = [0, 96], sizes = [1, 32], strides = [1, 1]} : vector<1x128xf32> to vector<1x32xf32>
    %273 = arith.negf %272 : vector<1x32xf32>
    %274 = math.exp %273 : vector<1x32xf32>
    %cst_44 = arith.constant 1.000000e+00 : f32
    %275 = vector.broadcast %cst_44 : f32 to vector<1x32xf32>
    %276 = arith.addf %275, %274 : vector<1x32xf32>
    %277 = arith.divf %275, %276 : vector<1x32xf32>
    %278 = arith.mulf %269, %221 : vector<1x32xf32>
    %279 = arith.mulf %263, %271 : vector<1x32xf32>
    %280 = arith.addf %278, %279 : vector<1x32xf32>
    %281 = math.tanh %280 : vector<1x32xf32>
    %282 = arith.mulf %277, %281 : vector<1x32xf32>
    %283 = vector.extract_strided_slice %10 {offsets = [3, 0], sizes = [1, 128], strides = [1, 1]} : vector<8x128xf32> to vector<1x128xf32>
    %284 = vector.extract_strided_slice %254 {offsets = [0, 128], sizes = [1, 128], strides = [1, 1]} : vector<1x256xf32> to vector<1x128xf32>
    %285 = arith.addf %283, %284 : vector<1x128xf32>
    %286 = vector.extract_strided_slice %285 {offsets = [0, 0], sizes = [1, 32], strides = [1, 1]} : vector<1x128xf32> to vector<1x32xf32>
    %287 = arith.negf %286 : vector<1x32xf32>
    %288 = math.exp %287 : vector<1x32xf32>
    %cst_45 = arith.constant 1.000000e+00 : f32
    %289 = vector.broadcast %cst_45 : f32 to vector<1x32xf32>
    %290 = arith.addf %289, %288 : vector<1x32xf32>
    %291 = arith.divf %289, %290 : vector<1x32xf32>
    %292 = vector.extract_strided_slice %285 {offsets = [0, 32], sizes = [1, 32], strides = [1, 1]} : vector<1x128xf32> to vector<1x32xf32>
    %293 = arith.negf %292 : vector<1x32xf32>
    %294 = math.exp %293 : vector<1x32xf32>
    %cst_46 = arith.constant 1.000000e+00 : f32
    %295 = vector.broadcast %cst_46 : f32 to vector<1x32xf32>
    %296 = arith.addf %295, %294 : vector<1x32xf32>
    %297 = arith.divf %295, %296 : vector<1x32xf32>
    %298 = vector.extract_strided_slice %285 {offsets = [0, 64], sizes = [1, 32], strides = [1, 1]} : vector<1x128xf32> to vector<1x32xf32>
    %299 = math.tanh %298 : vector<1x32xf32>
    %300 = vector.extract_strided_slice %285 {offsets = [0, 96], sizes = [1, 32], strides = [1, 1]} : vector<1x128xf32> to vector<1x32xf32>
    %301 = arith.negf %300 : vector<1x32xf32>
    %302 = math.exp %301 : vector<1x32xf32>
    %cst_47 = arith.constant 1.000000e+00 : f32
    %303 = vector.broadcast %cst_47 : f32 to vector<1x32xf32>
    %304 = arith.addf %303, %302 : vector<1x32xf32>
    %305 = arith.divf %303, %304 : vector<1x32xf32>
    %306 = arith.mulf %297, %249 : vector<1x32xf32>
    %307 = arith.mulf %291, %299 : vector<1x32xf32>
    %308 = arith.addf %306, %307 : vector<1x32xf32>
    %309 = math.tanh %308 : vector<1x32xf32>
    %310 = arith.mulf %305, %309 : vector<1x32xf32>
    %311 = tpu.concatenate %282, %310 in 1 : vector<1x32xf32>, vector<1x32xf32> -> vector<1x64xf32>
    %312 = arith.truncf %311 : vector<1x64xf32> to vector<1x64xbf16>
    %cst_48 = arith.constant dense<0.000000e+00> : vector<1x256xf32>
    %313 = tpu.matmul %312, %11, %cst_48 {dimension_numbers = #tpu.dot_dimension_numbers<[1], [0], [0], [1], [0, 0, 1, 1], [], []>} : vector<1x64xbf16>, vector<64x256xbf16>, vector<1x256xf32> -> vector<1x256xf32>
    %314 = vector.extract_strided_slice %9 {offsets = [5, 0], sizes = [1, 128], strides = [1, 1]} : vector<8x128xf32> to vector<1x128xf32>
    %315 = vector.extract_strided_slice %313 {offsets = [0, 0], sizes = [1, 128], strides = [1, 1]} : vector<1x256xf32> to vector<1x128xf32>
    %316 = arith.addf %314, %315 : vector<1x128xf32>
    %317 = vector.extract_strided_slice %316 {offsets = [0, 0], sizes = [1, 32], strides = [1, 1]} : vector<1x128xf32> to vector<1x32xf32>
    %318 = arith.negf %317 : vector<1x32xf32>
    %319 = math.exp %318 : vector<1x32xf32>
    %cst_49 = arith.constant 1.000000e+00 : f32
    %320 = vector.broadcast %cst_49 : f32 to vector<1x32xf32>
    %321 = arith.addf %320, %319 : vector<1x32xf32>
    %322 = arith.divf %320, %321 : vector<1x32xf32>
    %323 = vector.extract_strided_slice %316 {offsets = [0, 32], sizes = [1, 32], strides = [1, 1]} : vector<1x128xf32> to vector<1x32xf32>
    %324 = arith.negf %323 : vector<1x32xf32>
    %325 = math.exp %324 : vector<1x32xf32>
    %cst_50 = arith.constant 1.000000e+00 : f32
    %326 = vector.broadcast %cst_50 : f32 to vector<1x32xf32>
    %327 = arith.addf %326, %325 : vector<1x32xf32>
    %328 = arith.divf %326, %327 : vector<1x32xf32>
    %329 = vector.extract_strided_slice %316 {offsets = [0, 64], sizes = [1, 32], strides = [1, 1]} : vector<1x128xf32> to vector<1x32xf32>
    %330 = math.tanh %329 : vector<1x32xf32>
    %331 = vector.extract_strided_slice %316 {offsets = [0, 96], sizes = [1, 32], strides = [1, 1]} : vector<1x128xf32> to vector<1x32xf32>
    %332 = arith.negf %331 : vector<1x32xf32>
    %333 = math.exp %332 : vector<1x32xf32>
    %cst_51 = arith.constant 1.000000e+00 : f32
    %334 = vector.broadcast %cst_51 : f32 to vector<1x32xf32>
    %335 = arith.addf %334, %333 : vector<1x32xf32>
    %336 = arith.divf %334, %335 : vector<1x32xf32>
    %337 = arith.mulf %328, %280 : vector<1x32xf32>
    %338 = arith.mulf %322, %330 : vector<1x32xf32>
    %339 = arith.addf %337, %338 : vector<1x32xf32>
    %340 = math.tanh %339 : vector<1x32xf32>
    %341 = arith.mulf %336, %340 : vector<1x32xf32>
    %342 = vector.extract_strided_slice %10 {offsets = [2, 0], sizes = [1, 128], strides = [1, 1]} : vector<8x128xf32> to vector<1x128xf32>
    %343 = vector.extract_strided_slice %313 {offsets = [0, 128], sizes = [1, 128], strides = [1, 1]} : vector<1x256xf32> to vector<1x128xf32>
    %344 = arith.addf %342, %343 : vector<1x128xf32>
    %345 = vector.extract_strided_slice %344 {offsets = [0, 0], sizes = [1, 32], strides = [1, 1]} : vector<1x128xf32> to vector<1x32xf32>
    %346 = arith.negf %345 : vector<1x32xf32>
    %347 = math.exp %346 : vector<1x32xf32>
    %cst_52 = arith.constant 1.000000e+00 : f32
    %348 = vector.broadcast %cst_52 : f32 to vector<1x32xf32>
    %349 = arith.addf %348, %347 : vector<1x32xf32>
    %350 = arith.divf %348, %349 : vector<1x32xf32>
    %351 = vector.extract_strided_slice %344 {offsets = [0, 32], sizes = [1, 32], strides = [1, 1]} : vector<1x128xf32> to vector<1x32xf32>
    %352 = arith.negf %351 : vector<1x32xf32>
    %353 = math.exp %352 : vector<1x32xf32>
    %cst_53 = arith.constant 1.000000e+00 : f32
    %354 = vector.broadcast %cst_53 : f32 to vector<1x32xf32>
    %355 = arith.addf %354, %353 : vector<1x32xf32>
    %356 = arith.divf %354, %355 : vector<1x32xf32>
    %357 = vector.extract_strided_slice %344 {offsets = [0, 64], sizes = [1, 32], strides = [1, 1]} : vector<1x128xf32> to vector<1x32xf32>
    %358 = math.tanh %357 : vector<1x32xf32>
    %359 = vector.extract_strided_slice %344 {offsets = [0, 96], sizes = [1, 32], strides = [1, 1]} : vector<1x128xf32> to vector<1x32xf32>
    %360 = arith.negf %359 : vector<1x32xf32>
    %361 = math.exp %360 : vector<1x32xf32>
    %cst_54 = arith.constant 1.000000e+00 : f32
    %362 = vector.broadcast %cst_54 : f32 to vector<1x32xf32>
    %363 = arith.addf %362, %361 : vector<1x32xf32>
    %364 = arith.divf %362, %363 : vector<1x32xf32>
    %365 = arith.mulf %356, %308 : vector<1x32xf32>
    %366 = arith.mulf %350, %358 : vector<1x32xf32>
    %367 = arith.addf %365, %366 : vector<1x32xf32>
    %368 = math.tanh %367 : vector<1x32xf32>
    %369 = arith.mulf %364, %368 : vector<1x32xf32>
    %370 = tpu.concatenate %341, %369 in 1 : vector<1x32xf32>, vector<1x32xf32> -> vector<1x64xf32>
    %371 = arith.truncf %370 : vector<1x64xf32> to vector<1x64xbf16>
    %cst_55 = arith.constant dense<0.000000e+00> : vector<1x256xf32>
    %372 = tpu.matmul %371, %11, %cst_55 {dimension_numbers = #tpu.dot_dimension_numbers<[1], [0], [0], [1], [0, 0, 1, 1], [], []>} : vector<1x64xbf16>, vector<64x256xbf16>, vector<1x256xf32> -> vector<1x256xf32>
    %373 = vector.extract_strided_slice %9 {offsets = [6, 0], sizes = [1, 128], strides = [1, 1]} : vector<8x128xf32> to vector<1x128xf32>
    %374 = vector.extract_strided_slice %372 {offsets = [0, 0], sizes = [1, 128], strides = [1, 1]} : vector<1x256xf32> to vector<1x128xf32>
    %375 = arith.addf %373, %374 : vector<1x128xf32>
    %376 = vector.extract_strided_slice %375 {offsets = [0, 0], sizes = [1, 32], strides = [1, 1]} : vector<1x128xf32> to vector<1x32xf32>
    %377 = arith.negf %376 : vector<1x32xf32>
    %378 = math.exp %377 : vector<1x32xf32>
    %cst_56 = arith.constant 1.000000e+00 : f32
    %379 = vector.broadcast %cst_56 : f32 to vector<1x32xf32>
    %380 = arith.addf %379, %378 : vector<1x32xf32>
    %381 = arith.divf %379, %380 : vector<1x32xf32>
    %382 = vector.extract_strided_slice %375 {offsets = [0, 32], sizes = [1, 32], strides = [1, 1]} : vector<1x128xf32> to vector<1x32xf32>
    %383 = arith.negf %382 : vector<1x32xf32>
    %384 = math.exp %383 : vector<1x32xf32>
    %cst_57 = arith.constant 1.000000e+00 : f32
    %385 = vector.broadcast %cst_57 : f32 to vector<1x32xf32>
    %386 = arith.addf %385, %384 : vector<1x32xf32>
    %387 = arith.divf %385, %386 : vector<1x32xf32>
    %388 = vector.extract_strided_slice %375 {offsets = [0, 64], sizes = [1, 32], strides = [1, 1]} : vector<1x128xf32> to vector<1x32xf32>
    %389 = math.tanh %388 : vector<1x32xf32>
    %390 = vector.extract_strided_slice %375 {offsets = [0, 96], sizes = [1, 32], strides = [1, 1]} : vector<1x128xf32> to vector<1x32xf32>
    %391 = arith.negf %390 : vector<1x32xf32>
    %392 = math.exp %391 : vector<1x32xf32>
    %cst_58 = arith.constant 1.000000e+00 : f32
    %393 = vector.broadcast %cst_58 : f32 to vector<1x32xf32>
    %394 = arith.addf %393, %392 : vector<1x32xf32>
    %395 = arith.divf %393, %394 : vector<1x32xf32>
    %396 = arith.mulf %387, %339 : vector<1x32xf32>
    %397 = arith.mulf %381, %389 : vector<1x32xf32>
    %398 = arith.addf %396, %397 : vector<1x32xf32>
    %399 = math.tanh %398 : vector<1x32xf32>
    %400 = arith.mulf %395, %399 : vector<1x32xf32>
    %401 = vector.extract_strided_slice %10 {offsets = [1, 0], sizes = [1, 128], strides = [1, 1]} : vector<8x128xf32> to vector<1x128xf32>
    %402 = vector.extract_strided_slice %372 {offsets = [0, 128], sizes = [1, 128], strides = [1, 1]} : vector<1x256xf32> to vector<1x128xf32>
    %403 = arith.addf %401, %402 : vector<1x128xf32>
    %404 = vector.extract_strided_slice %403 {offsets = [0, 0], sizes = [1, 32], strides = [1, 1]} : vector<1x128xf32> to vector<1x32xf32>
    %405 = arith.negf %404 : vector<1x32xf32>
    %406 = math.exp %405 : vector<1x32xf32>
    %cst_59 = arith.constant 1.000000e+00 : f32
    %407 = vector.broadcast %cst_59 : f32 to vector<1x32xf32>
    %408 = arith.addf %407, %406 : vector<1x32xf32>
    %409 = arith.divf %407, %408 : vector<1x32xf32>
    %410 = vector.extract_strided_slice %403 {offsets = [0, 32], sizes = [1, 32], strides = [1, 1]} : vector<1x128xf32> to vector<1x32xf32>
    %411 = arith.negf %410 : vector<1x32xf32>
    %412 = math.exp %411 : vector<1x32xf32>
    %cst_60 = arith.constant 1.000000e+00 : f32
    %413 = vector.broadcast %cst_60 : f32 to vector<1x32xf32>
    %414 = arith.addf %413, %412 : vector<1x32xf32>
    %415 = arith.divf %413, %414 : vector<1x32xf32>
    %416 = vector.extract_strided_slice %403 {offsets = [0, 64], sizes = [1, 32], strides = [1, 1]} : vector<1x128xf32> to vector<1x32xf32>
    %417 = math.tanh %416 : vector<1x32xf32>
    %418 = vector.extract_strided_slice %403 {offsets = [0, 96], sizes = [1, 32], strides = [1, 1]} : vector<1x128xf32> to vector<1x32xf32>
    %419 = arith.negf %418 : vector<1x32xf32>
    %420 = math.exp %419 : vector<1x32xf32>
    %cst_61 = arith.constant 1.000000e+00 : f32
    %421 = vector.broadcast %cst_61 : f32 to vector<1x32xf32>
    %422 = arith.addf %421, %420 : vector<1x32xf32>
    %423 = arith.divf %421, %422 : vector<1x32xf32>
    %424 = arith.mulf %415, %367 : vector<1x32xf32>
    %425 = arith.mulf %409, %417 : vector<1x32xf32>
    %426 = arith.addf %424, %425 : vector<1x32xf32>
    %427 = math.tanh %426 : vector<1x32xf32>
    %428 = arith.mulf %423, %427 : vector<1x32xf32>
    %429 = tpu.concatenate %400, %428 in 1 : vector<1x32xf32>, vector<1x32xf32> -> vector<1x64xf32>
    %430 = arith.truncf %429 : vector<1x64xf32> to vector<1x64xbf16>
    %cst_62 = arith.constant dense<0.000000e+00> : vector<1x256xf32>
    %431 = tpu.matmul %430, %11, %cst_62 {dimension_numbers = #tpu.dot_dimension_numbers<[1], [0], [0], [1], [0, 0, 1, 1], [], []>} : vector<1x64xbf16>, vector<64x256xbf16>, vector<1x256xf32> -> vector<1x256xf32>
    %432 = vector.extract_strided_slice %9 {offsets = [7, 0], sizes = [1, 128], strides = [1, 1]} : vector<8x128xf32> to vector<1x128xf32>
    %433 = vector.extract_strided_slice %431 {offsets = [0, 0], sizes = [1, 128], strides = [1, 1]} : vector<1x256xf32> to vector<1x128xf32>
    %434 = arith.addf %432, %433 : vector<1x128xf32>
    %435 = vector.extract_strided_slice %434 {offsets = [0, 0], sizes = [1, 32], strides = [1, 1]} : vector<1x128xf32> to vector<1x32xf32>
    %436 = arith.negf %435 : vector<1x32xf32>
    %437 = math.exp %436 : vector<1x32xf32>
    %cst_63 = arith.constant 1.000000e+00 : f32
    %438 = vector.broadcast %cst_63 : f32 to vector<1x32xf32>
    %439 = arith.addf %438, %437 : vector<1x32xf32>
    %440 = arith.divf %438, %439 : vector<1x32xf32>
    %441 = vector.extract_strided_slice %434 {offsets = [0, 32], sizes = [1, 32], strides = [1, 1]} : vector<1x128xf32> to vector<1x32xf32>
    %442 = arith.negf %441 : vector<1x32xf32>
    %443 = math.exp %442 : vector<1x32xf32>
    %cst_64 = arith.constant 1.000000e+00 : f32
    %444 = vector.broadcast %cst_64 : f32 to vector<1x32xf32>
    %445 = arith.addf %444, %443 : vector<1x32xf32>
    %446 = arith.divf %444, %445 : vector<1x32xf32>
    %447 = vector.extract_strided_slice %434 {offsets = [0, 64], sizes = [1, 32], strides = [1, 1]} : vector<1x128xf32> to vector<1x32xf32>
    %448 = math.tanh %447 : vector<1x32xf32>
    %449 = vector.extract_strided_slice %434 {offsets = [0, 96], sizes = [1, 32], strides = [1, 1]} : vector<1x128xf32> to vector<1x32xf32>
    %450 = arith.negf %449 : vector<1x32xf32>
    %451 = math.exp %450 : vector<1x32xf32>
    %cst_65 = arith.constant 1.000000e+00 : f32
    %452 = vector.broadcast %cst_65 : f32 to vector<1x32xf32>
    %453 = arith.addf %452, %451 : vector<1x32xf32>
    %454 = arith.divf %452, %453 : vector<1x32xf32>
    %455 = arith.mulf %446, %398 : vector<1x32xf32>
    %456 = arith.mulf %440, %448 : vector<1x32xf32>
    %457 = arith.addf %455, %456 : vector<1x32xf32>
    %458 = math.tanh %457 : vector<1x32xf32>
    %459 = arith.mulf %454, %458 : vector<1x32xf32>
    %460 = vector.extract_strided_slice %10 {offsets = [0, 0], sizes = [1, 128], strides = [1, 1]} : vector<8x128xf32> to vector<1x128xf32>
    %461 = vector.extract_strided_slice %431 {offsets = [0, 128], sizes = [1, 128], strides = [1, 1]} : vector<1x256xf32> to vector<1x128xf32>
    %462 = arith.addf %460, %461 : vector<1x128xf32>
    %463 = vector.extract_strided_slice %462 {offsets = [0, 0], sizes = [1, 32], strides = [1, 1]} : vector<1x128xf32> to vector<1x32xf32>
    %464 = arith.negf %463 : vector<1x32xf32>
    %465 = math.exp %464 : vector<1x32xf32>
    %cst_66 = arith.constant 1.000000e+00 : f32
    %466 = vector.broadcast %cst_66 : f32 to vector<1x32xf32>
    %467 = arith.addf %466, %465 : vector<1x32xf32>
    %468 = arith.divf %466, %467 : vector<1x32xf32>
    %469 = vector.extract_strided_slice %462 {offsets = [0, 32], sizes = [1, 32], strides = [1, 1]} : vector<1x128xf32> to vector<1x32xf32>
    %470 = arith.negf %469 : vector<1x32xf32>
    %471 = math.exp %470 : vector<1x32xf32>
    %cst_67 = arith.constant 1.000000e+00 : f32
    %472 = vector.broadcast %cst_67 : f32 to vector<1x32xf32>
    %473 = arith.addf %472, %471 : vector<1x32xf32>
    %474 = arith.divf %472, %473 : vector<1x32xf32>
    %475 = vector.extract_strided_slice %462 {offsets = [0, 64], sizes = [1, 32], strides = [1, 1]} : vector<1x128xf32> to vector<1x32xf32>
    %476 = math.tanh %475 : vector<1x32xf32>
    %477 = vector.extract_strided_slice %462 {offsets = [0, 96], sizes = [1, 32], strides = [1, 1]} : vector<1x128xf32> to vector<1x32xf32>
    %478 = arith.negf %477 : vector<1x32xf32>
    %479 = math.exp %478 : vector<1x32xf32>
    %cst_68 = arith.constant 1.000000e+00 : f32
    %480 = vector.broadcast %cst_68 : f32 to vector<1x32xf32>
    %481 = arith.addf %480, %479 : vector<1x32xf32>
    %482 = arith.divf %480, %481 : vector<1x32xf32>
    %483 = arith.mulf %474, %426 : vector<1x32xf32>
    %484 = arith.mulf %468, %476 : vector<1x32xf32>
    %485 = arith.addf %483, %484 : vector<1x32xf32>
    %486 = math.tanh %485 : vector<1x32xf32>
    %487 = arith.mulf %482, %486 : vector<1x32xf32>
    %488 = tpu.concatenate %46, %105, %164, %223, %282, %341, %400, %459 in 0 : vector<1x32xf32>, vector<1x32xf32>, vector<1x32xf32>, vector<1x32xf32>, vector<1x32xf32>, vector<1x32xf32>, vector<1x32xf32>, vector<1x32xf32> -> vector<8x32xf32>
    %489 = arith.addf %0, %488 : vector<8x32xf32>
    %490 = tpu.concatenate %487, %428, %369, %310, %251, %192, %133, %74 in 0 : vector<1x32xf32>, vector<1x32xf32>, vector<1x32xf32>, vector<1x32xf32>, vector<1x32xf32>, vector<1x32xf32>, vector<1x32xf32>, vector<1x32xf32> -> vector<8x32xf32>
    %491 = arith.addf %489, %490 : vector<8x32xf32>
    %c0_69 = arith.constant 0 : index
    %c0_70 = arith.constant 0 : index
    %492 = vector.load %arg8[%c0_69, %c0_70] : memref<8x32xf32, #tpu.memory_space<vmem>>, vector<8x32xf32>
    tpu.vector_store %arg8[%c0_69, %c0_70], %491 {strides = array<i32>} : memref<8x32xf32, #tpu.memory_space<vmem>>, vector<8x32xf32>,
    %493 = arith.truncf %491 : vector<8x32xf32> to vector<8x32xbf16>
    %494 = tpu.transpose %491, [1, 0] : vector<8x32xf32> -> vector<32x8xf32>
    %495 = arith.truncf %494 : vector<32x8xf32> to vector<32x8xbf16>
    %c0_71 = arith.constant 0 : index
    %c0_72 = arith.constant 0 : index
    %496 = vector.load %arg6[%c0_71, %c0_72] : memref<64x128xbf16, #tpu.memory_space<vmem>>, vector<64x128xbf16>
    %c0_73 = arith.constant 0 : index
    %c0_74 = arith.constant 0 : index
    %497 = vector.load %arg5[%c0_73, %c0_74] : memref<32x128xbf16, #tpu.memory_space<vmem>>, vector<32x128xbf16>
    %cst_75 = arith.constant dense<0.000000e+00> : vector<4x128xf32>
    %498 = tpu.matmul %3, %497, %cst_75 {dimension_numbers = #tpu.dot_dimension_numbers<[1], [0], [0], [1], [0, 0, 1, 1], [], []>} : vector<4x32xbf16>, vector<32x128xbf16>, vector<4x128xf32> -> vector<4x128xf32>
    %c0_76 = arith.constant 0 : index
    %c0_77 = arith.constant 0 : index
    %499 = vector.load %arg7[%c0_76, %c0_77] : memref<1x128xf32, #tpu.memory_space<vmem>>, vector<1x128xf32>
    %500 = vector.broadcast %499 : vector<1x128xf32> to vector<4x128xf32>
    %501 = arith.addf %498, %500 : vector<4x128xf32>
    %cst_78 = arith.constant 0.000000e+00 : f32
    %502 = vector.broadcast %cst_78 : f32 to vector<4x32xf32>
    %503 = arith.truncf %1 : vector<4x32xf32> to vector<4x32xbf16>
    %cst_79 = arith.constant dense<0.000000e+00> : vector<4x8xf32>
    %504 = tpu.matmul %503, %495, %cst_79 {dimension_numbers = #tpu.dot_dimension_numbers<[1], [0], [0], [1], [0, 0, 1, 1], [], []>} : vector<4x32xbf16>, vector<32x8xbf16>, vector<4x8xf32> -> vector<4x8xf32>
    %cst_80 = arith.constant dense<0xFF800000> : vector<4xf32>
    %505 = vector.multi_reduction <maximumf>, %504, %cst_80 [1] : vector<4x8xf32> to vector<4xf32>
    %506 = vector.shape_cast %505 : vector<4xf32> to vector<4x1xf32>
    %507 = vector.broadcast %506 : vector<4x1xf32> to vector<4x8xf32>
    %508 = arith.subf %504, %507 : vector<4x8xf32>
    %509 = math.exp %508 : vector<4x8xf32>
    %cst_81 = arith.constant dense<0.000000e+00> : vector<4xf32>
    %510 = vector.multi_reduction <add>, %509, %cst_81 [1] : vector<4x8xf32> to vector<4xf32>
    %511 = vector.shape_cast %510 : vector<4xf32> to vector<4x1xf32>
    %512 = tpu.reciprocal %511 {approx = true} : vector<4x1xf32> -> vector<4x1xf32>
    %513 = vector.broadcast %512 : vector<4x1xf32> to vector<4x8xf32>
    %514 = arith.mulf %509, %513 : vector<4x8xf32>
    %515 = arith.truncf %514 : vector<4x8xf32> to vector<4x8xbf16>
    %cst_82 = arith.constant dense<0.000000e+00> : vector<4x32xf32>
    %516 = tpu.matmul %515, %493, %cst_82 {dimension_numbers = #tpu.dot_dimension_numbers<[1], [0], [0], [1], [0, 0, 1, 1], [], []>} : vector<4x8xbf16>, vector<8x32xbf16>, vector<4x32xf32> -> vector<4x32xf32>
    %517 = tpu.concatenate %516, %1 in 1 : vector<4x32xf32>, vector<4x32xf32> -> vector<4x64xf32>
    %518 = arith.truncf %517 : vector<4x64xf32> to vector<4x64xbf16>
    %cst_83 = arith.constant dense<0.000000e+00> : vector<4x128xf32>
    %519 = tpu.matmul %518, %496, %cst_83 {dimension_numbers = #tpu.dot_dimension_numbers<[1], [0], [0], [1], [0, 0, 1, 1], [], []>} : vector<4x64xbf16>, vector<64x128xbf16>, vector<4x128xf32> -> vector<4x128xf32>
    %520 = arith.addf %501, %519 : vector<4x128xf32>
    %521 = vector.extract_strided_slice %520 {offsets = [0, 0], sizes = [4, 32], strides = [1, 1]} : vector<4x128xf32> to vector<4x32xf32>
    %522 = arith.negf %521 : vector<4x32xf32>
    %523 = math.exp %522 : vector<4x32xf32>
    %cst_84 = arith.constant 1.000000e+00 : f32
    %524 = vector.broadcast %cst_84 : f32 to vector<4x32xf32>
    %525 = arith.addf %524, %523 : vector<4x32xf32>
    %526 = arith.divf %524, %525 : vector<4x32xf32>
    %527 = vector.extract_strided_slice %520 {offsets = [0, 32], sizes = [4, 32], strides = [1, 1]} : vector<4x128xf32> to vector<4x32xf32>
    %528 = arith.negf %527 : vector<4x32xf32>
    %529 = math.exp %528 : vector<4x32xf32>
    %cst_85 = arith.constant 1.000000e+00 : f32
    %530 = vector.broadcast %cst_85 : f32 to vector<4x32xf32>
    %531 = arith.addf %530, %529 : vector<4x32xf32>
    %532 = arith.divf %530, %531 : vector<4x32xf32>
    %533 = vector.extract_strided_slice %520 {offsets = [0, 64], sizes = [4, 32], strides = [1, 1]} : vector<4x128xf32> to vector<4x32xf32>
    %534 = math.tanh %533 : vector<4x32xf32>
    %535 = vector.extract_strided_slice %520 {offsets = [0, 96], sizes = [4, 32], strides = [1, 1]} : vector<4x128xf32> to vector<4x32xf32>
    %536 = arith.negf %535 : vector<4x32xf32>
    %537 = math.exp %536 : vector<4x32xf32>
    %cst_86 = arith.constant 1.000000e+00 : f32
    %538 = vector.broadcast %cst_86 : f32 to vector<4x32xf32>
    %539 = arith.addf %538, %537 : vector<4x32xf32>
    %540 = arith.divf %538, %539 : vector<4x32xf32>
    %541 = arith.mulf %532, %502 : vector<4x32xf32>
    %542 = arith.mulf %526, %534 : vector<4x32xf32>
    %543 = arith.addf %541, %542 : vector<4x32xf32>
    %544 = math.tanh %543 : vector<4x32xf32>
    %545 = arith.mulf %540, %544 : vector<4x32xf32>
    %546 = arith.addf %545, %1 : vector<4x32xf32>
    %547 = arith.truncf %546 : vector<4x32xf32> to vector<4x32xbf16>
    %cst_87 = arith.constant dense<0.000000e+00> : vector<4x8xf32>
    %548 = tpu.matmul %547, %495, %cst_87 {dimension_numbers = #tpu.dot_dimension_numbers<[1], [0], [0], [1], [0, 0, 1, 1], [], []>} : vector<4x32xbf16>, vector<32x8xbf16>, vector<4x8xf32> -> vector<4x8xf32>
    %cst_88 = arith.constant dense<0xFF800000> : vector<4xf32>
    %549 = vector.multi_reduction <maximumf>, %548, %cst_88 [1] : vector<4x8xf32> to vector<4xf32>
    %550 = vector.shape_cast %549 : vector<4xf32> to vector<4x1xf32>
    %551 = vector.broadcast %550 : vector<4x1xf32> to vector<4x8xf32>
    %552 = arith.subf %548, %551 : vector<4x8xf32>
    %553 = math.exp %552 : vector<4x8xf32>
    %cst_89 = arith.constant dense<0.000000e+00> : vector<4xf32>
    %554 = vector.multi_reduction <add>, %553, %cst_89 [1] : vector<4x8xf32> to vector<4xf32>
    %555 = vector.shape_cast %554 : vector<4xf32> to vector<4x1xf32>
    %556 = tpu.reciprocal %555 {approx = true} : vector<4x1xf32> -> vector<4x1xf32>
    %557 = vector.broadcast %556 : vector<4x1xf32> to vector<4x8xf32>
    %558 = arith.mulf %553, %557 : vector<4x8xf32>
    %559 = arith.truncf %558 : vector<4x8xf32> to vector<4x8xbf16>
    %cst_90 = arith.constant dense<0.000000e+00> : vector<4x32xf32>
    %560 = tpu.matmul %559, %493, %cst_90 {dimension_numbers = #tpu.dot_dimension_numbers<[1], [0], [0], [1], [0, 0, 1, 1], [], []>} : vector<4x8xbf16>, vector<8x32xbf16>, vector<4x32xf32> -> vector<4x32xf32>
    %561 = tpu.concatenate %560, %546 in 1 : vector<4x32xf32>, vector<4x32xf32> -> vector<4x64xf32>
    %562 = arith.truncf %561 : vector<4x64xf32> to vector<4x64xbf16>
    %cst_91 = arith.constant dense<0.000000e+00> : vector<4x128xf32>
    %563 = tpu.matmul %562, %496, %cst_91 {dimension_numbers = #tpu.dot_dimension_numbers<[1], [0], [0], [1], [0, 0, 1, 1], [], []>} : vector<4x64xbf16>, vector<64x128xbf16>, vector<4x128xf32> -> vector<4x128xf32>
    %564 = arith.addf %501, %563 : vector<4x128xf32>
    %565 = vector.extract_strided_slice %564 {offsets = [0, 0], sizes = [4, 32], strides = [1, 1]} : vector<4x128xf32> to vector<4x32xf32>
    %566 = arith.negf %565 : vector<4x32xf32>
    %567 = math.exp %566 : vector<4x32xf32>
    %cst_92 = arith.constant 1.000000e+00 : f32
    %568 = vector.broadcast %cst_92 : f32 to vector<4x32xf32>
    %569 = arith.addf %568, %567 : vector<4x32xf32>
    %570 = arith.divf %568, %569 : vector<4x32xf32>
    %571 = vector.extract_strided_slice %564 {offsets = [0, 32], sizes = [4, 32], strides = [1, 1]} : vector<4x128xf32> to vector<4x32xf32>
    %572 = arith.negf %571 : vector<4x32xf32>
    %573 = math.exp %572 : vector<4x32xf32>
    %cst_93 = arith.constant 1.000000e+00 : f32
    %574 = vector.broadcast %cst_93 : f32 to vector<4x32xf32>
    %575 = arith.addf %574, %573 : vector<4x32xf32>
    %576 = arith.divf %574, %575 : vector<4x32xf32>
    %577 = vector.extract_strided_slice %564 {offsets = [0, 64], sizes = [4, 32], strides = [1, 1]} : vector<4x128xf32> to vector<4x32xf32>
    %578 = math.tanh %577 : vector<4x32xf32>
    %579 = vector.extract_strided_slice %564 {offsets = [0, 96], sizes = [4, 32], strides = [1, 1]} : vector<4x128xf32> to vector<4x32xf32>
    %580 = arith.negf %579 : vector<4x32xf32>
    %581 = math.exp %580 : vector<4x32xf32>
    %cst_94 = arith.constant 1.000000e+00 : f32
    %582 = vector.broadcast %cst_94 : f32 to vector<4x32xf32>
    %583 = arith.addf %582, %581 : vector<4x32xf32>
    %584 = arith.divf %582, %583 : vector<4x32xf32>
    %585 = arith.mulf %576, %543 : vector<4x32xf32>
    %586 = arith.mulf %570, %578 : vector<4x32xf32>
    %587 = arith.addf %585, %586 : vector<4x32xf32>
    %588 = math.tanh %587 : vector<4x32xf32>
    %589 = arith.mulf %584, %588 : vector<4x32xf32>
    %590 = arith.addf %589, %1 : vector<4x32xf32>
    %591 = arith.truncf %590 : vector<4x32xf32> to vector<4x32xbf16>
    %cst_95 = arith.constant dense<0.000000e+00> : vector<4x8xf32>
    %592 = tpu.matmul %591, %495, %cst_95 {dimension_numbers = #tpu.dot_dimension_numbers<[1], [0], [0], [1], [0, 0, 1, 1], [], []>} : vector<4x32xbf16>, vector<32x8xbf16>, vector<4x8xf32> -> vector<4x8xf32>
    %cst_96 = arith.constant dense<0xFF800000> : vector<4xf32>
    %593 = vector.multi_reduction <maximumf>, %592, %cst_96 [1] : vector<4x8xf32> to vector<4xf32>
    %594 = vector.shape_cast %593 : vector<4xf32> to vector<4x1xf32>
    %595 = vector.broadcast %594 : vector<4x1xf32> to vector<4x8xf32>
    %596 = arith.subf %592, %595 : vector<4x8xf32>
    %597 = math.exp %596 : vector<4x8xf32>
    %cst_97 = arith.constant dense<0.000000e+00> : vector<4xf32>
    %598 = vector.multi_reduction <add>, %597, %cst_97 [1] : vector<4x8xf32> to vector<4xf32>
    %599 = vector.shape_cast %598 : vector<4xf32> to vector<4x1xf32>
    %600 = tpu.reciprocal %599 {approx = true} : vector<4x1xf32> -> vector<4x1xf32>
    %601 = vector.broadcast %600 : vector<4x1xf32> to vector<4x8xf32>
    %602 = arith.mulf %597, %601 : vector<4x8xf32>
    %603 = arith.truncf %602 : vector<4x8xf32> to vector<4x8xbf16>
    %cst_98 = arith.constant dense<0.000000e+00> : vector<4x32xf32>
    %604 = tpu.matmul %603, %493, %cst_98 {dimension_numbers = #tpu.dot_dimension_numbers<[1], [0], [0], [1], [0, 0, 1, 1], [], []>} : vector<4x8xbf16>, vector<8x32xbf16>, vector<4x32xf32> -> vector<4x32xf32>
    %605 = tpu.concatenate %604, %590 in 1 : vector<4x32xf32>, vector<4x32xf32> -> vector<4x64xf32>
    %606 = arith.truncf %605 : vector<4x64xf32> to vector<4x64xbf16>
    %cst_99 = arith.constant dense<0.000000e+00> : vector<4x128xf32>
    %607 = tpu.matmul %606, %496, %cst_99 {dimension_numbers = #tpu.dot_dimension_numbers<[1], [0], [0], [1], [0, 0, 1, 1], [], []>} : vector<4x64xbf16>, vector<64x128xbf16>, vector<4x128xf32> -> vector<4x128xf32>
    %608 = arith.addf %501, %607 : vector<4x128xf32>
    %609 = vector.extract_strided_slice %608 {offsets = [0, 0], sizes = [4, 32], strides = [1, 1]} : vector<4x128xf32> to vector<4x32xf32>
    %610 = arith.negf %609 : vector<4x32xf32>
    %611 = math.exp %610 : vector<4x32xf32>
    %cst_100 = arith.constant 1.000000e+00 : f32
    %612 = vector.broadcast %cst_100 : f32 to vector<4x32xf32>
    %613 = arith.addf %612, %611 : vector<4x32xf32>
    %614 = arith.divf %612, %613 : vector<4x32xf32>
    %615 = vector.extract_strided_slice %608 {offsets = [0, 32], sizes = [4, 32], strides = [1, 1]} : vector<4x128xf32> to vector<4x32xf32>
    %616 = arith.negf %615 : vector<4x32xf32>
    %617 = math.exp %616 : vector<4x32xf32>
    %cst_101 = arith.constant 1.000000e+00 : f32
    %618 = vector.broadcast %cst_101 : f32 to vector<4x32xf32>
    %619 = arith.addf %618, %617 : vector<4x32xf32>
    %620 = arith.divf %618, %619 : vector<4x32xf32>
    %621 = vector.extract_strided_slice %608 {offsets = [0, 64], sizes = [4, 32], strides = [1, 1]} : vector<4x128xf32> to vector<4x32xf32>
    %622 = math.tanh %621 : vector<4x32xf32>
    %623 = vector.extract_strided_slice %608 {offsets = [0, 96], sizes = [4, 32], strides = [1, 1]} : vector<4x128xf32> to vector<4x32xf32>
    %624 = arith.negf %623 : vector<4x32xf32>
    %625 = math.exp %624 : vector<4x32xf32>
    %cst_102 = arith.constant 1.000000e+00 : f32
    %626 = vector.broadcast %cst_102 : f32 to vector<4x32xf32>
    %627 = arith.addf %626, %625 : vector<4x32xf32>
    %628 = arith.divf %626, %627 : vector<4x32xf32>
    %629 = arith.mulf %620, %587 : vector<4x32xf32>
    %630 = arith.mulf %614, %622 : vector<4x32xf32>
    %631 = arith.addf %629, %630 : vector<4x32xf32>
    %632 = math.tanh %631 : vector<4x32xf32>
    %633 = arith.mulf %628, %632 : vector<4x32xf32>
    %634 = arith.addf %633, %1 : vector<4x32xf32>
    %635 = arith.truncf %634 : vector<4x32xf32> to vector<4x32xbf16>
    %cst_103 = arith.constant dense<0.000000e+00> : vector<4x8xf32>
    %636 = tpu.matmul %635, %495, %cst_103 {dimension_numbers = #tpu.dot_dimension_numbers<[1], [0], [0], [1], [0, 0, 1, 1], [], []>} : vector<4x32xbf16>, vector<32x8xbf16>, vector<4x8xf32> -> vector<4x8xf32>
    %cst_104 = arith.constant dense<0xFF800000> : vector<4xf32>
    %637 = vector.multi_reduction <maximumf>, %636, %cst_104 [1] : vector<4x8xf32> to vector<4xf32>
    %638 = vector.shape_cast %637 : vector<4xf32> to vector<4x1xf32>
    %639 = vector.broadcast %638 : vector<4x1xf32> to vector<4x8xf32>
    %640 = arith.subf %636, %639 : vector<4x8xf32>
    %641 = math.exp %640 : vector<4x8xf32>
    %cst_105 = arith.constant dense<0.000000e+00> : vector<4xf32>
    %642 = vector.multi_reduction <add>, %641, %cst_105 [1] : vector<4x8xf32> to vector<4xf32>
    %643 = vector.shape_cast %642 : vector<4xf32> to vector<4x1xf32>
    %644 = tpu.reciprocal %643 {approx = true} : vector<4x1xf32> -> vector<4x1xf32>
    %645 = vector.broadcast %644 : vector<4x1xf32> to vector<4x8xf32>
    %646 = arith.mulf %641, %645 : vector<4x8xf32>
    %647 = arith.truncf %646 : vector<4x8xf32> to vector<4x8xbf16>
    %cst_106 = arith.constant dense<0.000000e+00> : vector<4x32xf32>
    %648 = tpu.matmul %647, %493, %cst_106 {dimension_numbers = #tpu.dot_dimension_numbers<[1], [0], [0], [1], [0, 0, 1, 1], [], []>} : vector<4x8xbf16>, vector<8x32xbf16>, vector<4x32xf32> -> vector<4x32xf32>
    %649 = tpu.concatenate %648, %634 in 1 : vector<4x32xf32>, vector<4x32xf32> -> vector<4x64xf32>
    %650 = arith.truncf %649 : vector<4x64xf32> to vector<4x64xbf16>
    %cst_107 = arith.constant dense<0.000000e+00> : vector<4x128xf32>
    %651 = tpu.matmul %650, %496, %cst_107 {dimension_numbers = #tpu.dot_dimension_numbers<[1], [0], [0], [1], [0, 0, 1, 1], [], []>} : vector<4x64xbf16>, vector<64x128xbf16>, vector<4x128xf32> -> vector<4x128xf32>
    %652 = arith.addf %501, %651 : vector<4x128xf32>
    %653 = vector.extract_strided_slice %652 {offsets = [0, 0], sizes = [4, 32], strides = [1, 1]} : vector<4x128xf32> to vector<4x32xf32>
    %654 = arith.negf %653 : vector<4x32xf32>
    %655 = math.exp %654 : vector<4x32xf32>
    %cst_108 = arith.constant 1.000000e+00 : f32
    %656 = vector.broadcast %cst_108 : f32 to vector<4x32xf32>
    %657 = arith.addf %656, %655 : vector<4x32xf32>
    %658 = arith.divf %656, %657 : vector<4x32xf32>
    %659 = vector.extract_strided_slice %652 {offsets = [0, 32], sizes = [4, 32], strides = [1, 1]} : vector<4x128xf32> to vector<4x32xf32>
    %660 = arith.negf %659 : vector<4x32xf32>
    %661 = math.exp %660 : vector<4x32xf32>
    %cst_109 = arith.constant 1.000000e+00 : f32
    %662 = vector.broadcast %cst_109 : f32 to vector<4x32xf32>
    %663 = arith.addf %662, %661 : vector<4x32xf32>
    %664 = arith.divf %662, %663 : vector<4x32xf32>
    %665 = vector.extract_strided_slice %652 {offsets = [0, 64], sizes = [4, 32], strides = [1, 1]} : vector<4x128xf32> to vector<4x32xf32>
    %666 = math.tanh %665 : vector<4x32xf32>
    %667 = vector.extract_strided_slice %652 {offsets = [0, 96], sizes = [4, 32], strides = [1, 1]} : vector<4x128xf32> to vector<4x32xf32>
    %668 = arith.negf %667 : vector<4x32xf32>
    %669 = math.exp %668 : vector<4x32xf32>
    %cst_110 = arith.constant 1.000000e+00 : f32
    %670 = vector.broadcast %cst_110 : f32 to vector<4x32xf32>
    %671 = arith.addf %670, %669 : vector<4x32xf32>
    %672 = arith.divf %670, %671 : vector<4x32xf32>
    %673 = arith.mulf %664, %631 : vector<4x32xf32>
    %674 = arith.mulf %658, %666 : vector<4x32xf32>
    %675 = arith.addf %673, %674 : vector<4x32xf32>
    %676 = math.tanh %675 : vector<4x32xf32>
    %677 = arith.mulf %672, %676 : vector<4x32xf32>
    %678 = arith.addf %677, %1 : vector<4x32xf32>
    %679 = arith.truncf %678 : vector<4x32xf32> to vector<4x32xbf16>
    %cst_111 = arith.constant dense<0.000000e+00> : vector<4x8xf32>
    %680 = tpu.matmul %679, %495, %cst_111 {dimension_numbers = #tpu.dot_dimension_numbers<[1], [0], [0], [1], [0, 0, 1, 1], [], []>} : vector<4x32xbf16>, vector<32x8xbf16>, vector<4x8xf32> -> vector<4x8xf32>
    %cst_112 = arith.constant dense<0xFF800000> : vector<4xf32>
    %681 = vector.multi_reduction <maximumf>, %680, %cst_112 [1] : vector<4x8xf32> to vector<4xf32>
    %682 = vector.shape_cast %681 : vector<4xf32> to vector<4x1xf32>
    %683 = vector.broadcast %682 : vector<4x1xf32> to vector<4x8xf32>
    %684 = arith.subf %680, %683 : vector<4x8xf32>
    %685 = math.exp %684 : vector<4x8xf32>
    %cst_113 = arith.constant dense<0.000000e+00> : vector<4xf32>
    %686 = vector.multi_reduction <add>, %685, %cst_113 [1] : vector<4x8xf32> to vector<4xf32>
    %687 = vector.shape_cast %686 : vector<4xf32> to vector<4x1xf32>
    %688 = tpu.reciprocal %687 {approx = true} : vector<4x1xf32> -> vector<4x1xf32>
    %689 = vector.broadcast %688 : vector<4x1xf32> to vector<4x8xf32>
    %690 = arith.mulf %685, %689 : vector<4x8xf32>
    %691 = arith.truncf %690 : vector<4x8xf32> to vector<4x8xbf16>
    %cst_114 = arith.constant dense<0.000000e+00> : vector<4x32xf32>
    %692 = tpu.matmul %691, %493, %cst_114 {dimension_numbers = #tpu.dot_dimension_numbers<[1], [0], [0], [1], [0, 0, 1, 1], [], []>} : vector<4x8xbf16>, vector<8x32xbf16>, vector<4x32xf32> -> vector<4x32xf32>
    %693 = tpu.concatenate %692, %678 in 1 : vector<4x32xf32>, vector<4x32xf32> -> vector<4x64xf32>
    %694 = arith.truncf %693 : vector<4x64xf32> to vector<4x64xbf16>
    %cst_115 = arith.constant dense<0.000000e+00> : vector<4x128xf32>
    %695 = tpu.matmul %694, %496, %cst_115 {dimension_numbers = #tpu.dot_dimension_numbers<[1], [0], [0], [1], [0, 0, 1, 1], [], []>} : vector<4x64xbf16>, vector<64x128xbf16>, vector<4x128xf32> -> vector<4x128xf32>
    %696 = arith.addf %501, %695 : vector<4x128xf32>
    %697 = vector.extract_strided_slice %696 {offsets = [0, 0], sizes = [4, 32], strides = [1, 1]} : vector<4x128xf32> to vector<4x32xf32>
    %698 = arith.negf %697 : vector<4x32xf32>
    %699 = math.exp %698 : vector<4x32xf32>
    %cst_116 = arith.constant 1.000000e+00 : f32
    %700 = vector.broadcast %cst_116 : f32 to vector<4x32xf32>
    %701 = arith.addf %700, %699 : vector<4x32xf32>
    %702 = arith.divf %700, %701 : vector<4x32xf32>
    %703 = vector.extract_strided_slice %696 {offsets = [0, 32], sizes = [4, 32], strides = [1, 1]} : vector<4x128xf32> to vector<4x32xf32>
    %704 = arith.negf %703 : vector<4x32xf32>
    %705 = math.exp %704 : vector<4x32xf32>
    %cst_117 = arith.constant 1.000000e+00 : f32
    %706 = vector.broadcast %cst_117 : f32 to vector<4x32xf32>
    %707 = arith.addf %706, %705 : vector<4x32xf32>
    %708 = arith.divf %706, %707 : vector<4x32xf32>
    %709 = vector.extract_strided_slice %696 {offsets = [0, 64], sizes = [4, 32], strides = [1, 1]} : vector<4x128xf32> to vector<4x32xf32>
    %710 = math.tanh %709 : vector<4x32xf32>
    %711 = vector.extract_strided_slice %696 {offsets = [0, 96], sizes = [4, 32], strides = [1, 1]} : vector<4x128xf32> to vector<4x32xf32>
    %712 = arith.negf %711 : vector<4x32xf32>
    %713 = math.exp %712 : vector<4x32xf32>
    %cst_118 = arith.constant 1.000000e+00 : f32
    %714 = vector.broadcast %cst_118 : f32 to vector<4x32xf32>
    %715 = arith.addf %714, %713 : vector<4x32xf32>
    %716 = arith.divf %714, %715 : vector<4x32xf32>
    %717 = arith.mulf %708, %675 : vector<4x32xf32>
    %718 = arith.mulf %702, %710 : vector<4x32xf32>
    %719 = arith.addf %717, %718 : vector<4x32xf32>
    %720 = math.tanh %719 : vector<4x32xf32>
    %721 = arith.mulf %716, %720 : vector<4x32xf32>
    %722 = arith.addf %721, %1 : vector<4x32xf32>
    %723 = arith.truncf %722 : vector<4x32xf32> to vector<4x32xbf16>
    %cst_119 = arith.constant dense<0.000000e+00> : vector<4x8xf32>
    %724 = tpu.matmul %723, %495, %cst_119 {dimension_numbers = #tpu.dot_dimension_numbers<[1], [0], [0], [1], [0, 0, 1, 1], [], []>} : vector<4x32xbf16>, vector<32x8xbf16>, vector<4x8xf32> -> vector<4x8xf32>
    %cst_120 = arith.constant dense<0xFF800000> : vector<4xf32>
    %725 = vector.multi_reduction <maximumf>, %724, %cst_120 [1] : vector<4x8xf32> to vector<4xf32>
    %726 = vector.shape_cast %725 : vector<4xf32> to vector<4x1xf32>
    %727 = vector.broadcast %726 : vector<4x1xf32> to vector<4x8xf32>
    %728 = arith.subf %724, %727 : vector<4x8xf32>
    %729 = math.exp %728 : vector<4x8xf32>
    %cst_121 = arith.constant dense<0.000000e+00> : vector<4xf32>
    %730 = vector.multi_reduction <add>, %729, %cst_121 [1] : vector<4x8xf32> to vector<4xf32>
    %731 = vector.shape_cast %730 : vector<4xf32> to vector<4x1xf32>
    %732 = tpu.reciprocal %731 {approx = true} : vector<4x1xf32> -> vector<4x1xf32>
    %733 = vector.broadcast %732 : vector<4x1xf32> to vector<4x8xf32>
    %734 = arith.mulf %729, %733 : vector<4x8xf32>
    %735 = arith.truncf %734 : vector<4x8xf32> to vector<4x8xbf16>
    %cst_122 = arith.constant dense<0.000000e+00> : vector<4x32xf32>
    %736 = tpu.matmul %735, %493, %cst_122 {dimension_numbers = #tpu.dot_dimension_numbers<[1], [0], [0], [1], [0, 0, 1, 1], [], []>} : vector<4x8xbf16>, vector<8x32xbf16>, vector<4x32xf32> -> vector<4x32xf32>
    %737 = tpu.concatenate %736, %722 in 1 : vector<4x32xf32>, vector<4x32xf32> -> vector<4x64xf32>
    %738 = arith.truncf %737 : vector<4x64xf32> to vector<4x64xbf16>
    %cst_123 = arith.constant dense<0.000000e+00> : vector<4x128xf32>
    %739 = tpu.matmul %738, %496, %cst_123 {dimension_numbers = #tpu.dot_dimension_numbers<[1], [0], [0], [1], [0, 0, 1, 1], [], []>} : vector<4x64xbf16>, vector<64x128xbf16>, vector<4x128xf32> -> vector<4x128xf32>
    %740 = arith.addf %501, %739 : vector<4x128xf32>
    %741 = vector.extract_strided_slice %740 {offsets = [0, 0], sizes = [4, 32], strides = [1, 1]} : vector<4x128xf32> to vector<4x32xf32>
    %742 = arith.negf %741 : vector<4x32xf32>
    %743 = math.exp %742 : vector<4x32xf32>
    %cst_124 = arith.constant 1.000000e+00 : f32
    %744 = vector.broadcast %cst_124 : f32 to vector<4x32xf32>
    %745 = arith.addf %744, %743 : vector<4x32xf32>
    %746 = arith.divf %744, %745 : vector<4x32xf32>
    %747 = vector.extract_strided_slice %740 {offsets = [0, 32], sizes = [4, 32], strides = [1, 1]} : vector<4x128xf32> to vector<4x32xf32>
    %748 = arith.negf %747 : vector<4x32xf32>
    %749 = math.exp %748 : vector<4x32xf32>
    %cst_125 = arith.constant 1.000000e+00 : f32
    %750 = vector.broadcast %cst_125 : f32 to vector<4x32xf32>
    %751 = arith.addf %750, %749 : vector<4x32xf32>
    %752 = arith.divf %750, %751 : vector<4x32xf32>
    %753 = vector.extract_strided_slice %740 {offsets = [0, 64], sizes = [4, 32], strides = [1, 1]} : vector<4x128xf32> to vector<4x32xf32>
    %754 = math.tanh %753 : vector<4x32xf32>
    %755 = vector.extract_strided_slice %740 {offsets = [0, 96], sizes = [4, 32], strides = [1, 1]} : vector<4x128xf32> to vector<4x32xf32>
    %756 = arith.negf %755 : vector<4x32xf32>
    %757 = math.exp %756 : vector<4x32xf32>
    %cst_126 = arith.constant 1.000000e+00 : f32
    %758 = vector.broadcast %cst_126 : f32 to vector<4x32xf32>
    %759 = arith.addf %758, %757 : vector<4x32xf32>
    %760 = arith.divf %758, %759 : vector<4x32xf32>
    %761 = arith.mulf %752, %719 : vector<4x32xf32>
    %762 = arith.mulf %746, %754 : vector<4x32xf32>
    %763 = arith.addf %761, %762 : vector<4x32xf32>
    %764 = math.tanh %763 : vector<4x32xf32>
    %765 = arith.mulf %760, %764 : vector<4x32xf32>
    %766 = arith.addf %765, %1 : vector<4x32xf32>
    %767 = arith.truncf %766 : vector<4x32xf32> to vector<4x32xbf16>
    %cst_127 = arith.constant dense<0.000000e+00> : vector<4x8xf32>
    %768 = tpu.matmul %767, %495, %cst_127 {dimension_numbers = #tpu.dot_dimension_numbers<[1], [0], [0], [1], [0, 0, 1, 1], [], []>} : vector<4x32xbf16>, vector<32x8xbf16>, vector<4x8xf32> -> vector<4x8xf32>
    %cst_128 = arith.constant dense<0xFF800000> : vector<4xf32>
    %769 = vector.multi_reduction <maximumf>, %768, %cst_128 [1] : vector<4x8xf32> to vector<4xf32>
    %770 = vector.shape_cast %769 : vector<4xf32> to vector<4x1xf32>
    %771 = vector.broadcast %770 : vector<4x1xf32> to vector<4x8xf32>
    %772 = arith.subf %768, %771 : vector<4x8xf32>
    %773 = math.exp %772 : vector<4x8xf32>
    %cst_129 = arith.constant dense<0.000000e+00> : vector<4xf32>
    %774 = vector.multi_reduction <add>, %773, %cst_129 [1] : vector<4x8xf32> to vector<4xf32>
    %775 = vector.shape_cast %774 : vector<4xf32> to vector<4x1xf32>
    %776 = tpu.reciprocal %775 {approx = true} : vector<4x1xf32> -> vector<4x1xf32>
    %777 = vector.broadcast %776 : vector<4x1xf32> to vector<4x8xf32>
    %778 = arith.mulf %773, %777 : vector<4x8xf32>
    %779 = arith.truncf %778 : vector<4x8xf32> to vector<4x8xbf16>
    %cst_130 = arith.constant dense<0.000000e+00> : vector<4x32xf32>
    %780 = tpu.matmul %779, %493, %cst_130 {dimension_numbers = #tpu.dot_dimension_numbers<[1], [0], [0], [1], [0, 0, 1, 1], [], []>} : vector<4x8xbf16>, vector<8x32xbf16>, vector<4x32xf32> -> vector<4x32xf32>
    %781 = tpu.concatenate %780, %766 in 1 : vector<4x32xf32>, vector<4x32xf32> -> vector<4x64xf32>
    %782 = arith.truncf %781 : vector<4x64xf32> to vector<4x64xbf16>
    %cst_131 = arith.constant dense<0.000000e+00> : vector<4x128xf32>
    %783 = tpu.matmul %782, %496, %cst_131 {dimension_numbers = #tpu.dot_dimension_numbers<[1], [0], [0], [1], [0, 0, 1, 1], [], []>} : vector<4x64xbf16>, vector<64x128xbf16>, vector<4x128xf32> -> vector<4x128xf32>
    %784 = arith.addf %501, %783 : vector<4x128xf32>
    %785 = vector.extract_strided_slice %784 {offsets = [0, 0], sizes = [4, 32], strides = [1, 1]} : vector<4x128xf32> to vector<4x32xf32>
    %786 = arith.negf %785 : vector<4x32xf32>
    %787 = math.exp %786 : vector<4x32xf32>
    %cst_132 = arith.constant 1.000000e+00 : f32
    %788 = vector.broadcast %cst_132 : f32 to vector<4x32xf32>
    %789 = arith.addf %788, %787 : vector<4x32xf32>
    %790 = arith.divf %788, %789 : vector<4x32xf32>
    %791 = vector.extract_strided_slice %784 {offsets = [0, 32], sizes = [4, 32], strides = [1, 1]} : vector<4x128xf32> to vector<4x32xf32>
    %792 = arith.negf %791 : vector<4x32xf32>
    %793 = math.exp %792 : vector<4x32xf32>
    %cst_133 = arith.constant 1.000000e+00 : f32
    %794 = vector.broadcast %cst_133 : f32 to vector<4x32xf32>
    %795 = arith.addf %794, %793 : vector<4x32xf32>
    %796 = arith.divf %794, %795 : vector<4x32xf32>
    %797 = vector.extract_strided_slice %784 {offsets = [0, 64], sizes = [4, 32], strides = [1, 1]} : vector<4x128xf32> to vector<4x32xf32>
    %798 = math.tanh %797 : vector<4x32xf32>
    %799 = vector.extract_strided_slice %784 {offsets = [0, 96], sizes = [4, 32], strides = [1, 1]} : vector<4x128xf32> to vector<4x32xf32>
    %800 = arith.negf %799 : vector<4x32xf32>
    %801 = math.exp %800 : vector<4x32xf32>
    %cst_134 = arith.constant 1.000000e+00 : f32
    %802 = vector.broadcast %cst_134 : f32 to vector<4x32xf32>
    %803 = arith.addf %802, %801 : vector<4x32xf32>
    %804 = arith.divf %802, %803 : vector<4x32xf32>
    %805 = arith.mulf %796, %763 : vector<4x32xf32>
    %806 = arith.mulf %790, %798 : vector<4x32xf32>
    %807 = arith.addf %805, %806 : vector<4x32xf32>
    %808 = math.tanh %807 : vector<4x32xf32>
    %809 = arith.mulf %804, %808 : vector<4x32xf32>
    %810 = arith.addf %809, %1 : vector<4x32xf32>
    %811 = arith.truncf %810 : vector<4x32xf32> to vector<4x32xbf16>
    %cst_135 = arith.constant dense<0.000000e+00> : vector<4x8xf32>
    %812 = tpu.matmul %811, %495, %cst_135 {dimension_numbers = #tpu.dot_dimension_numbers<[1], [0], [0], [1], [0, 0, 1, 1], [], []>} : vector<4x32xbf16>, vector<32x8xbf16>, vector<4x8xf32> -> vector<4x8xf32>
    %cst_136 = arith.constant dense<0xFF800000> : vector<4xf32>
    %813 = vector.multi_reduction <maximumf>, %812, %cst_136 [1] : vector<4x8xf32> to vector<4xf32>
    %814 = vector.shape_cast %813 : vector<4xf32> to vector<4x1xf32>
    %815 = vector.broadcast %814 : vector<4x1xf32> to vector<4x8xf32>
    %816 = arith.subf %812, %815 : vector<4x8xf32>
    %817 = math.exp %816 : vector<4x8xf32>
    %cst_137 = arith.constant dense<0.000000e+00> : vector<4xf32>
    %818 = vector.multi_reduction <add>, %817, %cst_137 [1] : vector<4x8xf32> to vector<4xf32>
    %819 = vector.shape_cast %818 : vector<4xf32> to vector<4x1xf32>
    %820 = tpu.reciprocal %819 {approx = true} : vector<4x1xf32> -> vector<4x1xf32>
    %821 = vector.broadcast %820 : vector<4x1xf32> to vector<4x8xf32>
    %822 = arith.mulf %817, %821 : vector<4x8xf32>
    %823 = arith.truncf %822 : vector<4x8xf32> to vector<4x8xbf16>
    %cst_138 = arith.constant dense<0.000000e+00> : vector<4x32xf32>
    %824 = tpu.matmul %823, %493, %cst_138 {dimension_numbers = #tpu.dot_dimension_numbers<[1], [0], [0], [1], [0, 0, 1, 1], [], []>} : vector<4x8xbf16>, vector<8x32xbf16>, vector<4x32xf32> -> vector<4x32xf32>
    %825 = tpu.concatenate %824, %810 in 1 : vector<4x32xf32>, vector<4x32xf32> -> vector<4x64xf32>
    %826 = arith.truncf %825 : vector<4x64xf32> to vector<4x64xbf16>
    %cst_139 = arith.constant dense<0.000000e+00> : vector<4x128xf32>
    %827 = tpu.matmul %826, %496, %cst_139 {dimension_numbers = #tpu.dot_dimension_numbers<[1], [0], [0], [1], [0, 0, 1, 1], [], []>} : vector<4x64xbf16>, vector<64x128xbf16>, vector<4x128xf32> -> vector<4x128xf32>
    %828 = arith.addf %501, %827 : vector<4x128xf32>
    %829 = vector.extract_strided_slice %828 {offsets = [0, 0], sizes = [4, 32], strides = [1, 1]} : vector<4x128xf32> to vector<4x32xf32>
    %830 = arith.negf %829 : vector<4x32xf32>
    %831 = math.exp %830 : vector<4x32xf32>
    %cst_140 = arith.constant 1.000000e+00 : f32
    %832 = vector.broadcast %cst_140 : f32 to vector<4x32xf32>
    %833 = arith.addf %832, %831 : vector<4x32xf32>
    %834 = arith.divf %832, %833 : vector<4x32xf32>
    %835 = vector.extract_strided_slice %828 {offsets = [0, 32], sizes = [4, 32], strides = [1, 1]} : vector<4x128xf32> to vector<4x32xf32>
    %836 = arith.negf %835 : vector<4x32xf32>
    %837 = math.exp %836 : vector<4x32xf32>
    %cst_141 = arith.constant 1.000000e+00 : f32
    %838 = vector.broadcast %cst_141 : f32 to vector<4x32xf32>
    %839 = arith.addf %838, %837 : vector<4x32xf32>
    %840 = arith.divf %838, %839 : vector<4x32xf32>
    %841 = vector.extract_strided_slice %828 {offsets = [0, 64], sizes = [4, 32], strides = [1, 1]} : vector<4x128xf32> to vector<4x32xf32>
    %842 = math.tanh %841 : vector<4x32xf32>
    %843 = vector.extract_strided_slice %828 {offsets = [0, 96], sizes = [4, 32], strides = [1, 1]} : vector<4x128xf32> to vector<4x32xf32>
    %844 = arith.negf %843 : vector<4x32xf32>
    %845 = math.exp %844 : vector<4x32xf32>
    %cst_142 = arith.constant 1.000000e+00 : f32
    %846 = vector.broadcast %cst_142 : f32 to vector<4x32xf32>
    %847 = arith.addf %846, %845 : vector<4x32xf32>
    %848 = arith.divf %846, %847 : vector<4x32xf32>
    %849 = arith.mulf %840, %807 : vector<4x32xf32>
    %850 = arith.mulf %834, %842 : vector<4x32xf32>
    %851 = arith.addf %849, %850 : vector<4x32xf32>
    %852 = math.tanh %851 : vector<4x32xf32>
    %853 = arith.mulf %848, %852 : vector<4x32xf32>
    %854 = arith.addf %853, %1 : vector<4x32xf32>
    %c0_143 = arith.constant 0 : index
    %c0_144 = arith.constant 0 : index
    %855 = vector.load %arg9[%c0_143, %c0_144] : memref<4x32xf32, #tpu.memory_space<vmem>>, vector<4x32xf32>
    tpu.vector_store %arg9[%c0_143, %c0_144], %854 {strides = array<i32>} : memref<4x32xf32, #tpu.memory_space<vmem>>, vector<4x32xf32>,
    return
  }
}

</mosaic_0001>

<bundles_post_ra>
// kernel: tpu_custom_call.1
= control target key start
LH: loop header
LB: loop body
LE: loop exit
PB: predicated region body
PF: predicated region fallthrough
CT: control target
= control target key end

     0   :  { %15 = vsyncpa [#allocation3], 0  ;;  %s3521_s0 = inlined_call_operand.hbm [shape: f32[8,32], index: 0, kind: input, shape index: {}]   ;;  %s3522_s1 = inlined_call_operand.hbm [shape: f32[4,32], index: 1, kind: input, shape index: {}]   ;;  %s3523_s2 = inlined_call_operand.hbm [shape: bf16[32,256], index: 2, kind: input, shape index: {}]   ;;  %s3524_s3 = inlined_call_operand.vmem [shape: f32[1,256], index: 3, kind: input, shape index: {}]   ;;  %s3525_s4 = inlined_call_operand.hbm [shape: bf16[64,256], index: 4, kind: input, shape index: {}]   ;;  %s3526_s5 = inlined_call_operand.hbm [shape: bf16[32,128], index: 5, kind: input, shape index: {}]   ;;  %s3527_s6 = inlined_call_operand.hbm [shape: bf16[64,128], index: 6, kind: input, shape index: {}]   ;;  %s3528_s7 = inlined_call_operand.vmem [shape: f32[1,128], index: 7, kind: input, shape index: {}]   ;;  %s3529_s8 = inlined_call_operand.hbm [shape: f32[8,32], index: 8, kind: output, shape index: {0}]   ;;  %s3530_s9 = inlined_call_operand.hbm [shape: f32[4,32], index: 9, kind: output, shape index: {1}]  }
   0x1   :  { %16 = vsyncpa [#allocation6], 0 }
   0x2   :  { %17 = vsyncpa [#allocation9], 0 }
   0x3   :  { %18 = vsyncpa [#allocation12], 0 }
   0x4   :  { %19 = vsyncpa [#allocation4], 0  ;;  %s37_s11 = sshll.u32 %s3522_s1, 4  ;;  %s38_s11 = int_to_ptr.hbm [resolvable:$true] %s37_s11 }
   0x5   :  { %20 = vsyncpa [#allocation15], 0  ;;  %s2907_s12 = smov [#allocation5]   ;;  %s62_s16 = sshll.u32 %s3525_s4, 4  ;;  %s63_s16 = int_to_ptr.hbm [resolvable:$true] %s62_s16 }
   0x6   :  { %s39_s13 = sshll.u32 %s2907_s12, 4  ;;  %s2908_s17 = smov [#allocation8]   ;;  %s40_s13 = int_to_ptr.vmem [resolvable:$true] %s39_s13 }
   0x7   :  { %42 = dma.hbm_to_vmem [thread:$0]  %s38_s11, 64, %s40_s13, [#allocation6]  }
   0x8   :  { %s64_s18 = sshll.u32 %s2908_s17, 4  ;;  %s26_s21 = sshll.u32 %s3521_s0, 4  ;;  %s65_s18 = int_to_ptr.vmem [resolvable:$true] %s64_s18  ;;  %s27_s21 = int_to_ptr.hbm [resolvable:$true] %s26_s21 }
   0x9   :  { %s2909_s1 = smov 128   ;;  %s2910_s22 = smov 8  }
   0xa   :  { %70 = dma.hbm_to_vmem [thread:$0]  %s63_s16, 1024, %s65_s18, [#allocation9], %s2909_s1, %s2909_s1, %s2910_s22  }
   0xb   :  { %s47_s25 = sshll.u32 %s3523_s2, 4  ;;  %s2911_s26 = smov [#allocation2]   ;;  %s48_s25 = int_to_ptr.hbm [resolvable:$true] %s47_s25 }
   0xc   :  { %s28_s27 = sshll.u32 %s2911_s26, 4  ;;  %s2912_s4 = smov [#allocation7]   ;;  %s29_s27 = int_to_ptr.vmem [resolvable:$true] %s28_s27 }
   0xd   :  { %31 = dma.hbm_to_vmem [thread:$0]  %s27_s21, 128, %s29_s27, [#allocation3]  }
   0xe   :  { %s49_s28 = sshll.u32 %s2912_s4, 4  ;;  %s75_s0 = sshll.u32 %s3526_s5, 4  ;;  %s50_s28 = int_to_ptr.vmem [resolvable:$true] %s49_s28  ;;  %s76_s0 = int_to_ptr.hbm [resolvable:$true] %s75_s0 }
   0xf   :  { %55 = dma.hbm_to_vmem [thread:$0]  %s48_s25, 512, %s50_s28, [#allocation6], %s2909_s1, %s2909_s1, %s2910_s22  }
  0x10   :  { %s2913_s10 = smov [#allocation10]   ;;  %s88_s2 = sshll.u32 %s3527_s6, 4  ;;  %s89_s2 = int_to_ptr.hbm [resolvable:$true] %s88_s2 }
  0x11   :  { %s77_s11 = sshll.u32 %s2913_s10, 4  ;;  %s2914_s14 = smov 64   ;;  %s78_s11 = int_to_ptr.vmem [resolvable:$true] %s77_s11 }
  0x12   :  { %s2915_s15 = smov 4   ;;  %s2916_s16 = smov [#allocation11]  }
  0x13   :  { %83 = dma.hbm_to_vmem [thread:$0]  %s76_s0, 256, %s78_s11, [#allocation9], %s2914_s14, %s2914_s14, %s2915_s15  }
  0x14   :  { %s90_s17 = sshll.u32 %s2916_s16, 4  ;;  %s91_s17 = int_to_ptr.vmem [resolvable:$true] %s90_s17 }
  0x15   :  { %96 = dma.hbm_to_vmem [thread:$0]  %s89_s2, 512, %s91_s17, [#allocation12], %s2914_s14, %s2914_s14, %s2915_s15  }
  0x16   :  { %2895 = dma.done.wait [#allocation3], 128  }
  0x17   :  { %2896 = vsyncadd [#allocation3], 4294967168 }
  0x18   :  { %2897 = dma.done.wait [#allocation6], 576  }
  0x19   :  { %2898 = vsyncadd [#allocation6], 4294966720 }
  0x1a   :  { %2899 = dma.done.wait [#allocation9], 1280  }
  0x1b   :  { %2900 = vsyncadd [#allocation9], 4294966016 }
  0x1c   :  { %2901 = dma.done.wait [#allocation12], 512  }
  0x1d   :  { %2902 = vsyncadd [#allocation12], 4294966784  ;;  %v2350_v0 = vld [vmem:[#allocation8 + $0x30] sm:$0xf]  ;;  %v2454_v1 = vld [vmem:[#allocation8 + $0x34] sm:$0xf0] }
  0x1e   :  { %v2453_v2 = vld [vmem:[#allocation8 + $0x34] sm:$0xf]  ;;  %v2994_v3 = vor.u32 %v2454_v1, %v2350_v0  ;;  %v2352_v4 = vld [vmem:[#allocation8 + $0x38] sm:$0xf0]  ;;  %v2342_v5 = vld [vmem:[#allocation8 + $0x20] sm:$0xf] }
  0x1f   :  { %v2452_v6 = vld [vmem:[#allocation8 + $0x24] sm:$0xf0]  ;;  %v2996_v7 = vor.u32 %v2453_v2, %v2352_v4  ;;  %v2451_v8 = vld [vmem:[#allocation8 + $0x24] sm:$0xf]  ;;  %v2344_v9 = vld [vmem:[#allocation8 + $0x28] sm:$0xf0] }
  0x20   :  { %v2445_v10 = vld [vmem:[#allocation7 + $0x14] sm:$0xf]  ;;  %245 = vmatpush.bf16.msra.mxu2 %v2994_v3  ;;  %v2999_v11 = vor.u32 %v2452_v6, %v2342_v5  ;;  %v2318_v12 = vld [vmem:[#allocation7 + $0x18] sm:$0xf0]  ;;  %v2334_v13 = vld [vmem:[#allocation8 + $0x10] sm:$0xf]  ;;  %v3002_v15 = vor.u32 %v2451_v8, %v2344_v9 }
  0x21   :  { %v2450_v14 = vld [vmem:[#allocation8 + $0x14] sm:$0xf0]  ;;  %258 = vmatpush.bf16.msra.mxu3 %v2996_v7  ;;  %v2321_v16 = vor.u32 %v2445_v10, %v2318_v12  ;;  %v2449_v17 = vld [vmem:[#allocation8 + $0x14] sm:$0xf]  ;;  %v2336_v18 = vld [vmem:[#allocation8 + $0x18] sm:$0xf0] }
  0x22   :  { %v2443_v19 = vld [vmem:[#allocation7 + $0x4] sm:$0xf]  ;;  %v2310_v20 = vld [vmem:[#allocation7 + $0x8] sm:$0xf0]  ;;  %v2316_v21 = vld [vmem:[#allocation7 + $0x10] sm:$0xf]  ;;  %v3005_v25 = vor.u32 %v2450_v14, %v2334_v13  ;;  %v3008_v29 = vor.u32 %v2449_v17, %v2336_v18 }
  0x23   :  { %v2446_v22 = vld [vmem:[#allocation7 + $0x14] sm:$0xf0]  ;;  %181 = vmatpush.bf16.msra.mxu1 %v2321_v16  ;;  %v2313_v23 = vor.u32 %v2443_v19, %v2310_v20  ;;  %v2326_v26 = vld [vmem:[#allocation8] sm:$0xf]  ;;  %v2448_v30 = vld [vmem:[#allocation8 + $0x4] sm:$0xf0] }
  0x24   :  { %v2317_v24 = vor.u32 %v2446_v22, %v2316_v21  ;;  %246 = vmatpush.bf16.msra.mxu2 %v2999_v11  ;;  %v124_v27 = vld [vmem:[#allocation2] sm:$0xff]  ;;  %v2308_v28 = vld [vmem:[#allocation7] sm:$0xf]  ;;  %v2444_v31 = vld [vmem:[#allocation7 + $0x4] sm:$0xf0]  ;;  %vm158_vm0 = vcmask 261120   ;;  %v3011_v36 = vor.u32 %v2448_v30, %v2326_v26 }
  0x25   :  { %259 = vmatpush.bf16.msra.mxu3 %v3002_v15  ;;  %v2447_v32 = vld [vmem:[#allocation8 + $0x4] sm:$0xf]  ;;  %v2328_v33 = vld [vmem:[#allocation8 + $0x8] sm:$0xf0]  ;;  %v126_v34 = vpack.c.bf16 %v124_v27, %v124_v27  ;;  %v2309_v35 = vor.u32 %v2444_v31, %v2308_v28  ;;  %v2917_v38 = vmov 0.0|0.0   ;;  %vm237_vm9 = vcmask 523264  }
  0x26   :  { %168 = vmatpush.bf16.msra.mxu0 %v2317_v24  ;;  %v3015_v37 = vor.u32 %v2447_v32, %v2328_v33  ;;  %v132_v41 = vld [vmem:[%s3524_s3] sm:$0x3]  ;;  %s2918_s3 = smov 32   ;;  %s2919_s20 = smov 96  }
  0x27   :  { %182 = vmatpush.bf16.msra.mxu1 %v2313_v23  ;;  %v135_v42 = vperm.slane %v132_v41, 1  ;;  %v134_v48 = vperm.slane %v132_v41, 0  ;;  %s2277_s23 = sshll.u32 %s3529_s8, 4  ;;  %s2921_s24 = smov [#allocation14]   ;;  %s2278_s23 = int_to_ptr.hbm [resolvable:$true] %s2277_s23 }
  0x28   :  { %247 = vmatpush.bf16.msra.mxu2 %v3005_v25  ;;  %s2286_s25 = sshll.u32 %s2921_s24, 4  ;;  %s2288_s4 = sshll.u32 %s3530_s9, 4  ;;  %s2287_s25 = int_to_ptr.vmem [resolvable:$true] %s2286_s25  ;;  %s2289_s4 = int_to_ptr.hbm [resolvable:$true] %s2288_s4 }
  0x29   :  { %260 = vmatpush.bf16.msra.mxu3 %v3008_v29 }
  0x2a   :  { %169 = vmatpush.bf16.msra.mxu0 %v2309_v35  ;;  %2323 = vmatmul.msk.bf16.vlgmr.msra.gmra.mxu1 %vm158_vm0, %v126_v34 }
  0x2b   :  { %377 = vmatpush.bf16.msrb.mxu1 %v2996_v7 }
  0x2c   :  { %248 = vmatpush.bf16.msra.mxu2 %v3011_v36 }
  0x2d   :  { %2322 = vmatmul.msk.bf16.vlgmr.msra.gmra.mxu0 %vm158_vm0, %v126_v34  ;;  %261 = vmatpush.bf16.msra.mxu3 %v3015_v37 }
  0x2e   :  { %364 = vmatpush.bf16.msrb.mxu0 %v2994_v3 }
  0x2f   :  { %378 = vmatpush.bf16.msrb.mxu1 %v3002_v15  ;;  %249 = vmatmul.bf16.vlgmr.msra.gmra.mxu2 %v2917_v38 }
  0x30   :  { %495 = vmatpush.bf16.msrb.mxu2 %v2994_v3  ;;  %262 = vmatmul.bf16.vlgmr.msra.gmra.mxu3 %v2917_v38 }
  0x31   :  { %508 = vmatpush.bf16.msrb.mxu3 %v2996_v7 }
  0x32   :  { %365 = vmatpush.bf16.msrb.mxu0 %v2999_v11 }
  0x33   :  { %379 = vmatpush.bf16.msrb.mxu1 %v3008_v29 }
  0x34   :  { %496 = vmatpush.bf16.msrb.mxu2 %v2999_v11 }
  0x35   :  { %509 = vmatpush.bf16.msrb.mxu3 %v3002_v15 }
  0x36   :  { %366 = vmatpush.bf16.msrb.mxu0 %v3005_v25 }
  0x37   :  { %380 = vmatpush.bf16.msrb.mxu1 %v3015_v37 }
  0x38   :  { %497 = vmatpush.bf16.msrb.mxu2 %v3005_v25 }
  0x39   :  { %510 = vmatpush.bf16.msrb.mxu3 %v3008_v29 }
  0x3a   :  { %367 = vmatpush.bf16.msrb.mxu0 %v3011_v36 }
  0x3b   :  { %638 = vmatpush.bf16.msra.mxu1 %v2996_v7 }
  0x3c   :  { %498 = vmatpush.bf16.msrb.mxu2 %v3011_v36 }
  0x3d   :  { %511 = vmatpush.bf16.msrb.mxu3 %v3015_v37 }
  0x3e   :  { %625 = vmatpush.bf16.msra.mxu0 %v2994_v3 }
  0x3f   :  { %639 = vmatpush.bf16.msra.mxu1 %v3002_v15 }
  0x40   :  { %757 = vmatpush.bf16.msra.mxu2 %v2994_v3 }
  0x41   :  { %770 = vmatpush.bf16.msra.mxu3 %v2996_v7 }
  0x42   :  { %626 = vmatpush.bf16.msra.mxu0 %v2999_v11 }
  0x43   :  { %640 = vmatpush.bf16.msra.mxu1 %v3008_v29 }
  0x44   :  { %758 = vmatpush.bf16.msra.mxu2 %v2999_v11 }
  0x45   :  { %771 = vmatpush.bf16.msra.mxu3 %v3002_v15 }
  0x46   :  { %627 = vmatpush.bf16.msra.mxu0 %v3005_v25 }
  0x47   :  { %641 = vmatpush.bf16.msra.mxu1 %v3015_v37 }
  0x48   :  { %759 = vmatpush.bf16.msra.mxu2 %v3005_v25 }
  0x49   :  { %772 = vmatpush.bf16.msra.mxu3 %v3008_v29 }
  0x4a   :  { %628 = vmatpush.bf16.msra.mxu0 %v3011_v36 }
  0x4c   :  { %760 = vmatpush.bf16.msra.mxu2 %v3011_v36 }
  0x4d   :  { %773 = vmatpush.bf16.msra.mxu3 %v3015_v37 }
  0xa7   :  { %v184_v39 = vpop.f32.mrf.mxu1 }
  0xa8   :  { %v3055_v45 = vadd.f32 %v184_v39, %v135_v42 }
  0xaa   :  { %v171_v40 = vpop.f32.mrf.mxu0 }
  0xab   :  { %v3058_v51 = vadd.f32 %v171_v40, %v134_v48 }
  0xaf   :  { %v186_v43 = vpop.f32.mrf.mxu1 }
  0xb2   :  { %v173_v44 = vpop.f32.mrf.mxu0  ;;  %v250_v46 = vpop.f32.mrf.mxu2 }
  0xb3   :  { %v263_v47 = vpop.f32.mrf.mxu3  ;;  %v267_v54 = vadd.f32 %v250_v46, %v3058_v51 }
  0xb4   :  { %v306_v49 = vrot.slane %v263_v47, 1 }
  0xb5   :  { %v2356_v58 = vmul.f32 -1.442695, %v267_v54 }
  0xb6   :  { %v308_v50 = vadd.f32 %v306_v49, %v3055_v45 }
  0xb8   :  { %2478 = vtanh.f32 %v308_v50  ;;  %v2357_v57 = vmul.f32 -1.442695, %v308_v50 }
  0xb9   :  { %2480 = vtanh.f32 %v267_v54 }
  0xba   :  { %v252_v52 = vpop.f32.mrf.mxu2  ;;  %2482 = vpow2.f32 %v2357_v57 }
  0xbb   :  { %v265_v53 = vpop.f32.mrf.mxu3  ;;  %2484 = vpow2.f32 %v2356_v58 }
  0xbe   :  { %v2479_v55 = vpop.eup %2478 }
  0xbf   :  { %331 = vrot.lane.b32.xlu0 %v2479_v55, %s2914_s14  ;;  %v2481_v56 = vpop.eup %2480 }
  0xc0   :  { %v2483_v59 = vpop.eup %2482 }
  0xc1   :  { %v312_v60 = vadd.f32 1.0, %v2483_v59  ;;  %v2485_v61 = vpop.eup %2484 }
  0xc2   :  { %v271_v62 = vadd.f32 1.0, %v2485_v61 }
  0xc3   :  { %2486 = vrcp.f32 %v312_v60  ;;  %v324_v9 = vand.u32 2147483648, %v312_v60  ;;  %vm318_vm2 = vweird.f32 %v312_v60  ;;  %v322_v10 = vand.u32 2147483647, %v312_v60 }
  0xc4   :  { %2488 = vrcp.f32 %v271_v62  ;;  %vm277_vm5 = vweird.f32 %v271_v62  ;;  %v283_v20 = vand.u32 2147483648, %v271_v62  ;;  %v281_v21 = vand.u32 2147483647, %v271_v62 }
  0xc5   :  { %v325_v14 = vor.u32 1.1754944e-38, %v324_v9  ;;  %vm323_vm4 = vcmp.eq.f32.partialorder %v322_v10, 8.507059e+37 }
  0xc6   :  { %v284_v23 = vor.u32 1.1754944e-38, %v283_v20  ;;  %vm282_vm8 = vcmp.eq.f32.partialorder %v281_v21, 8.507059e+37 }
  0xc7   :  { %290 = vrot.lane.b32.xlu0 %v2481_v56, %s2914_s14 }
  0xc9   :  { %v2487_v63 = vpop.eup %2486 }
  0xca   :  { %v314_v0 = vmul.f32 %v2487_v63, %v312_v60  ;;  %v2489_v2 = vpop.eup %2488  ;;  %vm319_vm1 = vweird.f32 %v2487_v63 }
  0xcb   :  { %v273_v5 = vmul.f32 %v2489_v2, %v271_v62  ;;  %vm320_vm3 = vmor %vm318_vm2, %vm319_vm1  ;;  %vm278_vm6 = vweird.f32 %v2489_v2 }
  0xcc   :  { %v315_v1 = vsub.f32 1.0, %v314_v0  ;;  %vm279_vm7 = vmor %vm277_vm5, %vm278_vm6 }
  0xcd   :  { %v274_v8 = vsub.f32 1.0, %v273_v5 }
  0xce   :  { %v316_v4 = vmul.f32 %v2487_v63, %v315_v1 }
  0xcf   :  { %v275_v13 = vmul.f32 %v2489_v2, %v274_v8 }
  0xd0   :  { %v317_v6 = vadd.f32 %v2487_v63, %v316_v4 }
  0xd1   :  { %v276_v19 = vadd.f32 %v2489_v2, %v275_v13 }
  0xd2   :  { %v321_v12 = vsel %vm320_vm3, %v2487_v63, %v317_v6 }
  0xd3   :  { %v326_v17 = vsel %vm323_vm4, %v325_v14, %v321_v12  ;;  %v280_v22 = vsel %vm279_vm7, %v2489_v2, %v276_v19 }
  0xd4   :  { %v285_v26 = vsel %vm282_vm8, %v284_v23, %v280_v22  ;;  %v329_v28 = vmul.f32 0.0, %v326_v17 }
  0xd5   :  { %v288_v32 = vmul.f32 0.0, %v285_v26 }
 0x131   :  { %v332_v16 = vpop.permute.xlu0 %331 }
 0x132   :  { %v334_v18 = vmul.f32 %v332_v16, %v326_v17 }
 0x134   :  { %336 = vrot.lane.b32.xlu1 %v334_v18, %s2918_s3 }
 0x139   :  { %v291_v24 = vpop.permute.xlu0 %290 }
 0x13a   :  { %v293_v27 = vmul.f32 %v291_v24, %v285_v26 }
 0x13c   :  { %295 = vrot.lane.b32.xlu1 %v293_v27, %s2918_s3 }
 0x1a6   :  { %v337_v30 = vpop.permute.xlu1 %336 }
 0x1a7   :  { %v3065_v31 = vadd.f32 %v337_v30, %v329_v28 }
 0x1a9   :  { %2490 = vtanh.f32 %v3065_v31 }
 0x1ae   :  { %v296_v33 = vpop.permute.xlu1 %295 }
 0x1af   :  { %v2491_v34 = vpop.eup %2490  ;;  %v3068_v35 = vadd.f32 %v296_v33, %v288_v32 }
 0x1b0   :  { %342 = vrot.lane.b32.xlu2 %v2491_v34, %s2914_s14  ;;  %v455_v34 = vrot.slane %v3065_v31, 1 }
 0x1b1   :  { %2492 = vtanh.f32 %v3068_v35  ;;  %v411_v33 = vrot.slane %v3068_v35, 7 }
 0x1b7   :  { %v2493_v38 = vpop.eup %2492 }
 0x1b8   :  { %301 = vrot.lane.b32.xlu2 %v2493_v38, %s2914_s14 }
 0x20a   :  { %v343_v39 = vpop.permute.xlu2 %342 }
 0x20b   :  { %v3073_v40 = vmul.f32 %v343_v39, %v326_v17 }
 0x20d   :  { %v351_v41 = vrot.slane %v3073_v40, 7 }
 0x20f   :  { %352 = vrot.lane.b32.xlu1 %v351_v41, %s2914_s14 }
 0x212   :  { %v302_v42 = vpop.permute.xlu2 %301 }
 0x213   :  { %v3077_v43 = vmul.f32 %v302_v42, %v285_v26 }
 0x215   :  { %347 = vrot.lane.b32.xlu0 %v3077_v43, %s2918_s3 }
 0x281   :  { %v353_v44 = vpop.permute.xlu1 %352 }
 0x287   :  { %v348_v46 = vpop.permute.xlu0 %347 }
 0x288   :  { %v355_v47 = vsel %vm158_vm0, %v348_v46, %v353_v44 }
 0x289   :  { %v356_v48 = vpack.c.bf16 %v355_v47, %v355_v47 }
 0x28b   :  { %2358 = vmatmul.msk.bf16.vlgmr.msrb.gmra.mxu0 %vm237_vm9, %v356_v48  ;;  %2359 = vmatmul.msk.bf16.vlgmr.msrb.gmra.mxu1 %vm237_vm9, %v356_v48 }
 0x28c   :  { %887 = vmatpush.bf16.msrb.mxu0 %v2994_v3  ;;  %900 = vmatpush.bf16.msrb.mxu1 %v2996_v7 }
 0x290   :  { %888 = vmatpush.bf16.msrb.mxu0 %v2999_v11  ;;  %901 = vmatpush.bf16.msrb.mxu1 %v3002_v15 }
 0x294   :  { %889 = vmatpush.bf16.msrb.mxu0 %v3005_v25  ;;  %902 = vmatpush.bf16.msrb.mxu1 %v3008_v29 }
 0x298   :  { %890 = vmatpush.bf16.msrb.mxu0 %v3011_v36  ;;  %903 = vmatpush.bf16.msrb.mxu1 %v3015_v37 }
 0x308   :  { %v369_v49 = vpop.f32.mrf.mxu0  ;;  %v382_v50 = vpop.f32.mrf.mxu1 }
 0x309   :  { %v387_v52 = vrot.slane %v369_v49, 7  ;;  %v431_v53 = vrot.slane %v382_v50, 2 }
 0x30b   :  { %v389_v54 = vadd.f32 %v387_v52, %v3058_v51  ;;  %v433_v55 = vadd.f32 %v431_v53, %v3055_v45 }
 0x30d   :  { %2494 = vtanh.f32 %v389_v54  ;;  %v2361_v60 = vmul.f32 -1.442695, %v433_v55  ;;  %v2360_v0 = vmul.f32 -1.442695, %v389_v54 }
 0x30e   :  { %2496 = vtanh.f32 %v433_v55 }
 0x30f   :  { %2498 = vpow2.f32 %v2361_v60 }
 0x310   :  { %v371_v56 = vpop.f32.mrf.mxu0  ;;  %v384_v57 = vpop.f32.mrf.mxu1 }
 0x313   :  { %v2495_v58 = vpop.eup %2494 }
 0x314   :  { %v2497_v59 = vpop.eup %2496  ;;  %415 = vrot.lane.b32.xlu0 %v2495_v58, %s2914_s14 }
 0x315   :  { %459 = vrot.lane.b32.xlu2 %v2497_v59, %s2914_s14  ;;  %v2499_v61 = vpop.eup %2498 }
 0x316   :  { %v437_v62 = vadd.f32 1.0, %v2499_v61 }
 0x318   :  { %2500 = vrcp.f32 %v437_v62  ;;  %v449_v9 = vand.u32 2147483648, %v437_v62  ;;  %vm443_vm11 = vweird.f32 %v437_v62  ;;  %v447_v10 = vand.u32 2147483647, %v437_v62 }
 0x319   :  { %2502 = vpow2.f32 %v2360_v0 }
 0x31a   :  { %v450_v13 = vor.u32 1.1754944e-38, %v449_v9  ;;  %vm448_vm13 = vcmp.eq.f32.partialorder %v447_v10, 8.507059e+37 }
 0x31e   :  { %v2501_v63 = vpop.eup %2500 }
 0x31f   :  { %v439_v1 = vmul.f32 %v2501_v63, %v437_v62  ;;  %v2503_v4 = vpop.eup %2502  ;;  %vm444_vm10 = vweird.f32 %v2501_v63 }
 0x320   :  { %v393_v6 = vadd.f32 1.0, %v2503_v4  ;;  %vm445_vm12 = vmor %vm443_vm11, %vm444_vm10 }
 0x321   :  { %v440_v2 = vsub.f32 1.0, %v439_v1 }
 0x322   :  { %2504 = vrcp.f32 %v393_v6  ;;  %v405_v23 = vand.u32 2147483648, %v393_v6  ;;  %vm399_vm15 = vweird.f32 %v393_v6  ;;  %v403_v24 = vand.u32 2147483647, %v393_v6 }
 0x323   :  { %v441_v5 = vmul.f32 %v2501_v63, %v440_v2 }
 0x324   :  { %v406_v27 = vor.u32 1.1754944e-38, %v405_v23  ;;  %vm404_vm2 = vcmp.eq.f32.partialorder %v403_v24, 8.507059e+37 }
 0x325   :  { %v442_v8 = vadd.f32 %v2501_v63, %v441_v5 }
 0x327   :  { %v446_v12 = vsel %vm445_vm12, %v2501_v63, %v442_v8  ;;  %vm1256_vm12 = vcmask 1040384  }
 0x328   :  { %v451_v16 = vsel %vm448_vm13, %v450_v13, %v446_v12  ;;  %v2505_v17 = vpop.eup %2504  ;;  %vm1258_vm13 = vcmask 1041408  }
 0x329   :  { %v395_v19 = vmul.f32 %v2505_v17, %v393_v6  ;;  %vm400_vm14 = vweird.f32 %v2505_v17  ;;  %v457_v39 = vmul.f32 %v455_v34, %v451_v16 }
 0x32a   :  { %vm401_vm1 = vmor %vm399_vm15, %vm400_vm14 }
 0x32b   :  { %v396_v20 = vsub.f32 1.0, %v395_v19 }
 0x32d   :  { %v397_v21 = vmul.f32 %v2505_v17, %v396_v20 }
 0x32f   :  { %v398_v22 = vadd.f32 %v2505_v17, %v397_v21 }
 0x331   :  { %v402_v26 = vsel %vm401_vm1, %v2505_v17, %v398_v22 }
 0x332   :  { %v407_v30 = vsel %vm404_vm2, %v406_v27, %v402_v26 }
 0x333   :  { %v413_v38 = vmul.f32 %v411_v33, %v407_v30 }
 0x36f   :  { %v460_v14 = vpop.permute.xlu2 %459 }
 0x370   :  { %v462_v18 = vmul.f32 %v460_v14, %v451_v16 }
 0x372   :  { %464 = vrot.lane.b32.xlu1 %v462_v18, %s2918_s3 }
 0x386   :  { %v416_v28 = vpop.permute.xlu0 %415 }
 0x387   :  { %v418_v32 = vmul.f32 %v416_v28, %v407_v30 }
 0x389   :  { %420 = vrot.lane.b32.xlu2 %v418_v32, %s2918_s3 }
 0x3e3   :  { %v421_v41 = vpop.permute.xlu2 %420 }
 0x3e4   :  { %v465_v42 = vpop.permute.xlu1 %464  ;;  %v3100_v44 = vadd.f32 %v421_v41, %v413_v38 }
 0x3e5   :  { %v3102_v46 = vadd.f32 %v465_v42, %v457_v39 }
 0x3e6   :  { %2506 = vtanh.f32 %v3100_v44 }
 0x3e7   :  { %2508 = vtanh.f32 %v3102_v46 }
 0x3ec   :  { %v2507_v47 = vpop.eup %2506 }
 0x3ed   :  { %v2509_v48 = vpop.eup %2508  ;;  %426 = vrot.lane.b32.xlu1 %v2507_v47, %s2914_s14 }
 0x3ee   :  { %470 = vrot.lane.b32.xlu0 %v2509_v48, %s2914_s14 }
 0x45f   :  { %v427_v35 = vpop.permute.xlu1 %426 }
 0x460   :  { %v471_v31 = vpop.permute.xlu0 %470  ;;  %v3108_v49 = vmul.f32 %v427_v35, %v407_v30  ;;  %v542_v35 = vrot.slane %v3100_v44, 7 }
 0x461   :  { %v3110_v50 = vmul.f32 %v471_v31, %v451_v16 }
 0x462   :  { %475 = vrot.lane.b32.xlu2 %v3108_v49, %s2918_s3 }
 0x463   :  { %v479_v52 = vrot.slane %v3110_v50, 5 }
 0x465   :  { %480 = vrot.lane.b32.xlu0 %v479_v52, %s2914_s14 }
 0x4bc   :  { %v476_v53 = vpop.permute.xlu2 %475 }
 0x4d7   :  { %v481_v54 = vpop.permute.xlu0 %480 }
 0x4d8   :  { %v483_v55 = vsel %vm158_vm0, %v476_v53, %v481_v54 }
 0x4d9   :  { %v484_v56 = vpack.c.bf16 %v483_v55, %v483_v55  ;;  %v586_v55 = vrot.slane %v3102_v46, 1 }
 0x4db   :  { %v486_v57 = vshrl.u32 %v484_v56, 16 }
 0x4dd   :  { %2362 = vmatmul.msk.bf16.vlgmr.msrb.gmra.mxu2 %vm237_vm9, %v486_v57  ;;  %2363 = vmatmul.msk.bf16.vlgmr.msrb.gmra.mxu3 %vm237_vm9, %v486_v57 }
 0x4de   :  { %1019 = vmatpush.bf16.msrb.mxu2 %v2994_v3  ;;  %1032 = vmatpush.bf16.msrb.mxu3 %v2996_v7 }
 0x4e2   :  { %1020 = vmatpush.bf16.msrb.mxu2 %v2999_v11  ;;  %1033 = vmatpush.bf16.msrb.mxu3 %v3002_v15 }
 0x4e6   :  { %1021 = vmatpush.bf16.msrb.mxu2 %v3005_v25  ;;  %1034 = vmatpush.bf16.msrb.mxu3 %v3008_v29 }
 0x4ea   :  { %1022 = vmatpush.bf16.msrb.mxu2 %v3011_v36  ;;  %1035 = vmatpush.bf16.msrb.mxu3 %v3015_v37 }
 0x560   :  { %v500_v58 = vpop.f32.mrf.mxu2  ;;  %v513_v59 = vpop.f32.mrf.mxu3 }
 0x561   :  { %v518_v60 = vrot.slane %v500_v58, 6  ;;  %v562_v61 = vrot.slane %v513_v59, 3 }
 0x563   :  { %v520_v62 = vadd.f32 %v518_v60, %v3058_v51  ;;  %v564_v63 = vadd.f32 %v562_v61, %v3055_v45 }
 0x565   :  { %2510 = vtanh.f32 %v520_v62  ;;  %v2364_v5 = vmul.f32 -1.442695, %v520_v62  ;;  %v2365_v10 = vmul.f32 -1.442695, %v564_v63  ;;  %v1257_v62 = vsel %vm1256_vm12, %v3077_v43, %v3108_v49 }
 0x566   :  { %2512 = vtanh.f32 %v564_v63 }
 0x567   :  { %2514 = vpow2.f32 %v2364_v5 }
 0x568   :  { %v502_v0 = vpop.f32.mrf.mxu2  ;;  %v515_v1 = vpop.f32.mrf.mxu3 }
 0x56b   :  { %v2511_v2 = vpop.eup %2510 }
 0x56c   :  { %v2513_v4 = vpop.eup %2512  ;;  %546 = vrot.lane.b32.xlu2 %v2511_v2, %s2914_s14 }
 0x56d   :  { %590 = vrot.lane.b32.xlu1 %v2513_v4, %s2914_s14  ;;  %v2515_v6 = vpop.eup %2514 }
 0x56e   :  { %v524_v8 = vadd.f32 1.0, %v2515_v6 }
 0x570   :  { %2516 = vrcp.f32 %v524_v8  ;;  %v536_v19 = vand.u32 2147483648, %v524_v8  ;;  %vm530_vm4 = vweird.f32 %v524_v8  ;;  %v534_v20 = vand.u32 2147483647, %v524_v8 }
 0x571   :  { %2518 = vpow2.f32 %v2365_v10 }
 0x572   :  { %v537_v22 = vor.u32 1.1754944e-38, %v536_v19  ;;  %vm535_vm6 = vcmp.eq.f32.partialorder %v534_v20, 8.507059e+37 }
 0x576   :  { %v2517_v9 = vpop.eup %2516 }
 0x577   :  { %v526_v12 = vmul.f32 %v2517_v9, %v524_v8  ;;  %v2519_v16 = vpop.eup %2518  ;;  %vm531_vm3 = vweird.f32 %v2517_v9 }
 0x578   :  { %v568_v17 = vadd.f32 1.0, %v2519_v16  ;;  %vm532_vm5 = vmor %vm530_vm4, %vm531_vm3 }
 0x579   :  { %v527_v13 = vsub.f32 1.0, %v526_v12 }
 0x57a   :  { %2520 = vrcp.f32 %v568_v17  ;;  %v580_v34 = vand.u32 2147483648, %v568_v17  ;;  %vm574_vm8 = vweird.f32 %v568_v17  ;;  %v578_v38 = vand.u32 2147483647, %v568_v17 }
 0x57b   :  { %v528_v14 = vmul.f32 %v2517_v9, %v527_v13 }
 0x57c   :  { %v581_v41 = vor.u32 1.1754944e-38, %v580_v34  ;;  %vm579_vm11 = vcmp.eq.f32.partialorder %v578_v38, 8.507059e+37 }
 0x57d   :  { %v529_v18 = vadd.f32 %v2517_v9, %v528_v14 }
 0x57f   :  { %v533_v21 = vsel %vm532_vm5, %v2517_v9, %v529_v18 }
 0x580   :  { %v538_v24 = vsel %vm535_vm6, %v537_v22, %v533_v21  ;;  %v2521_v27 = vpop.eup %2520 }
 0x581   :  { %v570_v28 = vmul.f32 %v2521_v27, %v568_v17  ;;  %vm575_vm7 = vweird.f32 %v2521_v27  ;;  %v544_v31 = vmul.f32 %v542_v35, %v538_v24 }
 0x582   :  { %vm576_vm10 = vmor %vm574_vm8, %vm575_vm7  ;;  %vm1260_vm7 = vcmask 1042432  }
 0x583   :  { %v571_v30 = vsub.f32 1.0, %v570_v28 }
 0x585   :  { %v572_v32 = vmul.f32 %v2521_v27, %v571_v30 }
 0x587   :  { %v573_v33 = vadd.f32 %v2521_v27, %v572_v32 }
 0x589   :  { %v577_v39 = vsel %vm576_vm10, %v2521_v27, %v573_v33 }
 0x58a   :  { %v582_v47 = vsel %vm579_vm11, %v581_v41, %v577_v39 }
 0x58b   :  { %v588_v56 = vmul.f32 %v586_v55, %v582_v47 }
 0x5c6   :  { %v547_v23 = vpop.permute.xlu2 %546 }
 0x5c7   :  { %v549_v26 = vmul.f32 %v547_v23, %v538_v24 }
 0x5c9   :  { %551 = vrot.lane.b32.xlu1 %v549_v26, %s2918_s3 }
 0x5df   :  { %v591_v42 = vpop.permute.xlu1 %590 }
 0x5e0   :  { %v593_v48 = vmul.f32 %v591_v42, %v582_v47 }
 0x5e2   :  { %595 = vrot.lane.b32.xlu0 %v593_v48, %s2918_s3 }
 0x63b   :  { %v552_v52 = vpop.permute.xlu1 %551 }
 0x63c   :  { %v3134_v53 = vadd.f32 %v552_v52, %v544_v31 }
 0x63e   :  { %2522 = vtanh.f32 %v3134_v53 }
 0x644   :  { %v2523_v54 = vpop.eup %2522 }
 0x645   :  { %557 = vrot.lane.b32.xlu0 %v2523_v54, %s2914_s14 }
 0x654   :  { %v596_v57 = vpop.permute.xlu0 %595 }
 0x655   :  { %v3139_v58 = vadd.f32 %v596_v57, %v588_v56 }
 0x657   :  { %2524 = vtanh.f32 %v3139_v58  ;;  %v716_v52 = vrot.slane %v3139_v58, 1 }
 0x65d   :  { %v2525_v59 = vpop.eup %2524 }
 0x65e   :  { %601 = vrot.lane.b32.xlu2 %v2525_v59, %s2914_s14  ;;  %v672_v59 = vrot.slane %v3134_v53, 7 }
 0x6b7   :  { %v558_v44 = vpop.permute.xlu0 %557 }
 0x6b8   :  { %v602_v60 = vpop.permute.xlu2 %601  ;;  %v560_v61 = vmul.f32 %v558_v44, %v538_v24 }
 0x6b9   :  { %v3146_v63 = vmul.f32 %v602_v60, %v582_v47 }
 0x6ba   :  { %v3149_v46 = vsel %vm1258_vm13, %v1257_v62, %v560_v61  ;;  %606 = vrot.lane.b32.xlu1 %v560_v61, %s2918_s3 }
 0x6bb   :  { %v610_v0 = vrot.slane %v3146_v63, 3 }
 0x6bd   :  { %611 = vrot.lane.b32.xlu2 %v610_v0, %s2914_s14 }
 0x717   :  { %v612_v1 = vpop.permute.xlu2 %611 }
 0x72c   :  { %v607_v2 = vpop.permute.xlu1 %606 }
 0x72d   :  { %v614_v4 = vsel %vm158_vm0, %v607_v2, %v612_v1 }
 0x72e   :  { %v615_v5 = vpack.c.bf16 %v614_v4, %v614_v4 }
 0x730   :  { %v617_v6 = vrot.slane %v615_v5, 1 }
 0x732   :  { %2366 = vmatmul.msk.bf16.vlgmr.msra.gmra.mxu0 %vm237_vm9, %v617_v6  ;;  %2367 = vmatmul.msk.bf16.vlgmr.msra.gmra.mxu1 %vm237_vm9, %v617_v6 }
 0x733   :  { %1149 = vmatpush.bf16.msra.mxu0 %v2994_v3  ;;  %1162 = vmatpush.bf16.msra.mxu1 %v2996_v7 }
 0x737   :  { %1150 = vmatpush.bf16.msra.mxu0 %v2999_v11  ;;  %1163 = vmatpush.bf16.msra.mxu1 %v3002_v15 }
 0x73b   :  { %1151 = vmatpush.bf16.msra.mxu0 %v3005_v25  ;;  %1164 = vmatpush.bf16.msra.mxu1 %v3008_v29 }
 0x73f   :  { %1152 = vmatpush.bf16.msra.mxu0 %v3011_v36  ;;  %1165 = vmatpush.bf16.msra.mxu1 %v3015_v37 }
 0x7af   :  { %v630_v43 = vpop.f32.mrf.mxu0  ;;  %v643_v49 = vpop.f32.mrf.mxu1 }
 0x7b0   :  { %v648_v8 = vrot.slane %v630_v43, 5  ;;  %v692_v9 = vrot.slane %v643_v49, 4 }
 0x7b2   :  { %v650_v3 = vadd.f32 %v648_v8, %v3058_v51  ;;  %v694_v7 = vadd.f32 %v692_v9, %v3055_v45 }
 0x7b4   :  { %2526 = vtanh.f32 %v650_v3  ;;  %v2368_v29 = vmul.f32 -1.442695, %v650_v3  ;;  %v2369_v36 = vmul.f32 -1.442695, %v694_v7 }
 0x7b5   :  { %2528 = vtanh.f32 %v694_v7 }
 0x7b6   :  { %2530 = vpow2.f32 %v2368_v29 }
 0x7b7   :  { %v632_v11 = vpop.f32.mrf.mxu0  ;;  %v645_v15 = vpop.f32.mrf.mxu1  ;;  %2532 = vpow2.f32 %v2369_v36 }
 0x7ba   :  { %v2527_v10 = vpop.eup %2526 }
 0x7bb   :  { %v2529_v25 = vpop.eup %2528  ;;  %676 = vrot.lane.b32.xlu1 %v2527_v10, %s2914_s14 }
 0x7bc   :  { %720 = vrot.lane.b32.xlu0 %v2529_v25, %s2914_s14  ;;  %v2531_v37 = vpop.eup %2530 }
 0x7bd   :  { %v2533_v12 = vpop.eup %2532  ;;  %v654_v13 = vadd.f32 1.0, %v2531_v37 }
 0x7be   :  { %v698_v14 = vadd.f32 1.0, %v2533_v12 }
 0x7bf   :  { %2534 = vrcp.f32 %v654_v13  ;;  %v666_v27 = vand.u32 2147483648, %v654_v13  ;;  %vm660_vm1 = vweird.f32 %v654_v13  ;;  %v664_v30 = vand.u32 2147483647, %v654_v13 }
 0x7c0   :  { %2536 = vrcp.f32 %v698_v14  ;;  %v710_v28 = vand.u32 2147483648, %v698_v14  ;;  %vm704_vm2 = vweird.f32 %v698_v14  ;;  %v708_v32 = vand.u32 2147483647, %v698_v14 }
 0x7c1   :  { %v667_v38 = vor.u32 1.1754944e-38, %v666_v27  ;;  %vm665_vm5 = vcmp.eq.f32.partialorder %v664_v30, 8.507059e+37 }
 0x7c2   :  { %v711_v39 = vor.u32 1.1754944e-38, %v710_v28  ;;  %vm709_vm6 = vcmp.eq.f32.partialorder %v708_v32, 8.507059e+37 }
 0x7c5   :  { %v2535_v16 = vpop.eup %2534 }
 0x7c6   :  { %v2537_v17 = vpop.eup %2536  ;;  %v656_v18 = vmul.f32 %v2535_v16, %v654_v13  ;;  %vm661_vm14 = vweird.f32 %v2535_v16 }
 0x7c7   :  { %v700_v19 = vmul.f32 %v2537_v17, %v698_v14  ;;  %vm705_vm15 = vweird.f32 %v2537_v17  ;;  %vm662_vm3 = vmor %vm660_vm1, %vm661_vm14 }
 0x7c8   :  { %v657_v20 = vsub.f32 1.0, %v656_v18  ;;  %vm706_vm4 = vmor %vm704_vm2, %vm705_vm15 }
 0x7c9   :  { %v701_v21 = vsub.f32 1.0, %v700_v19 }
 0x7ca   :  { %v658_v22 = vmul.f32 %v2535_v16, %v657_v20 }
 0x7cb   :  { %v702_v23 = vmul.f32 %v2537_v17, %v701_v21 }
 0x7cc   :  { %v659_v24 = vadd.f32 %v2535_v16, %v658_v22 }
 0x7cd   :  { %v703_v26 = vadd.f32 %v2537_v17, %v702_v23 }
 0x7ce   :  { %v663_v33 = vsel %vm662_vm3, %v2535_v16, %v659_v24 }
 0x7cf   :  { %v707_v34 = vsel %vm706_vm4, %v2537_v17, %v703_v26  ;;  %v668_v42 = vsel %vm665_vm5, %v667_v38, %v663_v33  ;;  %vm1262_vm4 = vcmask 1043456  }
 0x7d0   :  { %v712_v48 = vsel %vm709_vm6, %v711_v39, %v707_v34  ;;  %v674_v44 = vmul.f32 %v672_v59, %v668_v42 }
 0x7d1   :  { %v718_v54 = vmul.f32 %v716_v52, %v712_v48 }
 0x82d   :  { %v677_v41 = vpop.permute.xlu1 %676 }
 0x82e   :  { %v721_v47 = vpop.permute.xlu0 %720  ;;  %v679_v35 = vmul.f32 %v677_v41, %v668_v42 }
 0x82f   :  { %v723_v31 = vmul.f32 %v721_v47, %v712_v48 }
 0x830   :  { %681 = vrot.lane.b32.xlu0 %v679_v35, %s2918_s3 }
 0x831   :  { %725 = vrot.lane.b32.xlu2 %v723_v31, %s2918_s3 }
 0x88b   :  { %v726_v55 = vpop.permute.xlu2 %725 }
 0x88c   :  { %v3172_v56 = vadd.f32 %v726_v55, %v718_v54 }
 0x88e   :  { %2538 = vtanh.f32 %v3172_v56  ;;  %v848_v59 = vrot.slane %v3172_v56, 1 }
 0x894   :  { %v2539_v57 = vpop.eup %2538 }
 0x895   :  { %731 = vrot.lane.b32.xlu1 %v2539_v57, %s2914_s14 }
 0x8a2   :  { %v682_v60 = vpop.permute.xlu0 %681 }
 0x8a3   :  { %v3177_v61 = vadd.f32 %v682_v60, %v674_v44 }
 0x8a5   :  { %2540 = vtanh.f32 %v3177_v61  ;;  %v804_v57 = vrot.slane %v3177_v61, 7 }
 0x8ab   :  { %v2541_v62 = vpop.eup %2540 }
 0x8ac   :  { %687 = vrot.lane.b32.xlu2 %v2541_v62, %s2914_s14 }
 0x906   :  { %v688_v58 = vpop.permute.xlu2 %687 }
 0x907   :  { %v732_v0 = vpop.permute.xlu1 %731  ;;  %v690_v1 = vmul.f32 %v688_v58, %v668_v42 }
 0x908   :  { %v3181_v2 = vmul.f32 %v732_v0, %v712_v48 }
 0x909   :  { %v3185_v4 = vsel %vm1260_vm7, %v3149_v46, %v690_v1  ;;  %736 = vrot.lane.b32.xlu0 %v690_v1, %s2918_s3 }
 0x90a   :  { %v740_v53 = vrot.slane %v3181_v2, 1 }
 0x90c   :  { %741 = vrot.lane.b32.xlu1 %v740_v53, %s2914_s14 }
 0x97b   :  { %v737_v5 = vpop.permute.xlu0 %736 }
 0x97e   :  { %v742_v6 = vpop.permute.xlu1 %741 }
 0x97f   :  { %v744_v43 = vsel %vm158_vm0, %v737_v5, %v742_v6 }
 0x980   :  { %v745_v49 = vpack.c.bf16 %v744_v43, %v744_v43 }
 0x982   :  { %v747_v8 = vshrl.u32 %v745_v49, 16 }
 0x984   :  { %v749_v9 = vrot.slane %v747_v8, 1 }
 0x986   :  { %2370 = vmatmul.msk.bf16.vlgmr.msra.gmra.mxu2 %vm237_vm9, %v749_v9  ;;  %2371 = vmatmul.msk.bf16.vlgmr.msra.gmra.mxu3 %vm237_vm9, %v749_v9 }
 0xa09   :  { %v762_v3 = vpop.f32.mrf.mxu2  ;;  %v775_v46 = vpop.f32.mrf.mxu3 }
 0xa0a   :  { %v780_v7 = vrot.slane %v762_v3, 4  ;;  %v824_v11 = vrot.slane %v775_v46, 5 }
 0xa0c   :  { %v782_v15 = vadd.f32 %v780_v7, %v3058_v51  ;;  %v826_v10 = vadd.f32 %v824_v11, %v3055_v45 }
 0xa0e   :  { %2542 = vtanh.f32 %v782_v15  ;;  %v2373_v12 = vmul.f32 -1.442695, %v826_v10  ;;  %v2372_v17 = vmul.f32 -1.442695, %v782_v15 }
 0xa0f   :  { %2544 = vtanh.f32 %v826_v10 }
 0xa10   :  { %2546 = vpow2.f32 %v2373_v12 }
 0xa11   :  { %v764_v25 = vpop.f32.mrf.mxu2  ;;  %v777_v29 = vpop.f32.mrf.mxu3 }
 0xa14   :  { %v2543_v36 = vpop.eup %2542 }
 0xa15   :  { %v2545_v37 = vpop.eup %2544  ;;  %808 = vrot.lane.b32.xlu0 %v2543_v36, %s2914_s14 }
 0xa16   :  { %852 = vrot.lane.b32.xlu2 %v2545_v37, %s2914_s14  ;;  %v2547_v13 = vpop.eup %2546 }
 0xa17   :  { %v830_v14 = vadd.f32 1.0, %v2547_v13 }
 0xa19   :  { %2548 = vrcp.f32 %v830_v14  ;;  %v842_v24 = vand.u32 2147483648, %v830_v14  ;;  %vm836_vm10 = vweird.f32 %v830_v14  ;;  %v840_v26 = vand.u32 2147483647, %v830_v14 }
 0xa1a   :  { %2550 = vpow2.f32 %v2372_v17 }
 0xa1b   :  { %v843_v28 = vor.u32 1.1754944e-38, %v842_v24  ;;  %vm841_vm14 = vcmp.eq.f32.partialorder %v840_v26, 8.507059e+37 }
 0xa1f   :  { %v2549_v16 = vpop.eup %2548 }
 0xa20   :  { %v832_v18 = vmul.f32 %v2549_v16, %v830_v14  ;;  %v2551_v20 = vpop.eup %2550  ;;  %vm837_vm8 = vweird.f32 %v2549_v16 }
 0xa21   :  { %v786_v22 = vadd.f32 1.0, %v2551_v20  ;;  %vm838_vm11 = vmor %vm836_vm10, %vm837_vm8 }
 0xa22   :  { %v833_v19 = vsub.f32 1.0, %v832_v18 }
 0xa23   :  { %2552 = vrcp.f32 %v786_v22  ;;  %v798_v47 = vand.u32 2147483648, %v786_v22  ;;  %vm792_vm1 = vweird.f32 %v786_v22  ;;  %v796_v48 = vand.u32 2147483647, %v786_v22 }
 0xa24   :  { %v834_v21 = vmul.f32 %v2549_v16, %v833_v19 }
 0xa25   :  { %v799_v31 = vor.u32 1.1754944e-38, %v798_v47  ;;  %vm797_vm3 = vcmp.eq.f32.partialorder %v796_v48, 8.507059e+37 }
 0xa26   :  { %v835_v23 = vadd.f32 %v2549_v16, %v834_v21 }
 0xa28   :  { %v839_v27 = vsel %vm838_vm11, %v2549_v16, %v835_v23 }
 0xa29   :  { %v844_v32 = vsel %vm841_vm14, %v843_v28, %v839_v27  ;;  %v2553_v33 = vpop.eup %2552 }
 0xa2a   :  { %v788_v38 = vmul.f32 %v2553_v33, %v786_v22  ;;  %vm793_vm15 = vweird.f32 %v2553_v33  ;;  %v850_v60 = vmul.f32 %v848_v59, %v844_v32 }
 0xa2b   :  { %vm794_vm2 = vmor %vm792_vm1, %vm793_vm15 }
 0xa2c   :  { %v789_v39 = vsub.f32 1.0, %v788_v38 }
 0xa2e   :  { %v790_v41 = vmul.f32 %v2553_v33, %v789_v39 }
 0xa30   :  { %v791_v42 = vadd.f32 %v2553_v33, %v790_v41 }
 0xa32   :  { %v795_v35 = vsel %vm794_vm2, %v2553_v33, %v791_v42  ;;  %vm1264_vm2 = vcmask 1044480  }
 0xa33   :  { %v800_v54 = vsel %vm797_vm3, %v799_v31, %v795_v35 }
 0xa34   :  { %v806_v44 = vmul.f32 %v804_v57, %v800_v54 }
 0xa70   :  { %v853_v30 = vpop.permute.xlu2 %852 }
 0xa71   :  { %v855_v34 = vmul.f32 %v853_v30, %v844_v32 }
 0xa73   :  { %857 = vrot.lane.b32.xlu1 %v855_v34, %s2918_s3 }
 0xa87   :  { %v809_v52 = vpop.permute.xlu0 %808 }
 0xa88   :  { %v811_v55 = vmul.f32 %v809_v52, %v800_v54 }
 0xa8a   :  { %813 = vrot.lane.b32.xlu2 %v811_v55, %s2918_s3 }
 0xae4   :  { %v814_v62 = vpop.permute.xlu2 %813 }
 0xae5   :  { %v858_v58 = vpop.permute.xlu1 %857  ;;  %v3201_v0 = vadd.f32 %v814_v62, %v806_v44 }
 0xae6   :  { %v3203_v1 = vadd.f32 %v858_v58, %v850_v60 }
 0xae7   :  { %2554 = vtanh.f32 %v3201_v0  ;;  %v934_v60 = vrot.slane %v3201_v0, 7 }
 0xae8   :  { %2556 = vtanh.f32 %v3203_v1 }
 0xaed   :  { %v2555_v53 = vpop.eup %2554 }
 0xaee   :  { %v2557_v5 = vpop.eup %2556  ;;  %819 = vrot.lane.b32.xlu1 %v2555_v53, %s2914_s14 }
 0xaef   :  { %863 = vrot.lane.b32.xlu0 %v2557_v5, %s2914_s14 }
 0xb60   :  { %v820_v56 = vpop.permute.xlu1 %819 }
 0xb61   :  { %v864_v61 = vpop.permute.xlu0 %863  ;;  %v822_v6 = vmul.f32 %v820_v56, %v800_v54  ;;  %v978_v56 = vrot.slane %v3203_v1, 1 }
 0xb62   :  { %v3209_v43 = vmul.f32 %v864_v61, %v844_v32 }
 0xb63   :  { %v3213_v49 = vsel %vm1262_vm4, %v3185_v4, %v822_v6  ;;  %868 = vrot.lane.b32.xlu2 %v822_v6, %s2918_s3 }
 0xb64   :  { %v872_v8 = vrot.slane %v3209_v43, 7 }
 0xb66   :  { %873 = vrot.lane.b32.xlu0 %v872_v8, %s2914_s14 }
 0xbbd   :  { %v869_v9 = vpop.permute.xlu2 %868 }
 0xbd8   :  { %v874_v3 = vpop.permute.xlu0 %873 }
 0xbd9   :  { %v876_v46 = vsel %vm158_vm0, %v869_v9, %v874_v3 }
 0xbda   :  { %v877_v7 = vpack.c.bf16 %v876_v46, %v876_v46 }
 0xbdc   :  { %v879_v11 = vrot.slane %v877_v7, 2 }
 0xbde   :  { %2374 = vmatmul.msk.bf16.vlgmr.msrb.gmra.mxu0 %vm237_vm9, %v879_v11  ;;  %2375 = vmatmul.msk.bf16.vlgmr.msrb.gmra.mxu1 %vm237_vm9, %v879_v11 }
 0xc5b   :  { %v892_v15 = vpop.f32.mrf.mxu0  ;;  %v905_v10 = vpop.f32.mrf.mxu1 }
 0xc5c   :  { %v910_v4 = vrot.slane %v892_v15, 3  ;;  %v954_v25 = vrot.slane %v905_v10, 6 }
 0xc5e   :  { %v912_v29 = vadd.f32 %v910_v4, %v3058_v51  ;;  %v956_v36 = vadd.f32 %v954_v25, %v3055_v45 }
 0xc60   :  { %2558 = vtanh.f32 %v912_v29  ;;  %v2376_v16 = vmul.f32 -1.442695, %v912_v29  ;;  %v2377_v20 = vmul.f32 -1.442695, %v956_v36 }
 0xc61   :  { %2560 = vtanh.f32 %v956_v36 }
 0xc62   :  { %2562 = vpow2.f32 %v2376_v16 }
 0xc63   :  { %v894_v37 = vpop.f32.mrf.mxu0  ;;  %v907_v12 = vpop.f32.mrf.mxu1 }
 0xc66   :  { %v2559_v13 = vpop.eup %2558 }
 0xc67   :  { %v2561_v14 = vpop.eup %2560  ;;  %938 = vrot.lane.b32.xlu2 %v2559_v13, %s2914_s14 }
 0xc68   :  { %982 = vrot.lane.b32.xlu1 %v2561_v14, %s2914_s14  ;;  %v2563_v17 = vpop.eup %2562 }
 0xc69   :  { %v916_v18 = vadd.f32 1.0, %v2563_v17 }
 0xc6b   :  { %2564 = vrcp.f32 %v916_v18  ;;  %v928_v28 = vand.u32 2147483648, %v916_v18  ;;  %vm922_vm6 = vweird.f32 %v916_v18  ;;  %v926_v30 = vand.u32 2147483647, %v916_v18 }
 0xc6c   :  { %2566 = vpow2.f32 %v2377_v20 }
 0xc6d   :  { %v929_v33 = vor.u32 1.1754944e-38, %v928_v28  ;;  %vm927_vm10 = vcmp.eq.f32.partialorder %v926_v30, 8.507059e+37 }
 0xc71   :  { %v2565_v19 = vpop.eup %2564 }
 0xc72   :  { %v918_v21 = vmul.f32 %v2565_v19, %v916_v18  ;;  %v2567_v24 = vpop.eup %2566  ;;  %vm923_vm5 = vweird.f32 %v2565_v19 }
 0xc73   :  { %v960_v26 = vadd.f32 1.0, %v2567_v24  ;;  %vm924_vm8 = vmor %vm922_vm6, %vm923_vm5 }
 0xc74   :  { %v919_v22 = vsub.f32 1.0, %v918_v21 }
 0xc75   :  { %2568 = vrcp.f32 %v960_v26  ;;  %v972_v31 = vand.u32 2147483648, %v960_v26  ;;  %vm966_vm14 = vweird.f32 %v960_v26  ;;  %v970_v52 = vand.u32 2147483647, %v960_v26 }
 0xc76   :  { %v920_v23 = vmul.f32 %v2565_v19, %v919_v22 }
 0xc77   :  { %v973_v55 = vor.u32 1.1754944e-38, %v972_v31  ;;  %vm971_vm1 = vcmp.eq.f32.partialorder %v970_v52, 8.507059e+37 }
 0xc78   :  { %v921_v27 = vadd.f32 %v2565_v19, %v920_v23 }
 0xc7a   :  { %v925_v32 = vsel %vm924_vm8, %v2565_v19, %v921_v27 }
 0xc7b   :  { %v930_v38 = vsel %vm927_vm10, %v929_v33, %v925_v32  ;;  %v2569_v41 = vpop.eup %2568 }
 0xc7c   :  { %v962_v42 = vmul.f32 %v2569_v41, %v960_v26  ;;  %vm967_vm11 = vweird.f32 %v2569_v41  ;;  %v936_v62 = vmul.f32 %v934_v60, %v930_v38 }
 0xc7d   :  { %vm968_vm15 = vmor %vm966_vm14, %vm967_vm11 }
 0xc7e   :  { %v963_v47 = vsub.f32 1.0, %v962_v42 }
 0xc80   :  { %v964_v48 = vmul.f32 %v2569_v41, %v963_v47 }
 0xc82   :  { %v965_v35 = vadd.f32 %v2569_v41, %v964_v48 }
 0xc84   :  { %v969_v54 = vsel %vm968_vm15, %v2569_v41, %v965_v35 }
 0xc85   :  { %v974_v59 = vsel %vm971_vm1, %v973_v55, %v969_v54  ;;  %vm1266_vm1 = vcmask 1045504  }
 0xc86   :  { %v980_v61 = vmul.f32 %v978_v56, %v974_v59 }
 0xcc1   :  { %v939_v34 = vpop.permute.xlu2 %938 }
 0xcc2   :  { %v941_v39 = vmul.f32 %v939_v34, %v930_v38 }
 0xcc4   :  { %943 = vrot.lane.b32.xlu1 %v941_v39, %s2918_s3 }
 0xcda   :  { %v983_v57 = vpop.permute.xlu1 %982 }
 0xcdb   :  { %v985_v44 = vmul.f32 %v983_v57, %v974_v59 }
 0xcdd   :  { %987 = vrot.lane.b32.xlu0 %v985_v44, %s2918_s3 }
 0xd36   :  { %v944_v58 = vpop.permute.xlu1 %943 }
 0xd37   :  { %v3228_v53 = vadd.f32 %v944_v58, %v936_v62 }
 0xd39   :  { %2570 = vtanh.f32 %v3228_v53 }
 0xd3f   :  { %v2571_v5 = vpop.eup %2570 }
 0xd40   :  { %949 = vrot.lane.b32.xlu0 %v2571_v5, %s2914_s14 }
 0xd4f   :  { %v988_v6 = vpop.permute.xlu0 %987 }
 0xd50   :  { %v3233_v8 = vadd.f32 %v988_v6, %v980_v61 }
 0xd52   :  { %2572 = vtanh.f32 %v3233_v8  ;;  %v1110_v61 = vrot.slane %v3233_v8, 1 }
 0xd58   :  { %v2573_v9 = vpop.eup %2572 }
 0xd59   :  { %993 = vrot.lane.b32.xlu2 %v2573_v9, %s2914_s14 }
 0xdb2   :  { %v950_v0 = vpop.permute.xlu0 %949 }
 0xdb3   :  { %v994_v3 = vpop.permute.xlu2 %993  ;;  %v952_v46 = vmul.f32 %v950_v0, %v930_v38 }
 0xdb4   :  { %v3237_v7 = vmul.f32 %v994_v3, %v974_v59 }
 0xdb5   :  { %v3241_v11 = vsel %vm1264_vm2, %v3213_v49, %v952_v46  ;;  %998 = vrot.lane.b32.xlu1 %v952_v46, %s2918_s3  ;;  %v1066_v46 = vrot.slane %v3228_v53, 7 }
 0xdb6   :  { %v1002_v1 = vrot.slane %v3237_v7, 5 }
 0xdb8   :  { %1003 = vrot.lane.b32.xlu2 %v1002_v1, %s2914_s14 }
 0xe12   :  { %v1004_v15 = vpop.permute.xlu2 %1003 }
 0xe27   :  { %v999_v10 = vpop.permute.xlu1 %998 }
 0xe28   :  { %v1006_v4 = vsel %vm158_vm0, %v999_v10, %v1004_v15 }
 0xe29   :  { %v1007_v25 = vpack.c.bf16 %v1006_v4, %v1006_v4 }
 0xe2b   :  { %v1009_v29 = vshrl.u32 %v1007_v25, 16 }
 0xe2d   :  { %v1011_v36 = vrot.slane %v1009_v29, 2 }
 0xe2f   :  { %2378 = vmatmul.msk.bf16.vlgmr.msrb.gmra.mxu2 %vm237_vm9, %v1011_v36  ;;  %2379 = vmatmul.msk.bf16.vlgmr.msrb.gmra.mxu3 %vm237_vm9, %v1011_v36 }
 0xeb2   :  { %v1024_v37 = vpop.f32.mrf.mxu2  ;;  %v1037_v49 = vpop.f32.mrf.mxu3 }
 0xeb3   :  { %v1042_v12 = vrot.slane %v1024_v37, 2  ;;  %v1086_v13 = vrot.slane %v1037_v49, 7 }
 0xeb5   :  { %v1044_v14 = vadd.f32 %v1042_v12, %v3058_v51  ;;  %v1088_v16 = vadd.f32 %v1086_v13, %v3055_v45 }
 0xeb7   :  { %2574 = vtanh.f32 %v1044_v14  ;;  %v2380_v21 = vmul.f32 -1.442695, %v1044_v14  ;;  %v2381_v22 = vmul.f32 -1.442695, %v1088_v16 }
 0xeb8   :  { %2576 = vtanh.f32 %v1088_v16 }
 0xeb9   :  { %2578 = vpow2.f32 %v2380_v21 }
 0xeba   :  { %v1026_v17 = vpop.f32.mrf.mxu2  ;;  %v1039_v18 = vpop.f32.mrf.mxu3  ;;  %2580 = vpow2.f32 %v2381_v22 }
 0xebd   :  { %v2575_v19 = vpop.eup %2574 }
 0xebe   :  { %v2577_v20 = vpop.eup %2576  ;;  %1070 = vrot.lane.b32.xlu1 %v2575_v19, %s2914_s14 }
 0xebf   :  { %1114 = vrot.lane.b32.xlu0 %v2577_v20, %s2914_s14  ;;  %v2579_v23 = vpop.eup %2578 }
 0xec0   :  { %v2581_v24 = vpop.eup %2580  ;;  %v1048_v26 = vadd.f32 1.0, %v2579_v23 }
 0xec1   :  { %v1092_v27 = vadd.f32 1.0, %v2581_v24 }
 0xec2   :  { %2582 = vrcp.f32 %v1048_v26  ;;  %v1060_v48 = vand.u32 2147483648, %v1048_v26  ;;  %vm1054_vm6 = vweird.f32 %v1048_v26  ;;  %v1058_v31 = vand.u32 2147483647, %v1048_v26 }
 0xec3   :  { %2584 = vrcp.f32 %v1092_v27  ;;  %v1104_v35 = vand.u32 2147483648, %v1092_v27  ;;  %vm1098_vm8 = vweird.f32 %v1092_v27  ;;  %v1102_v52 = vand.u32 2147483647, %v1092_v27 }
 0xec4   :  { %v1061_v57 = vor.u32 1.1754944e-38, %v1060_v48  ;;  %vm1059_vm14 = vcmp.eq.f32.partialorder %v1058_v31, 8.507059e+37 }
 0xec5   :  { %v1105_v59 = vor.u32 1.1754944e-38, %v1104_v35  ;;  %vm1103_vm15 = vcmp.eq.f32.partialorder %v1102_v52, 8.507059e+37 }
 0xec8   :  { %v2583_v28 = vpop.eup %2582 }
 0xec9   :  { %v2585_v30 = vpop.eup %2584  ;;  %v1050_v32 = vmul.f32 %v2583_v28, %v1048_v26  ;;  %vm1055_vm3 = vweird.f32 %v2583_v28 }
 0xeca   :  { %v1094_v33 = vmul.f32 %v2585_v30, %v1092_v27  ;;  %vm1099_vm5 = vweird.f32 %v2585_v30  ;;  %vm1056_vm10 = vmor %vm1054_vm6, %vm1055_vm3 }
 0xecb   :  { %v1051_v34 = vsub.f32 1.0, %v1050_v32  ;;  %vm1100_vm11 = vmor %vm1098_vm8, %vm1099_vm5 }
 0xecc   :  { %v1095_v38 = vsub.f32 1.0, %v1094_v33 }
 0xecd   :  { %v1052_v39 = vmul.f32 %v2583_v28, %v1051_v34 }
 0xece   :  { %v1096_v41 = vmul.f32 %v2585_v30, %v1095_v38 }
 0xecf   :  { %v1053_v42 = vadd.f32 %v2583_v28, %v1052_v39 }
 0xed0   :  { %v1097_v47 = vadd.f32 %v2585_v30, %v1096_v41 }
 0xed1   :  { %v1057_v54 = vsel %vm1056_vm10, %v2583_v28, %v1053_v42 }
 0xed2   :  { %v1101_v55 = vsel %vm1100_vm11, %v2585_v30, %v1097_v47  ;;  %v1062_v60 = vsel %vm1059_vm14, %v1061_v57, %v1057_v54 }
 0xed3   :  { %v1106_v58 = vsel %vm1103_vm15, %v1105_v59, %v1101_v55  ;;  %v1068_v1 = vmul.f32 %v1066_v46, %v1062_v60 }
 0xed4   :  { %v1112_v6 = vmul.f32 %v1110_v61, %v1106_v58 }
 0xf30   :  { %v1071_v44 = vpop.permute.xlu1 %1070 }
 0xf31   :  { %v1115_v62 = vpop.permute.xlu0 %1114  ;;  %v1073_v5 = vmul.f32 %v1071_v44, %v1062_v60 }
 0xf32   :  { %v1117_v56 = vmul.f32 %v1115_v62, %v1106_v58 }
 0xf33   :  { %1075 = vrot.lane.b32.xlu0 %v1073_v5, %s2918_s3 }
 0xf34   :  { %1119 = vrot.lane.b32.xlu2 %v1117_v56, %s2918_s3 }
 0xf8e   :  { %v1120_v9 = vpop.permute.xlu2 %1119 }
 0xf8f   :  { %v3256_v0 = vadd.f32 %v1120_v9, %v1112_v6 }
 0xf91   :  { %2586 = vtanh.f32 %v3256_v0  ;;  %v1237_v9 = vrot.slane %v3256_v0, 1 }
 0xf97   :  { %v2587_v3 = vpop.eup %2586 }
 0xf98   :  { %1125 = vrot.lane.b32.xlu1 %v2587_v3, %s2914_s14 }
 0xfa5   :  { %v1076_v15 = vpop.permute.xlu0 %1075 }
 0xfa6   :  { %v3261_v10 = vadd.f32 %v1076_v15, %v1068_v1 }
 0xfa8   :  { %2588 = vtanh.f32 %v3261_v10  ;;  %v1196_v3 = vrot.slane %v3261_v10, 7 }
 0xfae   :  { %v2589_v4 = vpop.eup %2588 }
 0xfaf   :  { %1081 = vrot.lane.b32.xlu2 %v2589_v4, %s2914_s14 }
0x1009   :  { %v1082_v8 = vpop.permute.xlu2 %1081 }
0x100a   :  { %v1126_v25 = vpop.permute.xlu1 %1125  ;;  %v1084_v29 = vmul.f32 %v1082_v8, %v1062_v60 }
0x100b   :  { %v3265_v36 = vmul.f32 %v1126_v25, %v1106_v58 }
0x100c   :  { %1130 = vrot.lane.b32.xlu0 %v1084_v29, %s2918_s3  ;;  %v3270_v53 = vsel %vm1266_vm1, %v3241_v11, %v1084_v29 }
0x100d   :  { %v1134_v37 = vrot.slane %v3265_v36, 3 }
0x100f   :  { %1135 = vrot.lane.b32.xlu1 %v1134_v37, %s2914_s14 }
0x107e   :  { %v1131_v49 = vpop.permute.xlu0 %1130 }
0x1081   :  { %v1136_v12 = vpop.permute.xlu1 %1135 }
0x1082   :  { %v1138_v13 = vsel %vm158_vm0, %v1131_v49, %v1136_v12 }
0x1083   :  { %v1139_v14 = vpack.c.bf16 %v1138_v13, %v1138_v13 }
0x1085   :  { %v1141_v16 = vrot.slane %v1139_v14, 3 }
0x1087   :  { %2382 = vmatmul.msk.bf16.vlgmr.msra.gmra.mxu0 %vm237_vm9, %v1141_v16  ;;  %2383 = vmatmul.msk.bf16.vlgmr.msra.gmra.mxu1 %vm237_vm9, %v1141_v16 }
0x1104   :  { %v1154_v17 = vpop.f32.mrf.mxu0  ;;  %v1167_v18 = vpop.f32.mrf.mxu1 }
0x1105   :  { %v1172_v19 = vrot.slane %v1154_v17, 1  ;;  %v1215_v11 = vadd.f32 %v1167_v18, %v3055_v45 }
0x1107   :  { %v1174_v20 = vadd.f32 %v1172_v19, %v3058_v51  ;;  %2590 = vtanh.f32 %v1215_v11  ;;  %v2385_v26 = vmul.f32 -1.442695, %v1215_v11 }
0x1109   :  { %2592 = vtanh.f32 %v1174_v20  ;;  %v2384_v32 = vmul.f32 -1.442695, %v1174_v20  ;;  %v2702_v20 = vld [vmem:[#allocation2] sm:$0xff] }
0x110a   :  { %2594 = vpow2.f32 %v2385_v26  ;;  %v3320_v26 = vld [vmem:[#allocation11] sm:$0xff] }
0x110c   :  { %v1156_v21 = vpop.f32.mrf.mxu0  ;;  %v1169_v22 = vpop.f32.mrf.mxu1 }
0x110d   :  { %v2591_v23 = vpop.eup %2590 }
0x110e   :  { %1241 = vrot.lane.b32.xlu2 %v2591_v23, %s2914_s14  ;;  %v3315_v23 = vld [vmem:[#allocation11 + $0x8] sm:$0xff] }
0x110f   :  { %v2593_v24 = vpop.eup %2592 }
0x1110   :  { %1200 = vrot.lane.b32.xlu0 %v2593_v24, %s2914_s14  ;;  %v2595_v27 = vpop.eup %2594  ;;  %v2459_v24 = vld [vmem:[#allocation10] sm:$0xff] }
0x1111   :  { %v1219_v28 = vadd.f32 1.0, %v2595_v27  ;;  %v125_v27 = vld [vmem:[#allocation5] sm:$0xf] }
0x1113   :  { %2596 = vrcp.f32 %v1219_v28  ;;  %v1231_v41 = vand.u32 2147483648, %v1219_v28  ;;  %vm1225_vm5 = vweird.f32 %v1219_v28  ;;  %v1229_v42 = vand.u32 2147483647, %v1219_v28 }
0x1114   :  { %2598 = vpow2.f32 %v2384_v32 }
0x1115   :  { %v1232_v48 = vor.u32 1.1754944e-38, %v1231_v41  ;;  %vm1230_vm8 = vcmp.eq.f32.partialorder %v1229_v42, 8.507059e+37 }
0x1119   :  { %v2597_v30 = vpop.eup %2596 }
0x111a   :  { %v1221_v45 = vmul.f32 %v2597_v30, %v1219_v28  ;;  %v2599_v34 = vpop.eup %2598  ;;  %vm1226_vm3 = vweird.f32 %v2597_v30  ;;  %v127_v28 = vpack.c.bf16 %v125_v27, %v125_v27 }
0x111b   :  { %v1178_v39 = vadd.f32 1.0, %v2599_v34  ;;  %vm1227_vm6 = vmor %vm1225_vm5, %vm1226_vm3  ;;  %vm1268_vm3 = vcmask 1046528  }
0x111c   :  { %v1222_v51 = vsub.f32 1.0, %v1221_v45 }
0x111d   :  { %2600 = vrcp.f32 %v1178_v39  ;;  %v1190_v60 = vand.u32 2147483648, %v1178_v39  ;;  %vm1184_vm11 = vweird.f32 %v1178_v39  ;;  %v1188_v62 = vand.u32 2147483647, %v1178_v39 }
0x111e   :  { %v1223_v33 = vmul.f32 %v2597_v30, %v1222_v51 }
0x111f   :  { %v1191_v5 = vor.u32 1.1754944e-38, %v1190_v60  ;;  %vm1189_vm15 = vcmp.eq.f32.partialorder %v1188_v62, 8.507059e+37 }
0x1120   :  { %v1224_v38 = vadd.f32 %v2597_v30, %v1223_v33 }
0x1122   :  { %v1228_v47 = vsel %vm1227_vm6, %v2597_v30, %v1224_v38 }
0x1123   :  { %v1233_v31 = vsel %vm1230_vm8, %v1232_v48, %v1228_v47  ;;  %v2601_v54 = vpop.eup %2600 }
0x1124   :  { %v1180_v55 = vmul.f32 %v2601_v54, %v1178_v39  ;;  %vm1185_vm10 = vweird.f32 %v2601_v54  ;;  %v1239_v46 = vmul.f32 %v1237_v9, %v1233_v31 }
0x1125   :  { %vm1186_vm14 = vmor %vm1184_vm11, %vm1185_vm10 }
0x1126   :  { %v1181_v57 = vsub.f32 1.0, %v1180_v55 }
0x1128   :  { %v1182_v59 = vmul.f32 %v2601_v54, %v1181_v57 }
0x112a   :  { %v1183_v44 = vadd.f32 %v2601_v54, %v1182_v59 }
0x112c   :  { %v1187_v58 = vsel %vm1186_vm14, %v2601_v54, %v1183_v44 }
0x112d   :  { %v1192_v61 = vsel %vm1189_vm15, %v1191_v5, %v1187_v58 }
0x112e   :  { %v1198_v4 = vmul.f32 %v1196_v3, %v1192_v61 }
0x1168   :  { %v1242_v35 = vpop.permute.xlu2 %1241 }
0x1169   :  { %v1244_v52 = vmul.f32 %v1242_v35, %v1233_v31 }
0x116b   :  { %1246 = vrot.lane.b32.xlu1 %v1244_v52, %s2918_s3 }
0x1182   :  { %v1201_v56 = vpop.permute.xlu0 %1200 }
0x1183   :  { %v1203_v6 = vmul.f32 %v1201_v56, %v1192_v61 }
0x1185   :  { %1205 = vrot.lane.b32.xlu2 %v1203_v6, %s2918_s3 }
0x11dd   :  { %v1247_v1 = vpop.permute.xlu1 %1246 }
0x11de   :  { %v1249_v15 = vadd.f32 %v1247_v1, %v1239_v46 }
0x11df   :  { %v1206_v8 = vpop.permute.xlu2 %1205 }
0x11e0   :  { %2602 = vtanh.f32 %v1249_v15  ;;  %v1208_v25 = vadd.f32 %v1206_v8, %v1198_v4 }
0x11e2   :  { %2604 = vtanh.f32 %v1208_v25 }
0x11e6   :  { %v2603_v29 = vpop.eup %2602 }
0x11e7   :  { %1252 = vrot.lane.b32.xlu0 %v2603_v29, %s2914_s14 }
0x11e8   :  { %v2605_v37 = vpop.eup %2604 }
0x11e9   :  { %1211 = vrot.lane.b32.xlu1 %v2605_v37, %s2914_s14 }
0x1259   :  { %v1253_v49 = vpop.permute.xlu0 %1252 }
0x125a   :  { %v1255_v12 = vmul.f32 %v1253_v49, %v1233_v31 }
0x125b   :  { %v1212_v13 = vpop.permute.xlu1 %1211 }
0x125c   :  { %v1275_v0 = vsel %vm1256_vm12, %v1255_v12, %v3265_v36  ;;  %v1214_v10 = vmul.f32 %v1212_v13, %v1192_v61  ;;  %vm1380_vm12 = vcmask 60416   ;;  %v2477_v61 = vld [vmem:[%s3528_s7] ss:$0 sm:$0xff]  ;;  %s2920_s7 = smov [#allocation13]  }
0x125d   :  { %v1276_v14 = vsel %vm1258_vm13, %v1275_v0, %v3237_v7  ;;  %vm1393_vm13 = vcmask 64512   ;;  %s2275_s21 = sshll.u32 %s2920_s7, 4  ;;  %s2276_s21 = int_to_ptr.vmem [resolvable:$true] %s2275_s21 }
0x125e   :  { %v1277_v16 = vsel %vm1260_vm7, %v1276_v14, %v3209_v43  ;;  %v1269_v17 = vsel %vm1268_vm3, %v3270_v53, %v1214_v10 }
0x125f   :  { %1271 = vrot.lane.b32.xlu2 %v1269_v17, %s2918_s3  ;;  %v1278_v18 = vsel %vm1262_vm4, %v1277_v16, %v3181_v2 }
0x1260   :  { %v1279_v19 = vsel %vm1264_vm2, %v1278_v18, %v3146_v63  ;;  %v3308_v63 = vld [vmem:[#allocation11 + $0x18] sm:$0xff] }
0x1261   :  { %v1280_v36 = vsel %vm1266_vm1, %v1279_v19, %v3110_v50  ;;  %1450 = vmatpush.bf16.msrb.mxu1 %v3308_v63  ;;  %v2460_v50 = vld [vmem:[#allocation10 + $0x8] sm:$0xff] }
0x1262   :  { %v1281_v11 = vsel %vm1268_vm3, %v1280_v36, %v3073_v40  ;;  %v3312_v40 = vld [vmem:[#allocation11 + $0x10] sm:$0xff]  ;;  %1360 = vmatpush.bf16.msra.mxu2 %v2460_v50 }
0x1263   :  { %1283 = vrot.lane.b32.xlu0 %v1281_v11, %s2918_s3 }
0x1265   :  { %1451 = vmatpush.bf16.msrb.mxu1 %v3312_v40 }
0x1266   :  { %1361 = vmatpush.bf16.msra.mxu2 %v2459_v24 }
0x1269   :  { %1452 = vmatpush.bf16.msrb.mxu1 %v3315_v23  ;;  %2394 = vmatmul.msk.bf16.vlgmr.msra.gmra.mxu2 %vm158_vm0, %v127_v28 }
0x126d   :  { %1453 = vmatpush.bf16.msrb.mxu1 %v3320_v26 }
0x12b9   :  { %v1272_v7 = vpop.permute.xlu2 %1271 }
0x12ba   :  { %v1274_v43 = vadd.f32 %v2702_v20, %v1272_v7 }
0x12d5   :  { %v1284_v21 = vpop.permute.xlu0 %1283 }
0x12d6   :  { %v1286_v53 = vadd.f32 %v1284_v21, %v1274_v43 }
0x12d8   :  { %v1288_v22 = vpack.c.bf16 %v1286_v53, %v1286_v53  ;;  %1287 = vst.msk [vmem:[#allocation13] sm:$0xff] %vm158_vm0, %v1286_v53  ;;  %1289 = vxpose.xlu1.b32.start.end [1/1] (short) (narrow) %v1286_v53, 32 }
0x12d9   :  { %2280 = dma.vmem_to_hbm [thread:$0]  %s2276_s21, 128, %s2278_s23, [#allocation4]  }
0x12da   :  { %v3305_v2 = vsel %vm1262_vm4, %v1288_v22, 0 }
0x12db   :  { %1407 = vmatpush.bf16.msrb.mxu0 %v3305_v2 }
0x12df   :  { %1562 = vmatpush.bf16.msra.mxu0 %v3308_v63 }
0x12e3   :  { %1563 = vmatpush.bf16.msra.mxu0 %v3312_v40 }
0x12e7   :  { %1564 = vmatpush.bf16.msra.mxu0 %v3315_v23 }
0x12eb   :  { %1565 = vmatpush.bf16.msra.mxu0 %v3320_v26 }
0x12ec   :  { %v1363_v59 = vpop.f32.mrf.mxu2 }
0x12ed   :  { %v3354_v6 = vadd.f32 %v2477_v61, %v1363_v59 }
0x12f4   :  { %v1365_v44 = vpop.f32.mrf.mxu2 }
0x137c   :  { %v1305_v30 = vpop.trf.xlu1 }
0x1384   :  { %v1306_v32 = vpop.trf.xlu1 }
0x1385   :  { %v3330_v34 = vpack.c.bf16 %v1306_v32, %v1305_v30 }
0x138c   :  { %v1307_v45 = vpop.trf.xlu1 }
0x1394   :  { %v1308_v51 = vpop.trf.xlu1 }
0x1395   :  { %v3325_v33 = vpack.c.bf16 %v1308_v51, %v1307_v45 }
0x1397   :  { %1373 = vmatpush.bf16.msra.mxu3 %v3325_v33  ;;  %1514 = vmatpush.bf16.msrb.mxu2 %v3325_v33 }
0x1398   :  { %1623 = vmatpush.bf16.msra.mxu1 %v3325_v33 }
0x139b   :  { %1374 = vmatpush.bf16.msra.mxu3 %v3330_v34  ;;  %1515 = vmatpush.bf16.msrb.mxu2 %v3330_v34 }
0x139c   :  { %1624 = vmatpush.bf16.msra.mxu1 %v3330_v34 }
0x139e   :  { %2395 = vmatmul.msk.bf16.vlgmr.msra.gmra.mxu3 %vm158_vm0, %v127_v28 }
0x139f   :  { %1543 = vmatpush.bf16.msrb.mxu3 %v3305_v2  ;;  %1652 = vmatpush.bf16.msra.mxu2 %v3305_v2 }
0x13a3   :  { %1671 = vmatpush.bf16.msra.mxu3 %v3308_v63 }
0x13a7   :  { %1672 = vmatpush.bf16.msra.mxu3 %v3312_v40 }
0x13ab   :  { %1673 = vmatpush.bf16.msra.mxu3 %v3315_v23 }
0x13af   :  { %1674 = vmatpush.bf16.msra.mxu3 %v3320_v26 }
0x1421   :  { %v1376_v38 = vpop.f32.mrf.mxu3 }
0x1422   :  { %v1381_v39 = vsel %vm1380_vm12, %v1376_v38, -inf }
0x1423   :  { %1382 = vmax.xlane.f32.xlu2 %v1381_v39 }
0x1429   :  { %v1378_v41 = vpop.f32.mrf.mxu3 }
0x143b   :  { %1414 = vrot.lane.b32.xlu2 %v125_v27, %s2918_s3 }
0x1496   :  { %v1383_v42 = vpop.xlane.xlu2 %1382 }
0x1497   :  { %v1384_v47 = vsub.f32 %v1376_v38, %v1383_v42 }
0x1499   :  { %v1385_v48 = vmul.f32 1.442695, %v1384_v47 }
0x149b   :  { %2606 = vpow2.f32 %v1385_v48 }
0x149e   :  { %v1415_v60 = vpop.permute.xlu2 %1414 }
0x14a1   :  { %v2607_v35 = vpop.eup %2606 }
0x14a2   :  { %v1387_v31 = vsel %vm1380_vm12, %v2607_v35, 0.0 }
0x14a3   :  { %1388 = vadd.xlane.f32.xlu0 %v1387_v31 }
0x1516   :  { %v1389_v52 = vpop.xlane.xlu0 %1388 }
0x1517   :  { %2608 = vrcp.f32 %v1389_v52 }
0x151d   :  { %v2609_v54 = vpop.eup %2608 }
0x151e   :  { %v1391_v55 = vmul.f32 %v2609_v54, %v2607_v35 }
0x1520   :  { %v1392_v57 = vpack.c.bf16 %v1391_v55, %v1391_v55 }
0x1522   :  { %2396 = vmatmul.msk.bf16.vlgmr.msrb.gmra.mxu0 %vm1393_vm13, %v1392_v57 }
0x1523   :  { %1732 = vmatpush.bf16.msrb.mxu0 %v3325_v33 }
0x1527   :  { %1733 = vmatpush.bf16.msrb.mxu0 %v3330_v34 }
0x159f   :  { %v1409_v62 = vpop.f32.mrf.mxu0 }
0x15a0   :  { %v1417_v58 = vsel %vm158_vm0, %v1409_v62, %v1415_v60 }
0x15a1   :  { %v1418_v5 = vpack.c.bf16 %v1417_v58, %v1417_v58 }
0x15a3   :  { %2413 = vmatmul.msk.bf16.vlgmr.msrb.gmra.mxu1 %vm237_vm9, %v1418_v5 }
0x15a4   :  { %1761 = vmatpush.bf16.msrb.mxu1 %v3305_v2 }
0x15a7   :  { %v1411_v56 = vpop.f32.mrf.mxu0 }
0x1620   :  { %v1455_v9 = vpop.f32.mrf.mxu1 }
0x1621   :  { %v1459_v3 = vadd.f32 %v1455_v9, %v3354_v6 }
0x1623   :  { %2610 = vtanh.f32 %v1459_v3  ;;  %v2414_v15 = vmul.f32 -1.442695, %v1459_v3 }
0x1625   :  { %2612 = vpow2.f32 %v2414_v15 }
0x1628   :  { %v1457_v46 = vpop.f32.mrf.mxu1 }
0x1629   :  { %v2611_v1 = vpop.eup %2610 }
0x162a   :  { %1482 = vrot.lane.b32.xlu0 %v2611_v1, %s2914_s14 }
0x162b   :  { %v2613_v4 = vpop.eup %2612 }
0x162c   :  { %v1463_v8 = vadd.f32 1.0, %v2613_v4 }
0x162e   :  { %2614 = vrcp.f32 %v1463_v8  ;;  %v1475_v13 = vand.u32 2147483648, %v1463_v8  ;;  %vm1469_vm4 = vweird.f32 %v1463_v8  ;;  %v1473_v0 = vand.u32 2147483647, %v1463_v8 }
0x1630   :  { %v1476_v14 = vor.u32 1.1754944e-38, %v1475_v13  ;;  %vm1474_vm1 = vcmp.eq.f32.partialorder %v1473_v0, 8.507059e+37 }
0x1632   :  { %1497 = vrot.lane.b32.xlu0 %v125_v27, %s2919_s20 }
0x1634   :  { %v2615_v25 = vpop.eup %2614 }
0x1635   :  { %v1465_v29 = vmul.f32 %v2615_v25, %v1463_v8  ;;  %vm1470_vm7 = vweird.f32 %v2615_v25 }
0x1636   :  { %vm1471_vm2 = vmor %vm1469_vm4, %vm1470_vm7 }
0x1637   :  { %v1466_v37 = vsub.f32 1.0, %v1465_v29 }
0x1639   :  { %v1467_v49 = vmul.f32 %v2615_v25, %v1466_v37 }
0x163b   :  { %v1468_v12 = vadd.f32 %v2615_v25, %v1467_v49 }
0x163d   :  { %v1472_v10 = vsel %vm1471_vm2, %v2615_v25, %v1468_v12 }
0x163e   :  { %v1477_v17 = vsel %vm1474_vm1, %v1476_v14, %v1472_v10 }
0x163f   :  { %v1480_v19 = vmul.f32 0.0, %v1477_v17 }
0x169c   :  { %v1483_v16 = vpop.permute.xlu0 %1482 }
0x169d   :  { %v1485_v18 = vmul.f32 %v1483_v16, %v1477_v17 }
0x169f   :  { %1487 = vrot.lane.b32.xlu1 %v1485_v18, %s2918_s3 }
0x16a4   :  { %v3363_v43 = vpop.permute.xlu0 %1497 }
0x1711   :  { %v1488_v36 = vpop.permute.xlu1 %1487 }
0x1712   :  { %v3359_v11 = vadd.f32 %v1488_v36, %v1480_v19 }
0x1714   :  { %2616 = vtanh.f32 %v3359_v11 }
0x171a   :  { %v2617_v7 = vpop.eup %2616 }
0x171b   :  { %1493 = vrot.lane.b32.xlu2 %v2617_v7, %s2914_s14 }
0x1775   :  { %v1494_v20 = vpop.permute.xlu2 %1493 }
0x1776   :  { %v1496_v21 = vmul.f32 %v1494_v20, %v1477_v17 }
0x1778   :  { %v1500_v53 = vadd.f32 %v3363_v43, %v1496_v21 }
0x177a   :  { %v1501_v22 = vpack.c.bf16 %v1500_v53, %v1500_v53 }
0x177c   :  { %1503 = vrot.lane.b32.xlu2 %v1501_v22, %s2918_s3 }
0x17d6   :  { %v1504_v50 = vpop.permute.xlu2 %1503 }
0x17d7   :  { %2415 = vmatmul.msk.bf16.vlgmr.msrb.gmra.mxu2 %vm158_vm0, %v1504_v50 }
0x17d8   :  { %1780 = vmatpush.bf16.msrb.mxu2 %v3308_v63 }
0x17dc   :  { %1781 = vmatpush.bf16.msrb.mxu2 %v3312_v40 }
0x17e0   :  { %1782 = vmatpush.bf16.msrb.mxu2 %v3315_v23 }
0x17e4   :  { %1783 = vmatpush.bf16.msrb.mxu2 %v3320_v26 }
0x185a   :  { %v1517_v24 = vpop.f32.mrf.mxu2 }
0x185b   :  { %v1521_v27 = vsel %vm1380_vm12, %v1517_v24, -inf }
0x185c   :  { %1522 = vmax.xlane.f32.xlu0 %v1521_v27 }
0x1862   :  { %v1519_v28 = vpop.f32.mrf.mxu2 }
0x1870   :  { %1550 = vrot.lane.b32.xlu0 %v1500_v53, %s2914_s14 }
0x18cf   :  { %v1523_v30 = vpop.xlane.xlu0 %1522 }
0x18d0   :  { %v1524_v32 = vsub.f32 %v1517_v24, %v1523_v30 }
0x18d2   :  { %v1525_v45 = vmul.f32 1.442695, %v1524_v32 }
0x18d4   :  { %2618 = vpow2.f32 %v1525_v45 }
0x18da   :  { %v2619_v51 = vpop.eup %2618 }
0x18db   :  { %v1527_v38 = vsel %vm1380_vm12, %v2619_v51, 0.0 }
0x18dc   :  { %1528 = vadd.xlane.f32.xlu2 %v1527_v38 }
0x18e2   :  { %v1551_v48 = vpop.permute.xlu0 %1550 }
0x194f   :  { %v1529_v39 = vpop.xlane.xlu2 %1528 }
0x1950   :  { %2620 = vrcp.f32 %v1529_v39 }
0x1956   :  { %v2621_v41 = vpop.eup %2620 }
0x1957   :  { %v1531_v42 = vmul.f32 %v2621_v41, %v2619_v51 }
0x1959   :  { %v1532_v47 = vpack.c.bf16 %v1531_v42, %v1531_v42 }
0x195b   :  { %2416 = vmatmul.msk.bf16.vlgmr.msrb.gmra.mxu3 %vm1393_vm13, %v1532_v47 }
0x195c   :  { %1841 = vmatpush.bf16.msrb.mxu3 %v3325_v33 }
0x1960   :  { %1842 = vmatpush.bf16.msrb.mxu3 %v3330_v34 }
0x19de   :  { %v1545_v35 = vpop.f32.mrf.mxu3 }
0x19df   :  { %v1553_v31 = vsel %vm158_vm0, %v1545_v35, %v1551_v48 }
0x19e0   :  { %v1554_v52 = vpack.c.bf16 %v1553_v31, %v1553_v31 }
0x19e2   :  { %2417 = vmatmul.msk.bf16.vlgmr.msra.gmra.mxu0 %vm237_vm9, %v1554_v52 }
0x19e3   :  { %1870 = vmatpush.bf16.msra.mxu0 %v3305_v2 }
0x19e6   :  { %v1547_v54 = vpop.f32.mrf.mxu3 }
0x1a5f   :  { %v1567_v55 = vpop.f32.mrf.mxu0 }
0x1a60   :  { %v1571_v57 = vadd.f32 %v1567_v55, %v3354_v6 }
0x1a62   :  { %2622 = vtanh.f32 %v1571_v57  ;;  %v2418_v60 = vmul.f32 -1.442695, %v1571_v57 }
0x1a64   :  { %2624 = vpow2.f32 %v2418_v60 }
0x1a67   :  { %v1569_v59 = vpop.f32.mrf.mxu0 }
0x1a68   :  { %v2623_v44 = vpop.eup %2622 }
0x1a69   :  { %1594 = vrot.lane.b32.xlu2 %v2623_v44, %s2914_s14 }
0x1a6a   :  { %v2625_v62 = vpop.eup %2624 }
0x1a6b   :  { %v1575_v58 = vadd.f32 1.0, %v2625_v62 }
0x1a6d   :  { %2626 = vrcp.f32 %v1575_v58  ;;  %v1587_v46 = vand.u32 2147483648, %v1575_v58  ;;  %vm1581_vm6 = vweird.f32 %v1575_v58  ;;  %v1585_v1 = vand.u32 2147483647, %v1575_v58 }
0x1a6f   :  { %v1588_v4 = vor.u32 1.1754944e-38, %v1587_v46  ;;  %vm1586_vm10 = vcmp.eq.f32.partialorder %v1585_v1, 8.507059e+37 }
0x1a73   :  { %v2627_v5 = vpop.eup %2626 }
0x1a74   :  { %v1577_v56 = vmul.f32 %v2627_v5, %v1575_v58  ;;  %vm1582_vm5 = vweird.f32 %v2627_v5 }
0x1a75   :  { %vm1583_vm8 = vmor %vm1581_vm6, %vm1582_vm5 }
0x1a76   :  { %v1578_v61 = vsub.f32 1.0, %v1577_v56 }
0x1a78   :  { %v1579_v9 = vmul.f32 %v2627_v5, %v1578_v61 }
0x1a7a   :  { %v1580_v3 = vadd.f32 %v2627_v5, %v1579_v9 }
0x1a7c   :  { %v1584_v15 = vsel %vm1583_vm8, %v2627_v5, %v1580_v3 }
0x1a7d   :  { %v1589_v25 = vsel %vm1586_vm10, %v1588_v4, %v1584_v15 }
0x1a7e   :  { %v1592_v37 = vmul.f32 %v1589_v25, %v3359_v11 }
0x1ac3   :  { %v1595_v8 = vpop.permute.xlu2 %1594 }
0x1ac4   :  { %v1597_v29 = vmul.f32 %v1595_v8, %v1589_v25 }
0x1ac6   :  { %1599 = vrot.lane.b32.xlu0 %v1597_v29, %s2918_s3 }
0x1b38   :  { %v1600_v49 = vpop.permute.xlu0 %1599 }
0x1b39   :  { %v3385_v12 = vadd.f32 %v1600_v49, %v1592_v37 }
0x1b3b   :  { %2628 = vtanh.f32 %v3385_v12 }
0x1b41   :  { %v2629_v13 = vpop.eup %2628 }
0x1b42   :  { %1605 = vrot.lane.b32.xlu2 %v2629_v13, %s2914_s14 }
0x1b9c   :  { %v1606_v0 = vpop.permute.xlu2 %1605 }
0x1b9d   :  { %v1608_v10 = vmul.f32 %v1606_v0, %v1589_v25 }
0x1b9f   :  { %v1609_v14 = vadd.f32 %v1608_v10, %v3363_v43 }
0x1ba1   :  { %1659 = vrot.lane.b32.xlu1 %v1609_v14, %s2914_s14  ;;  %v1610_v16 = vpack.c.bf16 %v1609_v14, %v1609_v14 }
0x1ba3   :  { %1612 = vrot.lane.b32.xlu0 %v1610_v16, %s2918_s3 }
0x1c13   :  { %v1660_v28 = vpop.permute.xlu1 %1659 }
0x1c15   :  { %v1613_v17 = vpop.permute.xlu0 %1612 }
0x1c16   :  { %2419 = vmatmul.msk.bf16.vlgmr.msra.gmra.mxu1 %vm158_vm0, %v1613_v17 }
0x1c17   :  { %1889 = vmatpush.bf16.msra.mxu1 %v3308_v63 }
0x1c1b   :  { %1890 = vmatpush.bf16.msra.mxu1 %v3312_v40 }
0x1c1f   :  { %1891 = vmatpush.bf16.msra.mxu1 %v3315_v23 }
0x1c23   :  { %1892 = vmatpush.bf16.msra.mxu1 %v3320_v26 }
0x1c93   :  { %v1626_v18 = vpop.f32.mrf.mxu1 }
0x1c94   :  { %v1630_v19 = vsel %vm1380_vm12, %v1626_v18, -inf }
0x1c95   :  { %1631 = vmax.xlane.f32.xlu2 %v1630_v19 }
0x1c9b   :  { %v1628_v36 = vpop.f32.mrf.mxu1 }
0x1d08   :  { %v1632_v11 = vpop.xlane.xlu2 %1631 }
0x1d09   :  { %v1633_v7 = vsub.f32 %v1626_v18, %v1632_v11 }
0x1d0b   :  { %v1634_v20 = vmul.f32 1.442695, %v1633_v7 }
0x1d0d   :  { %2630 = vpow2.f32 %v1634_v20 }
0x1d13   :  { %v2631_v21 = vpop.eup %2630 }
0x1d14   :  { %v1636_v53 = vsel %vm1380_vm12, %v2631_v21, 0.0 }
0x1d15   :  { %1637 = vadd.xlane.f32.xlu0 %v1636_v53 }
0x1d88   :  { %v1638_v22 = vpop.xlane.xlu0 %1637 }
0x1d89   :  { %2632 = vrcp.f32 %v1638_v22 }
0x1d8f   :  { %v2633_v50 = vpop.eup %2632 }
0x1d90   :  { %v1640_v24 = vmul.f32 %v2633_v50, %v2631_v21 }
0x1d92   :  { %v1641_v27 = vpack.c.bf16 %v1640_v24, %v1640_v24 }
0x1d94   :  { %2420 = vmatmul.msk.bf16.vlgmr.msra.gmra.mxu2 %vm1393_vm13, %v1641_v27 }
0x1d95   :  { %1950 = vmatpush.bf16.msra.mxu2 %v3325_v33 }
0x1d99   :  { %1951 = vmatpush.bf16.msra.mxu2 %v3330_v34 }
0x1e17   :  { %v1654_v30 = vpop.f32.mrf.mxu2 }
0x1e18   :  { %v1662_v32 = vsel %vm158_vm0, %v1654_v30, %v1660_v28 }
0x1e19   :  { %v1663_v45 = vpack.c.bf16 %v1662_v32, %v1662_v32 }
0x1e1b   :  { %2421 = vmatmul.msk.bf16.vlgmr.msra.gmra.mxu3 %vm237_vm9, %v1663_v45 }
0x1e1c   :  { %1979 = vmatpush.bf16.msra.mxu3 %v3305_v2 }
0x1e1f   :  { %v1656_v51 = vpop.f32.mrf.mxu2 }
0x1e9e   :  { %v1676_v38 = vpop.f32.mrf.mxu3 }
0x1e9f   :  { %v1680_v39 = vadd.f32 %v1676_v38, %v3354_v6 }
0x1ea1   :  { %2634 = vtanh.f32 %v1680_v39  ;;  %v2422_v47 = vmul.f32 -1.442695, %v1680_v39 }
0x1ea3   :  { %2636 = vpow2.f32 %v2422_v47 }
0x1ea6   :  { %v1678_v41 = vpop.f32.mrf.mxu3 }
0x1ea7   :  { %v2635_v42 = vpop.eup %2634 }
0x1ea8   :  { %1703 = vrot.lane.b32.xlu1 %v2635_v42, %s2914_s14 }
0x1ea9   :  { %v2637_v48 = vpop.eup %2636 }
0x1eaa   :  { %v1684_v35 = vadd.f32 1.0, %v2637_v48 }
0x1eac   :  { %2638 = vrcp.f32 %v1684_v35  ;;  %v1696_v59 = vand.u32 2147483648, %v1684_v35  ;;  %vm1690_vm14 = vweird.f32 %v1684_v35  ;;  %v1694_v44 = vand.u32 2147483647, %v1684_v35 }
0x1eae   :  { %v1697_v62 = vor.u32 1.1754944e-38, %v1696_v59  ;;  %vm1695_vm3 = vcmp.eq.f32.partialorder %v1694_v44, 8.507059e+37 }
0x1eb2   :  { %v2639_v31 = vpop.eup %2638 }
0x1eb3   :  { %v1686_v52 = vmul.f32 %v2639_v31, %v1684_v35  ;;  %vm1691_vm11 = vweird.f32 %v2639_v31 }
0x1eb4   :  { %vm1692_vm15 = vmor %vm1690_vm14, %vm1691_vm11 }
0x1eb5   :  { %v1687_v54 = vsub.f32 1.0, %v1686_v52 }
0x1eb7   :  { %v1688_v55 = vmul.f32 %v2639_v31, %v1687_v54 }
0x1eb9   :  { %v1689_v57 = vadd.f32 %v2639_v31, %v1688_v55 }
0x1ebb   :  { %v1693_v60 = vsel %vm1692_vm15, %v2639_v31, %v1689_v57 }
0x1ebc   :  { %v1698_v5 = vsel %vm1695_vm3, %v1697_v62, %v1693_v60 }
0x1ebd   :  { %v1701_v61 = vmul.f32 %v1698_v5, %v3385_v12 }
0x1f1a   :  { %v1704_v58 = vpop.permute.xlu1 %1703 }
0x1f1b   :  { %v1706_v56 = vmul.f32 %v1704_v58, %v1698_v5 }
0x1f1d   :  { %1708 = vrot.lane.b32.xlu1 %v1706_v56, %s2918_s3 }
0x1f8f   :  { %v1709_v9 = vpop.permute.xlu1 %1708 }
0x1f90   :  { %v3409_v3 = vadd.f32 %v1709_v9, %v1701_v61 }
0x1f92   :  { %2640 = vtanh.f32 %v3409_v3 }
0x1f98   :  { %v2641_v46 = vpop.eup %2640 }
0x1f99   :  { %1714 = vrot.lane.b32.xlu1 %v2641_v46, %s2914_s14 }
0x200b   :  { %v1715_v1 = vpop.permute.xlu1 %1714 }
0x200c   :  { %v1717_v15 = vmul.f32 %v1715_v1, %v1698_v5 }
0x200e   :  { %v1718_v4 = vadd.f32 %v1717_v15, %v3363_v43 }
0x2010   :  { %v1719_v8 = vpack.c.bf16 %v1718_v4, %v1718_v4 }
0x2012   :  { %1721 = vrot.lane.b32.xlu2 %v1719_v8, %s2918_s3 }
0x206c   :  { %v1722_v25 = vpop.permute.xlu2 %1721 }
0x206d   :  { %2423 = vmatmul.msk.bf16.vlgmr.msrb.gmra.mxu0 %vm158_vm0, %v1722_v25 }
0x206e   :  { %1998 = vmatpush.bf16.msrb.mxu0 %v3308_v63 }
0x2072   :  { %1999 = vmatpush.bf16.msrb.mxu0 %v3312_v40 }
0x2076   :  { %2000 = vmatpush.bf16.msrb.mxu0 %v3315_v23 }
0x207a   :  { %2001 = vmatpush.bf16.msrb.mxu0 %v3320_v26 }
0x20ea   :  { %v1735_v29 = vpop.f32.mrf.mxu0 }
0x20eb   :  { %v1739_v37 = vsel %vm1380_vm12, %v1735_v29, -inf }
0x20ec   :  { %1740 = vmax.xlane.f32.xlu0 %v1739_v37 }
0x20f2   :  { %v1737_v49 = vpop.f32.mrf.mxu0 }
0x2100   :  { %1768 = vrot.lane.b32.xlu0 %v1718_v4, %s2914_s14 }
0x215f   :  { %v1741_v12 = vpop.xlane.xlu0 %1740 }
0x2160   :  { %v1742_v13 = vsub.f32 %v1735_v29, %v1741_v12 }
0x2162   :  { %v1743_v0 = vmul.f32 1.442695, %v1742_v13 }
0x2164   :  { %2642 = vpow2.f32 %v1743_v0 }
0x216a   :  { %v2643_v10 = vpop.eup %2642 }
0x216b   :  { %v1745_v14 = vsel %vm1380_vm12, %v2643_v10, 0.0 }
0x216c   :  { %1746 = vadd.xlane.f32.xlu1 %v1745_v14 }
0x2172   :  { %v1769_v36 = vpop.permute.xlu0 %1768 }
0x21df   :  { %v1747_v16 = vpop.xlane.xlu1 %1746 }
0x21e0   :  { %2644 = vrcp.f32 %v1747_v16 }
0x21e6   :  { %v2645_v17 = vpop.eup %2644 }
0x21e7   :  { %v1749_v18 = vmul.f32 %v2645_v17, %v2643_v10 }
0x21e9   :  { %v1750_v19 = vpack.c.bf16 %v1749_v18, %v1749_v18 }
0x21eb   :  { %2424 = vmatmul.msk.bf16.vlgmr.msrb.gmra.mxu1 %vm1393_vm13, %v1750_v19 }
0x21ec   :  { %2059 = vmatpush.bf16.msrb.mxu1 %v3325_v33 }
0x21f0   :  { %2060 = vmatpush.bf16.msrb.mxu1 %v3330_v34 }
0x2268   :  { %v1763_v11 = vpop.f32.mrf.mxu1 }
0x2269   :  { %v1771_v7 = vsel %vm158_vm0, %v1763_v11, %v1769_v36 }
0x226a   :  { %v1772_v20 = vpack.c.bf16 %v1771_v7, %v1771_v7 }
0x226c   :  { %2425 = vmatmul.msk.bf16.vlgmr.msrb.gmra.mxu2 %vm237_vm9, %v1772_v20 }
0x226d   :  { %2088 = vmatpush.bf16.msrb.mxu2 %v3305_v2 }
0x2270   :  { %v1765_v21 = vpop.f32.mrf.mxu1 }
0x22ef   :  { %v1785_v53 = vpop.f32.mrf.mxu2 }
0x22f0   :  { %v1789_v22 = vadd.f32 %v1785_v53, %v3354_v6 }
0x22f2   :  { %2646 = vtanh.f32 %v1789_v22  ;;  %v2426_v27 = vmul.f32 -1.442695, %v1789_v22 }
0x22f4   :  { %2648 = vpow2.f32 %v2426_v27 }
0x22f7   :  { %v1787_v50 = vpop.f32.mrf.mxu2 }
0x22f8   :  { %v2647_v24 = vpop.eup %2646 }
0x22f9   :  { %1812 = vrot.lane.b32.xlu2 %v2647_v24, %s2914_s14 }
0x22fa   :  { %v2649_v28 = vpop.eup %2648 }
0x22fb   :  { %v1793_v30 = vadd.f32 1.0, %v2649_v28 }
0x22fd   :  { %2650 = vrcp.f32 %v1793_v30  ;;  %v1805_v41 = vand.u32 2147483648, %v1793_v30  ;;  %vm1799_vm4 = vweird.f32 %v1793_v30  ;;  %v1803_v42 = vand.u32 2147483647, %v1793_v30 }
0x22ff   :  { %v1806_v48 = vor.u32 1.1754944e-38, %v1805_v41  ;;  %vm1804_vm1 = vcmp.eq.f32.partialorder %v1803_v42, 8.507059e+37 }
0x2303   :  { %v2651_v32 = vpop.eup %2650 }
0x2304   :  { %v1795_v45 = vmul.f32 %v2651_v32, %v1793_v30  ;;  %vm1800_vm7 = vweird.f32 %v2651_v32 }
0x2305   :  { %vm1801_vm2 = vmor %vm1799_vm4, %vm1800_vm7 }
0x2306   :  { %v1796_v51 = vsub.f32 1.0, %v1795_v45 }
0x2308   :  { %v1797_v38 = vmul.f32 %v2651_v32, %v1796_v51 }
0x230a   :  { %v1798_v39 = vadd.f32 %v2651_v32, %v1797_v38 }
0x230c   :  { %v1802_v47 = vsel %vm1801_vm2, %v2651_v32, %v1798_v39 }
0x230d   :  { %v1807_v31 = vsel %vm1804_vm1, %v1806_v48, %v1802_v47 }
0x230e   :  { %v1810_v54 = vmul.f32 %v1807_v31, %v3409_v3 }
0x2353   :  { %v1813_v35 = vpop.permute.xlu2 %1812 }
0x2354   :  { %v1815_v52 = vmul.f32 %v1813_v35, %v1807_v31 }
0x2356   :  { %1817 = vrot.lane.b32.xlu0 %v1815_v52, %s2918_s3 }
0x23c8   :  { %v1818_v55 = vpop.permute.xlu0 %1817 }
0x23c9   :  { %v3433_v57 = vadd.f32 %v1818_v55, %v1810_v54 }
0x23cb   :  { %2652 = vtanh.f32 %v3433_v57 }
0x23d1   :  { %v2653_v59 = vpop.eup %2652 }
0x23d2   :  { %1823 = vrot.lane.b32.xlu2 %v2653_v59, %s2914_s14 }
0x242c   :  { %v1824_v44 = vpop.permute.xlu2 %1823 }
0x242d   :  { %v1826_v60 = vmul.f32 %v1824_v44, %v1807_v31 }
0x242f   :  { %v1827_v62 = vadd.f32 %v1826_v60, %v3363_v43 }
0x2431   :  { %v1828_v58 = vpack.c.bf16 %v1827_v62, %v1827_v62 }
0x2433   :  { %1830 = vrot.lane.b32.xlu0 %v1828_v58, %s2918_s3 }
0x243b   :  { %1877 = vrot.lane.b32.xlu0 %v1827_v62, %s2914_s14 }
0x24a5   :  { %v1831_v5 = vpop.permute.xlu0 %1830 }
0x24a6   :  { %2427 = vmatmul.msk.bf16.vlgmr.msrb.gmra.mxu3 %vm158_vm0, %v1831_v5 }
0x24a7   :  { %2107 = vmatpush.bf16.msrb.mxu3 %v3308_v63 }
0x24ab   :  { %2108 = vmatpush.bf16.msrb.mxu3 %v3312_v40 }
0x24ad   :  { %v1878_v49 = vpop.permute.xlu0 %1877 }
0x24af   :  { %2109 = vmatpush.bf16.msrb.mxu3 %v3315_v23 }
0x24b3   :  { %2110 = vmatpush.bf16.msrb.mxu3 %v3320_v26 }
0x2529   :  { %v1844_v56 = vpop.f32.mrf.mxu3 }
0x252a   :  { %v1848_v61 = vsel %vm1380_vm12, %v1844_v56, -inf }
0x252b   :  { %1849 = vmax.xlane.f32.xlu2 %v1848_v61 }
0x2531   :  { %v1846_v9 = vpop.f32.mrf.mxu3 }
0x259e   :  { %v1850_v3 = vpop.xlane.xlu2 %1849 }
0x259f   :  { %v1851_v46 = vsub.f32 %v1844_v56, %v1850_v3 }
0x25a1   :  { %v1852_v1 = vmul.f32 1.442695, %v1851_v46 }
0x25a3   :  { %2654 = vpow2.f32 %v1852_v1 }
0x25a9   :  { %v2655_v15 = vpop.eup %2654 }
0x25aa   :  { %v1854_v4 = vsel %vm1380_vm12, %v2655_v15, 0.0 }
0x25ab   :  { %1855 = vadd.xlane.f32.xlu1 %v1854_v4 }
0x261e   :  { %v1856_v8 = vpop.xlane.xlu1 %1855 }
0x261f   :  { %2656 = vrcp.f32 %v1856_v8 }
0x2625   :  { %v2657_v25 = vpop.eup %2656 }
0x2626   :  { %v1858_v29 = vmul.f32 %v2657_v25, %v2655_v15 }
0x2628   :  { %v1859_v37 = vpack.c.bf16 %v1858_v29, %v1858_v29 }
0x262a   :  { %2428 = vmatmul.msk.bf16.vlgmr.msra.gmra.mxu0 %vm1393_vm13, %v1859_v37 }
0x262b   :  { %2168 = vmatpush.bf16.msra.mxu0 %v3325_v33 }
0x262f   :  { %2169 = vmatpush.bf16.msra.mxu0 %v3330_v34 }
0x26a7   :  { %v1872_v12 = vpop.f32.mrf.mxu0 }
0x26a8   :  { %v1880_v13 = vsel %vm158_vm0, %v1872_v12, %v1878_v49 }
0x26a9   :  { %v1881_v0 = vpack.c.bf16 %v1880_v13, %v1880_v13 }
0x26ab   :  { %2429 = vmatmul.msk.bf16.vlgmr.msra.gmra.mxu1 %vm237_vm9, %v1881_v0 }
0x26ac   :  { %2197 = vmatpush.bf16.msra.mxu1 %v3305_v2 }
0x26af   :  { %v1874_v10 = vpop.f32.mrf.mxu0 }
0x2728   :  { %v1894_v14 = vpop.f32.mrf.mxu1 }
0x2729   :  { %v1898_v16 = vadd.f32 %v1894_v14, %v3354_v6 }
0x272b   :  { %2658 = vtanh.f32 %v1898_v16  ;;  %v2430_v33 = vmul.f32 -1.442695, %v1898_v16 }
0x272d   :  { %2660 = vpow2.f32 %v2430_v33 }
0x2730   :  { %v1896_v17 = vpop.f32.mrf.mxu1 }
0x2731   :  { %v2659_v18 = vpop.eup %2658 }
0x2732   :  { %1921 = vrot.lane.b32.xlu1 %v2659_v18, %s2914_s14 }
0x2733   :  { %v2661_v34 = vpop.eup %2660 }
0x2734   :  { %v1902_v19 = vadd.f32 1.0, %v2661_v34 }
0x2736   :  { %2662 = vrcp.f32 %v1902_v19  ;;  %v1914_v2 = vand.u32 2147483648, %v1902_v19  ;;  %vm1908_vm6 = vweird.f32 %v1902_v19  ;;  %v1912_v53 = vand.u32 2147483647, %v1902_v19 }
0x2738   :  { %v1915_v50 = vor.u32 1.1754944e-38, %v1914_v2  ;;  %vm1913_vm10 = vcmp.eq.f32.partialorder %v1912_v53, 8.507059e+37 }
0x273c   :  { %v2663_v36 = vpop.eup %2662 }
0x273d   :  { %v1904_v11 = vmul.f32 %v2663_v36, %v1902_v19  ;;  %vm1909_vm5 = vweird.f32 %v2663_v36 }
0x273e   :  { %vm1910_vm8 = vmor %vm1908_vm6, %vm1909_vm5  ;;  %vm2268_vm5 = vcmask 257024  }
0x273f   :  { %v1905_v7 = vsub.f32 1.0, %v1904_v11 }
0x2741   :  { %v1906_v20 = vmul.f32 %v2663_v36, %v1905_v7 }
0x2743   :  { %v1907_v21 = vadd.f32 %v2663_v36, %v1906_v20 }
0x2745   :  { %v1911_v22 = vsel %vm1910_vm8, %v2663_v36, %v1907_v21 }
0x2746   :  { %v1916_v27 = vsel %vm1913_vm10, %v1915_v50, %v1911_v22 }
0x2747   :  { %v1919_v30 = vmul.f32 %v1916_v27, %v3433_v57 }
0x27a4   :  { %v1922_v24 = vpop.permute.xlu1 %1921 }
0x27a5   :  { %v1924_v28 = vmul.f32 %v1922_v24, %v1916_v27 }
0x27a7   :  { %1926 = vrot.lane.b32.xlu0 %v1924_v28, %s2918_s3 }
0x2819   :  { %v1927_v32 = vpop.permute.xlu0 %1926 }
0x281a   :  { %v3457_v45 = vadd.f32 %v1927_v32, %v1919_v30 }
0x281c   :  { %2664 = vtanh.f32 %v3457_v45 }
0x2822   :  { %v2665_v51 = vpop.eup %2664 }
0x2823   :  { %1932 = vrot.lane.b32.xlu0 %v2665_v51, %s2914_s14 }
0x2895   :  { %v1933_v38 = vpop.permute.xlu0 %1932 }
0x2896   :  { %v1935_v39 = vmul.f32 %v1933_v38, %v1916_v27 }
0x2898   :  { %v1936_v41 = vadd.f32 %v1935_v39, %v3363_v43 }
0x289a   :  { %1986 = vrot.lane.b32.xlu2 %v1936_v41, %s2914_s14  ;;  %v1937_v42 = vpack.c.bf16 %v1936_v41, %v1936_v41 }
0x289c   :  { %1939 = vrot.lane.b32.xlu0 %v1937_v42, %s2918_s3 }
0x290e   :  { %v1940_v47 = vpop.permute.xlu0 %1939 }
0x290f   :  { %2431 = vmatmul.msk.bf16.vlgmr.msra.gmra.mxu2 %vm158_vm0, %v1940_v47 }
0x2910   :  { %2216 = vmatpush.bf16.msra.mxu2 %v3308_v63 }
0x2914   :  { %2217 = vmatpush.bf16.msra.mxu2 %v3312_v40 }
0x2918   :  { %2218 = vmatpush.bf16.msra.mxu2 %v3315_v23 }
0x291c   :  { %2219 = vmatpush.bf16.msra.mxu2 %v3320_v26  ;;  %v1987_v26 = vpop.permute.xlu2 %1986 }
0x2992   :  { %v1953_v48 = vpop.f32.mrf.mxu2 }
0x2993   :  { %v1957_v35 = vsel %vm1380_vm12, %v1953_v48, -inf }
0x2994   :  { %1958 = vmax.xlane.f32.xlu0 %v1957_v35 }
0x299a   :  { %v1955_v31 = vpop.f32.mrf.mxu2 }
0x2a07   :  { %v1959_v52 = vpop.xlane.xlu0 %1958 }
0x2a08   :  { %v1960_v54 = vsub.f32 %v1953_v48, %v1959_v52 }
0x2a0a   :  { %v1961_v55 = vmul.f32 1.442695, %v1960_v54 }
0x2a0c   :  { %2666 = vpow2.f32 %v1961_v55 }
0x2a12   :  { %v2667_v57 = vpop.eup %2666 }
0x2a13   :  { %v1963_v59 = vsel %vm1380_vm12, %v2667_v57, 0.0 }
0x2a14   :  { %1964 = vadd.xlane.f32.xlu1 %v1963_v59 }
0x2a87   :  { %v1965_v63 = vpop.xlane.xlu1 %1964 }
0x2a88   :  { %2668 = vrcp.f32 %v1965_v63 }
0x2a8e   :  { %v2669_v40 = vpop.eup %2668 }
0x2a8f   :  { %v1967_v44 = vmul.f32 %v2669_v40, %v2667_v57 }
0x2a91   :  { %v1968_v23 = vpack.c.bf16 %v1967_v44, %v1967_v44 }
0x2a93   :  { %2432 = vmatmul.msk.bf16.vlgmr.msra.gmra.mxu3 %vm1393_vm13, %v1968_v23 }
0x2b16   :  { %v1981_v60 = vpop.f32.mrf.mxu3 }
0x2b17   :  { %v1989_v62 = vsel %vm158_vm0, %v1981_v60, %v1987_v26 }
0x2b18   :  { %v1990_v58 = vpack.c.bf16 %v1989_v62, %v1989_v62 }
0x2b1a   :  { %2433 = vmatmul.msk.bf16.vlgmr.msrb.gmra.mxu0 %vm237_vm9, %v1990_v58 }
0x2b1e   :  { %v1983_v5 = vpop.f32.mrf.mxu3 }
0x2b97   :  { %v2003_v56 = vpop.f32.mrf.mxu0 }
0x2b98   :  { %v2007_v61 = vadd.f32 %v2003_v56, %v3354_v6 }
0x2b9a   :  { %2670 = vtanh.f32 %v2007_v61  ;;  %v2434_v46 = vmul.f32 -1.442695, %v2007_v61 }
0x2b9c   :  { %2672 = vpow2.f32 %v2434_v46 }
0x2b9f   :  { %v2005_v9 = vpop.f32.mrf.mxu0 }
0x2ba0   :  { %v2671_v3 = vpop.eup %2670 }
0x2ba1   :  { %2030 = vrot.lane.b32.xlu2 %v2671_v3, %s2914_s14 }
0x2ba2   :  { %v2673_v1 = vpop.eup %2672 }
0x2ba3   :  { %v2011_v15 = vadd.f32 1.0, %v2673_v1 }
0x2ba5   :  { %2674 = vrcp.f32 %v2011_v15  ;;  %v2023_v49 = vand.u32 2147483648, %v2011_v15  ;;  %vm2017_vm14 = vweird.f32 %v2011_v15  ;;  %v2021_v12 = vand.u32 2147483647, %v2011_v15 }
0x2ba7   :  { %v2024_v0 = vor.u32 1.1754944e-38, %v2023_v49  ;;  %vm2022_vm3 = vcmp.eq.f32.partialorder %v2021_v12, 8.507059e+37 }
0x2bab   :  { %v2675_v4 = vpop.eup %2674 }
0x2bac   :  { %v2013_v8 = vmul.f32 %v2675_v4, %v2011_v15  ;;  %vm2018_vm11 = vweird.f32 %v2675_v4 }
0x2bad   :  { %vm2019_vm15 = vmor %vm2017_vm14, %vm2018_vm11 }
0x2bae   :  { %v2014_v25 = vsub.f32 1.0, %v2013_v8 }
0x2bb0   :  { %v2015_v29 = vmul.f32 %v2675_v4, %v2014_v25 }
0x2bb2   :  { %v2016_v37 = vadd.f32 %v2675_v4, %v2015_v29 }
0x2bb4   :  { %v2020_v13 = vsel %vm2019_vm15, %v2675_v4, %v2016_v37 }
0x2bb5   :  { %v2025_v14 = vsel %vm2022_vm3, %v2024_v0, %v2020_v13 }
0x2bb6   :  { %v2028_v17 = vmul.f32 %v2025_v14, %v3457_v45 }
0x2bfb   :  { %v2031_v10 = vpop.permute.xlu2 %2030 }
0x2bfc   :  { %v2033_v16 = vmul.f32 %v2031_v10, %v2025_v14 }
0x2bfe   :  { %2035 = vrot.lane.b32.xlu2 %v2033_v16, %s2918_s3 }
0x2c58   :  { %v2036_v18 = vpop.permute.xlu2 %2035 }
0x2c59   :  { %v3478_v33 = vadd.f32 %v2036_v18, %v2028_v17 }
0x2c5b   :  { %2676 = vtanh.f32 %v3478_v33 }
0x2c61   :  { %v2677_v34 = vpop.eup %2676 }
0x2c62   :  { %2041 = vrot.lane.b32.xlu0 %v2677_v34, %s2914_s14 }
0x2cd4   :  { %v2042_v19 = vpop.permute.xlu0 %2041 }
0x2cd5   :  { %v2044_v36 = vmul.f32 %v2042_v19, %v2025_v14 }
0x2cd7   :  { %v2045_v11 = vadd.f32 %v2044_v36, %v3363_v43 }
0x2cd9   :  { %v2046_v7 = vpack.c.bf16 %v2045_v11, %v2045_v11 }
0x2cdb   :  { %2048 = vrot.lane.b32.xlu1 %v2046_v7, %s2918_s3 }
0x2ce3   :  { %2095 = vrot.lane.b32.xlu1 %v2045_v11, %s2914_s14 }
0x2d4d   :  { %v2049_v20 = vpop.permute.xlu1 %2048 }
0x2d4e   :  { %2435 = vmatmul.msk.bf16.vlgmr.msrb.gmra.mxu1 %vm158_vm0, %v2049_v20 }
0x2d55   :  { %v2096_v38 = vpop.permute.xlu1 %2095 }
0x2dcb   :  { %v2062_v21 = vpop.f32.mrf.mxu1 }
0x2dcc   :  { %v2066_v2 = vsel %vm1380_vm12, %v2062_v21, -inf }
0x2dcd   :  { %2067 = vmax.xlane.f32.xlu2 %v2066_v2 }
0x2dd3   :  { %v2064_v53 = vpop.f32.mrf.mxu1 }
0x2e40   :  { %v2068_v22 = vpop.xlane.xlu2 %2067 }
0x2e41   :  { %v2069_v50 = vsub.f32 %v2062_v21, %v2068_v22 }
0x2e43   :  { %v2070_v24 = vmul.f32 1.442695, %v2069_v50 }
0x2e45   :  { %2678 = vpow2.f32 %v2070_v24 }
0x2e4b   :  { %v2679_v27 = vpop.eup %2678 }
0x2e4c   :  { %v2072_v28 = vsel %vm1380_vm12, %v2679_v27, 0.0 }
0x2e4d   :  { %2073 = vadd.xlane.f32.xlu0 %v2072_v28 }
0x2ec0   :  { %v2074_v30 = vpop.xlane.xlu0 %2073 }
0x2ec1   :  { %2680 = vrcp.f32 %v2074_v30 }
0x2ec7   :  { %v2681_v32 = vpop.eup %2680 }
0x2ec8   :  { %v2076_v45 = vmul.f32 %v2681_v32, %v2679_v27 }
0x2eca   :  { %v2077_v51 = vpack.c.bf16 %v2076_v45, %v2076_v45 }
0x2ecc   :  { %2436 = vmatmul.msk.bf16.vlgmr.msrb.gmra.mxu2 %vm1393_vm13, %v2077_v51 }
0x2f4f   :  { %v2090_v39 = vpop.f32.mrf.mxu2 }
0x2f50   :  { %v2098_v41 = vsel %vm158_vm0, %v2090_v39, %v2096_v38 }
0x2f51   :  { %v2099_v42 = vpack.c.bf16 %v2098_v41, %v2098_v41 }
0x2f53   :  { %2437 = vmatmul.msk.bf16.vlgmr.msrb.gmra.mxu3 %vm237_vm9, %v2099_v42 }
0x2f57   :  { %v2092_v47 = vpop.f32.mrf.mxu2 }
0x2fd6   :  { %v2112_v48 = vpop.f32.mrf.mxu3 }
0x2fd7   :  { %v2116_v35 = vadd.f32 %v2112_v48, %v3354_v6 }
0x2fd9   :  { %2682 = vtanh.f32 %v2116_v35  ;;  %v2438_v54 = vmul.f32 -1.442695, %v2116_v35 }
0x2fdb   :  { %2684 = vpow2.f32 %v2438_v54 }
0x2fde   :  { %v2114_v31 = vpop.f32.mrf.mxu3 }
0x2fdf   :  { %v2683_v52 = vpop.eup %2682 }
0x2fe0   :  { %2139 = vrot.lane.b32.xlu1 %v2683_v52, %s2914_s14 }
0x2fe1   :  { %v2685_v55 = vpop.eup %2684 }
0x2fe2   :  { %v2120_v57 = vadd.f32 1.0, %v2685_v55 }
0x2fe4   :  { %2686 = vrcp.f32 %v2120_v57  ;;  %v2132_v26 = vand.u32 2147483648, %v2120_v57  ;;  %vm2126_vm4 = vweird.f32 %v2120_v57  ;;  %v2130_v60 = vand.u32 2147483647, %v2120_v57 }
0x2fe6   :  { %v2133_v58 = vor.u32 1.1754944e-38, %v2132_v26  ;;  %vm2131_vm1 = vcmp.eq.f32.partialorder %v2130_v60, 8.507059e+37 }
0x2fea   :  { %v2687_v59 = vpop.eup %2686 }
0x2feb   :  { %v2122_v63 = vmul.f32 %v2687_v59, %v2120_v57  ;;  %vm2127_vm7 = vweird.f32 %v2687_v59 }
0x2fec   :  { %vm2128_vm2 = vmor %vm2126_vm4, %vm2127_vm7 }
0x2fed   :  { %v2123_v40 = vsub.f32 1.0, %v2122_v63 }
0x2fef   :  { %v2124_v44 = vmul.f32 %v2687_v59, %v2123_v40 }
0x2ff1   :  { %v2125_v23 = vadd.f32 %v2687_v59, %v2124_v44 }
0x2ff3   :  { %v2129_v62 = vsel %vm2128_vm2, %v2687_v59, %v2125_v23 }
0x2ff4   :  { %v2134_v56 = vsel %vm2131_vm1, %v2133_v58, %v2129_v62 }
0x2ff5   :  { %v2137_v9 = vmul.f32 %v2134_v56, %v3478_v33 }
0x3052   :  { %v2140_v5 = vpop.permute.xlu1 %2139 }
0x3053   :  { %v2142_v61 = vmul.f32 %v2140_v5, %v2134_v56 }
0x3055   :  { %2144 = vrot.lane.b32.xlu1 %v2142_v61, %s2918_s3 }
0x30c7   :  { %v2145_v3 = vpop.permute.xlu1 %2144 }
0x30c8   :  { %v3495_v46 = vadd.f32 %v2145_v3, %v2137_v9 }
0x30ca   :  { %2688 = vtanh.f32 %v3495_v46 }
0x30d0   :  { %v2689_v1 = vpop.eup %2688 }
0x30d1   :  { %2150 = vrot.lane.b32.xlu2 %v2689_v1, %s2914_s14 }
0x312b   :  { %v2151_v15 = vpop.permute.xlu2 %2150 }
0x312c   :  { %v2153_v4 = vmul.f32 %v2151_v15, %v2134_v56 }
0x312e   :  { %v2154_v8 = vadd.f32 %v2153_v4, %v3363_v43 }
0x3130   :  { %2204 = vrot.lane.b32.xlu2 %v2154_v8, %s2914_s14  ;;  %v2155_v25 = vpack.c.bf16 %v2154_v8, %v2154_v8 }
0x3132   :  { %2157 = vrot.lane.b32.xlu1 %v2155_v25, %s2918_s3 }
0x318a   :  { %v2205_v19 = vpop.permute.xlu2 %2204 }
0x31a4   :  { %v2158_v29 = vpop.permute.xlu1 %2157 }
0x31a5   :  { %2439 = vmatmul.msk.bf16.vlgmr.msra.gmra.mxu0 %vm158_vm0, %v2158_v29 }
0x3222   :  { %v2171_v37 = vpop.f32.mrf.mxu0 }
0x3223   :  { %v2175_v49 = vsel %vm1380_vm12, %v2171_v37, -inf }
0x3224   :  { %2176 = vmax.xlane.f32.xlu1 %v2175_v49 }
0x322a   :  { %v2173_v12 = vpop.f32.mrf.mxu0 }
0x3297   :  { %v2177_v13 = vpop.xlane.xlu1 %2176 }
0x3298   :  { %v2178_v0 = vsub.f32 %v2171_v37, %v2177_v13 }
0x329a   :  { %v2179_v10 = vmul.f32 1.442695, %v2178_v0 }
0x329c   :  { %2690 = vpow2.f32 %v2179_v10 }
0x32a2   :  { %v2691_v14 = vpop.eup %2690 }
0x32a3   :  { %v2181_v16 = vsel %vm1380_vm12, %v2691_v14, 0.0 }
0x32a4   :  { %2182 = vadd.xlane.f32.xlu0 %v2181_v16 }
0x3317   :  { %v2183_v17 = vpop.xlane.xlu0 %2182 }
0x3318   :  { %2692 = vrcp.f32 %v2183_v17 }
0x331e   :  { %v2693_v18 = vpop.eup %2692 }
0x331f   :  { %v2185_v33 = vmul.f32 %v2693_v18, %v2691_v14 }
0x3321   :  { %v2186_v34 = vpack.c.bf16 %v2185_v33, %v2185_v33 }
0x3323   :  { %2440 = vmatmul.msk.bf16.vlgmr.msra.gmra.mxu1 %vm1393_vm13, %v2186_v34 }
0x33a0   :  { %v2199_v36 = vpop.f32.mrf.mxu1 }
0x33a1   :  { %v2207_v11 = vsel %vm158_vm0, %v2199_v36, %v2205_v19 }
0x33a2   :  { %v2208_v7 = vpack.c.bf16 %v2207_v11, %v2207_v11 }
0x33a4   :  { %2441 = vmatmul.msk.bf16.vlgmr.msra.gmra.mxu2 %vm237_vm9, %v2208_v7 }
0x33a8   :  { %v2201_v20 = vpop.f32.mrf.mxu1 }
0x3427   :  { %v2221_v21 = vpop.f32.mrf.mxu2 }
0x3428   :  { %v2225_v2 = vadd.f32 %v2221_v21, %v3354_v6 }
0x342a   :  { %2694 = vtanh.f32 %v2225_v2  ;;  %v2442_v50 = vmul.f32 -1.442695, %v2225_v2 }
0x342c   :  { %2696 = vpow2.f32 %v2442_v50 }
0x342f   :  { %v2223_v53 = vpop.f32.mrf.mxu2 }
0x3430   :  { %v2695_v22 = vpop.eup %2694 }
0x3431   :  { %2248 = vrot.lane.b32.xlu0 %v2695_v22, %s2914_s14 }
0x3432   :  { %v2697_v24 = vpop.eup %2696 }
0x3433   :  { %v2229_v27 = vadd.f32 1.0, %v2697_v24 }
0x3435   :  { %2698 = vrcp.f32 %v2229_v27  ;;  %v2241_v38 = vand.u32 2147483648, %v2229_v27  ;;  %vm2235_vm9 = vweird.f32 %v2229_v27  ;;  %v2239_v39 = vand.u32 2147483647, %v2229_v27 }
0x3437   :  { %v2242_v41 = vor.u32 1.1754944e-38, %v2241_v38  ;;  %vm2240_vm13 = vcmp.eq.f32.partialorder %v2239_v39, 8.507059e+37 }
0x343b   :  { %v2699_v28 = vpop.eup %2698 }
0x343c   :  { %v2231_v30 = vmul.f32 %v2699_v28, %v2229_v27  ;;  %vm2236_vm0 = vweird.f32 %v2699_v28 }
0x343d   :  { %vm2237_vm12 = vmor %vm2235_vm9, %vm2236_vm0 }
0x343e   :  { %v2232_v32 = vsub.f32 1.0, %v2231_v30 }
0x3440   :  { %v2233_v45 = vmul.f32 %v2699_v28, %v2232_v32 }
0x3442   :  { %v2234_v51 = vadd.f32 %v2699_v28, %v2233_v45 }
0x3444   :  { %v2238_v6 = vsel %vm2237_vm12, %v2699_v28, %v2234_v51 }
0x3445   :  { %v2243_v47 = vsel %vm2240_vm13, %v2242_v41, %v2238_v6 }
0x3446   :  { %v2246_v35 = vmul.f32 %v2243_v47, %v3495_v46 }
0x34a3   :  { %v2249_v42 = vpop.permute.xlu0 %2248 }
0x34a4   :  { %v2251_v48 = vmul.f32 %v2249_v42, %v2243_v47 }
0x34a6   :  { %2253 = vrot.lane.b32.xlu2 %v2251_v48, %s2918_s3 }
0x3500   :  { %v2254_v31 = vpop.permute.xlu2 %2253 }
0x3501   :  { %v2256_v52 = vadd.f32 %v2254_v31, %v2246_v35 }
0x3503   :  { %2700 = vtanh.f32 %v2256_v52 }
0x3509   :  { %v2701_v54 = vpop.eup %2700 }
0x350a   :  { %2259 = vrot.lane.b32.xlu2 %v2701_v54, %s2914_s14 }
0x3564   :  { %v2260_v55 = vpop.permute.xlu2 %2259 }
0x3565   :  { %v2262_v57 = vmul.f32 %v2260_v55, %v2243_v47 }
0x3567   :  { %v2263_v59 = vadd.f32 %v2262_v57, %v3363_v43 }
0x3569   :  { %2265 = vrot.lane.b32.xlu2 %v2263_v59, %s2918_s3 }
0x35c3   :  { %v2266_v63 = vpop.permute.xlu2 %2265 }
0x35c4   :  { %2269 = vst.msk [vmem:[#allocation14] sm:$0xf] %vm2268_vm5, %v2266_v63 }
0x35c5   :  { %2291 = dma.vmem_to_hbm [thread:$0]  %s2287_s25, 64, %s2289_s4, [#allocation15]  }
0x35c6   :  { %2903 = dma.done.wait [#allocation4], 128  }
0x35c7   :  { %2904 = vsyncadd [#allocation4], 4294967168 }
0x35c8   :  { %2905 = dma.done.wait [#allocation15], 64  }
0x35c9   :  { %2906 = vsyncadd [#allocation15], 4294967232 }
0x35ca   :  { %2300 = vsyncpa [#allocation3], 1 }
0x35cb   :  { %2301 = vsyncpa [#allocation6], 1 }
0x35cc   :  { %2302 = vsyncpa [#allocation9], 1 }
0x35cd   :  { %2303 = vsyncpa [#allocation12], 1 }
0x35ce   :  { %2304 = vsyncpa [#allocation4], 1 }
0x35cf   :  { %2305 = vsyncpa [#allocation15], 1 }

</bundles_post_ra>
